<compile_context>
chip_gen: v6e
topology: v6e:2x2x1
jax: 0.10.0
libtpu: 0.0.40
codegen_flags: <defaults>
</compile_context>

<pallas_src>
import numpy as np
import jax
import jax.numpy as jnp
from jax.experimental import pallas as pl
from jax.experimental.pallas import tpu as pltpu

# ------------------------- small configuration ------------------------------
BS = 2
NUM_BEV_WIN = 2
BEV_H = 8
BEV_W = 8
EMBED_DIMS = 32
NUM_HEADS = 4
META_HIDDEN = 256                                # module default
WINDOW_SIZE = BEV_H // NUM_BEV_WIN               # 4
TOKENS = WINDOW_SIZE * WINDOW_SIZE               # 16 tokens per window
DPH = EMBED_DIMS // NUM_HEADS                    # 8
N_HWIN = BEV_H // WINDOW_SIZE
N_WWIN = BEV_W // WINDOW_SIZE
BW = BS * N_HWIN * N_WWIN                        # batch * windows = 8
ROWS = BW * TOKENS                               # 128 tokens total, one kernel step
N_BANDS = ROWS // TOKENS                         # 8 windows along the token slab
LN_EPS = 1e-5
NEG_INF = -1e9                                   # cross-window blocker
NORM_EPS = 1e-12                                 # eps inside rsqrt for q/k norms

assert (TOKENS & (TOKENS - 1)) == 0
_WIN_SHIFT = TOKENS.bit_length() - 1             # token index -> window id via >> 4


# ------------------------------- kernel -------------------------------------
def _window_attn_kernel(xt_ref, kt_ref, w_ref, b_ref, rpe_ref, qmask_ref,
                        itau_ref, o_ref):
    C = EMBED_DIMS
    kt = kt_ref[...]                       # (C, ROWS)  key tokens (channels x tokens)
    w = w_ref[...]                         # (H*C + 2C, C) packed [Wvp^T | Wq^T | Wk^T]
    b = b_ref[...]                         # (C, 8) cols [bq, bk, b_out, ln_g, ln_b, 0,0,0]

    wvp_t = w[0:NUM_HEADS * C, :]                          # (H*C, C)
    wq_t = w[NUM_HEADS * C:(NUM_HEADS + 1) * C, :]         # (C, C)
    wk_t = w[(NUM_HEADS + 1) * C:(NUM_HEADS + 2) * C, :]   # (C, C)

    q_t = jnp.dot(wq_t, xt_ref[...], preferred_element_type=jnp.float32) + b[:, 0:1]
    k_t = jnp.dot(wk_t, kt, preferred_element_type=jnp.float32) + b[:, 1:2]
    v_t = jnp.dot(wvp_t, kt, preferred_element_type=jnp.float32)   # (H*C, ROWS)

    # Cross-window blocker (block-diagonal over the 8 batch*window groups) with the
    # per-query -100 key mask folded in once (row-constant, softmax no-op, kept for
    # parity with the PyTorch module).
    row_win = jax.lax.broadcasted_iota(jnp.int32, (ROWS, ROWS), 0) >> _WIN_SHIFT
    col_win = jax.lax.broadcasted_iota(jnp.int32, (ROWS, ROWS), 1) >> _WIN_SHIFT
    blocker = jnp.where(row_win == col_win, 0.0, NEG_INF) + qmask_ref[...]

    acc_t = jnp.zeros((C, ROWS), jnp.float32)
    for h in range(NUM_HEADS):             # static unroll over 4 heads
        lo, hi = h * DPH, (h + 1) * DPH
        qh = q_t[lo:hi, :]                 # (d, ROWS)  aligned sublane slices
        kh = k_t[lo:hi, :]
        # scaled cosine attention via pre-normalized q (incl. 1/tau) and k
        qh = qh * (jax.lax.rsqrt(jnp.sum(qh * qh, axis=0, keepdims=True) + NORM_EPS)
                   * itau_ref[h])
        kh = kh * jax.lax.rsqrt(jnp.sum(kh * kh, axis=0, keepdims=True) + NORM_EPS)
        s = jax.lax.dot_general(qh, kh, (((0,), (0,)), ((), ())),
                                preferred_element_type=jnp.float32)   # (ROWS, ROWS)
        a = s + blocker
        # Relative positional bias: lane-tiled (16, ROWS) slab added to every 16-row
        # band; off-diagonal bands are already at -1e9 so the extra add is inert.
        a = (a.reshape(N_BANDS, TOKENS, ROWS) + rpe_ref[h]).reshape(ROWS, ROWS)
        a = a - jnp.max(a, axis=-1, keepdims=True)                    # stable softmax
        e = jnp.exp(a)
        p = e * pl.reciprocal(jnp.sum(e, axis=-1, keepdims=True), approx=True)
        # TODO(synk): attention/projection dropout (p=0.1) omitted -> inference mode.
        vh = v_t[h * C:(h + 1) * C, :]     # (C, ROWS) = (kin @ Wv_h @ Wp_h)^T
        acc_t = acc_t + jax.lax.dot_general(vh, p, (((1,), (1,)), ((), ())),
                                            preferred_element_type=jnp.float32)

    proj_t = acc_t + b[:, 2:3]             # b_out = bv @ Wp + bp (softmax rows sum to 1)

    # LayerNorm over channels (sublane axis) + residual with the original query
    mu = jnp.mean(proj_t, axis=0, keepdims=True)
    var = jnp.mean((proj_t - mu) ** 2, axis=0, keepdims=True)
    normed = (proj_t - mu) * jax.lax.rsqrt(var + LN_EPS) * b[:, 3:4] + b[:, 4:5]
    o_ref[...] = normed + xt_ref[...]


# ------------------------------ glue -----------------------------------------
def _to_windows(x):
    # (BS, H, W, F) -> (BW, TOKENS, F)   -- matches torch `unfold`
    f = x.shape[-1]
    x = x.reshape(BS, N_HWIN, WINDOW_SIZE, N_WWIN, WINDOW_SIZE, f)
    x = x.transpose(0, 1, 3, 2, 4, 5)
    return x.reshape(BW, TOKENS, f)


def _from_windows(x):
    # (BW, TOKENS, C) -> (BS, H*W, C)    -- matches torch `fold` + final flatten/permute
    x = x.reshape(BS, N_HWIN, N_WWIN, WINDOW_SIZE, WINDOW_SIZE, EMBED_DIMS)
    x = x.transpose(0, 1, 3, 2, 4, 5)
    return x.reshape(BS, BEV_H * BEV_W, EMBED_DIMS)


def _relative_position_bias(params):
    # meta-network positional bias (parameter-only compute, done in plain JAX)
    idx = jnp.arange(WINDOW_SIZE)
    ci, cj = jnp.meshgrid(idx, idx, indexing="ij")
    coords = jnp.stack([ci, cj], axis=0).reshape(2, -1)           # (2, T)
    rel = coords[:, :, None] - coords[:, None, :]                 # (2, T, T)
    rel = rel.transpose(1, 2, 0).reshape(-1, 2).astype(jnp.float32)
    rel_log = jnp.sign(rel) * jnp.log1p(jnp.abs(rel))
    hdn = jnp.maximum(rel_log @ params["meta_w1"] + params["meta_b1"], 0.0)
    bias = hdn @ params["meta_w2"] + params["meta_b2"]            # (T*T, heads)
    return bias.T.reshape(NUM_HEADS, TOKENS, TOKENS)


@jax.jit
def window_cross_attention(query, key, params):
    # query / key : (BS, BEV_H*BEV_W, C)  ->  (BS, BEV_H*BEV_W, C)
    C, T = EMBED_DIMS, TOKENS
    q_img = query.reshape(BS, BEV_H, BEV_W, C)
    k_img = key.reshape(BS, BEV_H, BEV_W, C)
    mask_img = jnp.where(k_img[..., 0:1] == 0.0, -100.0, 0.0).astype(jnp.float32)

    q_win = _to_windows(q_img)                        # (BW, T, C)
    k_win = _to_windows(k_img)
    m_win = _to_windows(mask_img)                     # (BW, T, 1) per-QUERY additive mask

    # parameter-only precompute (plain JAX, outside the hot kernel)
    rpe = _relative_position_bias(params)             # (H, T, T)
    rpe_tiled = jnp.tile(rpe, (1, 1, N_BANDS))        # (H, T, ROWS): rpe[h, i, j % T]
    inv_tau = 1.0 / jnp.maximum(params["tau"], 0.01)  # (H,)

    # fold the output projection into V (per head) and its bias into one vector
    wv = params["wkv"][:, C:]
    wp = params["wp"]
    wvp = jnp.concatenate(
        [wv[:, h * DPH:(h + 1) * DPH] @ wp[h * DPH:(h + 1) * DPH, :]
         for h in range(NUM_HEADS)], axis=1)          # (C, H*C)
    b_out = params["bkv"][C:] @ wp + params["bp"]     # bv @ Wp + bp

    # packed, transposed parameter slabs (channels on sublanes)
    w_slab = jnp.concatenate(
        [wvp.T, params["wq"].T, params["wkv"][:, :C].T], axis=0)      # (H*C + 2C, C)
    zeros_c = jnp.zeros((C,), jnp.float32)
    b_slab = jnp.stack([params["bq"], params["bkv"][:C], b_out,
                        params["ln_g"], params["ln_b"], zeros_c, zeros_c, zeros_c],
                       axis=1)                                         # (C, 8)

    x_t = q_win.reshape(ROWS, C).T                    # (C, ROWS) lane-dense token slabs
    k_t = k_win.reshape(ROWS, C).T
    qmask = m_win.reshape(ROWS, 1)

    out_t = pl.pallas_call(
        _window_attn_kernel,
        out_shape=jax.ShapeDtypeStruct((C, ROWS), jnp.float32),
        grid_spec=pltpu.PrefetchScalarGridSpec(
            num_scalar_prefetch=0,
            grid=(1,),
            in_specs=[
                pl.BlockSpec((C, ROWS), lambda i: (0, 0)),               # query tokens^T
                pl.BlockSpec((C, ROWS), lambda i: (0, 0)),               # key tokens^T
                pl.BlockSpec(((NUM_HEADS + 2) * C, C), lambda i: (0, 0)),  # packed weights
                pl.BlockSpec((C, 8), lambda i: (0, 0)),                  # biases + LN
                pl.BlockSpec((NUM_HEADS, T, ROWS), lambda i: (0, 0, 0)),   # lane-tiled rpe
                pl.BlockSpec((ROWS, 1), lambda i: (0, 0)),               # per-query mask
                pl.BlockSpec(memory_space=pltpu.MemorySpace.SMEM),       # inv_tau scalars
            ],
            out_specs=pl.BlockSpec((C, ROWS), lambda i: (0, 0)),
        ),
        compiler_params=pltpu.CompilerParams(
            dimension_semantics=("arbitrary",)),
    )(x_t, k_t, w_slab, b_slab, rpe_tiled, qmask, inv_tau)

    return _from_windows(out_t.T.reshape(BW, T, C))


# --------------------------- pure-JAX reference -------------------------------
def reference_forward(query, key, params):
    q_img = query.reshape(BS, BEV_H, BEV_W, EMBED_DIMS)
    k_img = key.reshape(BS, BEV_H, BEV_W, EMBED_DIMS)
    mask_img = jnp.where(k_img[..., 0:1] == 0.0, -100.0, 0.0)
    q_win, k_win, m_win = _to_windows(q_img), _to_windows(k_img), _to_windows(mask_img)

    q = q_win @ params["wq"] + params["bq"]
    kv = k_win @ params["wkv"] + params["bkv"]
    k = kv[..., :EMBED_DIMS]
    v = kv[..., EMBED_DIMS:]

    def split_heads(x):
        return x.reshape(BW, TOKENS, NUM_HEADS, DPH).transpose(0, 2, 1, 3)

    qh, kh, vh = split_heads(q), split_heads(k), split_heads(v)
    attn = jnp.einsum("bhqd,bhkd->bhqk", qh, kh)
    qn = jnp.linalg.norm(qh, axis=-1, keepdims=True)
    kn = jnp.linalg.norm(kh, axis=-1, keepdims=True)
    attn = attn / jnp.maximum(qn * jnp.swapaxes(kn, -2, -1), 1e-6)
    attn = attn / jnp.maximum(params["tau"], 0.01).reshape(1, NUM_HEADS, 1, 1)
    attn = attn + _relative_position_bias(params)[None]
    attn = attn + m_win[:, None, :, :]
    attn = jax.nn.softmax(attn, axis=-1)
    out = jnp.einsum("bhqk,bhkd->bhqd", attn, vh)
    out = out.transpose(0, 2, 1, 3).reshape(BW, TOKENS, EMBED_DIMS)
    out = out @ params["wp"] + params["bp"]
    mu = out.mean(-1, keepdims=True)
    var = ((out - mu) ** 2).mean(-1, keepdims=True)
    out = (out - mu) / jnp.sqrt(var + LN_EPS) * params["ln_g"] + params["ln_b"]
    out = out + q_win
    return _from_windows(out)


# ---------------------------------- main --------------------------------------
if __name__ == "__main__":
    root = jax.random.PRNGKey(0)
    ks = jax.random.split(root, 12)
    s = 0.05
    params = {
        "wq": s * jax.random.normal(ks[0], (EMBED_DIMS, EMBED_DIMS), jnp.float32),
        "bq": s * jax.random.normal(ks[1], (EMBED_DIMS,), jnp.float32),
        "wkv": s * jax.random.normal(ks[2], (EMBED_DIMS, 2 * EMBED_DIMS), jnp.float32),
        "bkv": s * jax.random.normal(ks[3], (2 * EMBED_DIMS,), jnp.float32),
        "wp": s * jax.random.normal(ks[4], (EMBED_DIMS, EMBED_DIMS), jnp.float32),
        "bp": s * jax.random.normal(ks[5], (EMBED_DIMS,), jnp.float32),
        "meta_w1": s * jax.random.normal(ks[6], (2, META_HIDDEN), jnp.float32),
        "meta_b1": s * jax.random.normal(ks[7], (META_HIDDEN,), jnp.float32),
        "meta_w2": s * jax.random.normal(ks[8], (META_HIDDEN, NUM_HEADS), jnp.float32),
        "meta_b2": s * jax.random.normal(ks[9], (NUM_HEADS,), jnp.float32),
        "tau": jnp.ones((NUM_HEADS,), jnp.float32),           # nn.Parameter ones
        "ln_g": jnp.ones((EMBED_DIMS,), jnp.float32),          # LayerNorm defaults
        "ln_b": jnp.zeros((EMBED_DIMS,), jnp.float32),
    }

    query = jax.random.normal(ks[10], (BS, BEV_H * BEV_W, EMBED_DIMS), jnp.float32)
    key = jax.random.normal(ks[11], (BS, BEV_H * BEV_W, EMBED_DIMS), jnp.float32)
    key = key.at[:, :5, :].set(0.0)       # exercise the key==0 -> -100 mask path

    out = window_cross_attention(query, key, params)
    out = jax.block_until_ready(out)

    ref = reference_forward(query, key, params)
    np.testing.assert_allclose(np.asarray(out), np.asarray(ref), rtol=2e-2, atol=2e-2)
    assert out.shape == (BS, BEV_H * BEV_W, EMBED_DIMS)
    print("KERNEL_OK")
</pallas_src>

<mosaic_0001>
module attributes {stable_mosaic.version = 11 : i64} {
  func.func @_window_attn_kernel(%arg0: i32, %arg1: memref<32x128xf32, #tpu.memory_space<vmem>>, %arg2: memref<32x128xf32, #tpu.memory_space<vmem>>, %arg3: memref<192x32xf32, #tpu.memory_space<vmem>>, %arg4: memref<32x8xf32, #tpu.memory_space<vmem>>, %arg5: memref<4x16x128xf32, #tpu.memory_space<vmem>>, %arg6: memref<128x1xf32, #tpu.memory_space<vmem>>, %arg7: memref<4xf32, #tpu.memory_space<smem>>, %arg8: memref<32x128xf32, #tpu.memory_space<vmem>>) attributes {dimension_semantics = [#tpu.dimension_semantics<arbitrary>], iteration_bounds = array<i64: 1>, scalar_prefetch = 0 : i64, scratch_operands = 0 : i64, tpu.core_type = #tpu.core_type<tc>, window_params = [{pipeline_mode = #tpu.pipeline_mode<synchronous>, transform_indices = @transform_0, window_bounds = array<i64: 32, 128>}, {pipeline_mode = #tpu.pipeline_mode<synchronous>, transform_indices = @transform_1, window_bounds = array<i64: 32, 128>}, {pipeline_mode = #tpu.pipeline_mode<synchronous>, transform_indices = @transform_2, window_bounds = array<i64: 192, 32>}, {pipeline_mode = #tpu.pipeline_mode<synchronous>, transform_indices = @transform_3, window_bounds = array<i64: 32, 8>}, {pipeline_mode = #tpu.pipeline_mode<synchronous>, transform_indices = @transform_4, window_bounds = array<i64: 4, 16, 128>}, {pipeline_mode = #tpu.pipeline_mode<synchronous>, transform_indices = @transform_5, window_bounds = array<i64: 128, 1>}, {transform_indices = @transform_6, window_bounds = array<i64: 4>}, {pipeline_mode = #tpu.pipeline_mode<synchronous>, transform_indices = @transform_7, window_bounds = array<i64: 32, 128>}]} {
    %c0 = arith.constant 0 : index
    %c0_0 = arith.constant 0 : index
    %0 = vector.load %arg2[%c0, %c0_0] : memref<32x128xf32, #tpu.memory_space<vmem>>, vector<32x128xf32>
    %c0_1 = arith.constant 0 : index
    %c0_2 = arith.constant 0 : index
    %1 = vector.load %arg3[%c0_1, %c0_2] : memref<192x32xf32, #tpu.memory_space<vmem>>, vector<192x32xf32>
    %c0_3 = arith.constant 0 : index
    %c0_4 = arith.constant 0 : index
    %2 = vector.load %arg4[%c0_3, %c0_4] : memref<32x8xf32, #tpu.memory_space<vmem>>, vector<32x8xf32>
    %3 = vector.extract_strided_slice %1 {offsets = [0, 0], sizes = [128, 32], strides = [1, 1]} : vector<192x32xf32> to vector<128x32xf32>
    %4 = vector.extract_strided_slice %1 {offsets = [128, 0], sizes = [32, 32], strides = [1, 1]} : vector<192x32xf32> to vector<32x32xf32>
    %5 = vector.extract_strided_slice %1 {offsets = [160, 0], sizes = [32, 32], strides = [1, 1]} : vector<192x32xf32> to vector<32x32xf32>
    %c0_5 = arith.constant 0 : index
    %c0_6 = arith.constant 0 : index
    %6 = vector.load %arg1[%c0_5, %c0_6] : memref<32x128xf32, #tpu.memory_space<vmem>>, vector<32x128xf32>
    %cst = arith.constant dense<0.000000e+00> : vector<32x128xf32>
    %7 = tpu.matmul %4, %6, %cst {dimension_numbers = #tpu.dot_dimension_numbers<[1], [0], [0], [1], [0, 0, 1, 1], [], []>} : vector<32x32xf32>, vector<32x128xf32>, vector<32x128xf32> -> vector<32x128xf32>
    %8 = vector.extract_strided_slice %2 {offsets = [0, 0], sizes = [32, 1], strides = [1, 1]} : vector<32x8xf32> to vector<32x1xf32>
    %9 = vector.broadcast %8 : vector<32x1xf32> to vector<32x128xf32>
    %10 = arith.addf %7, %9 : vector<32x128xf32>
    %cst_7 = arith.constant dense<0.000000e+00> : vector<32x128xf32>
    %11 = tpu.matmul %5, %0, %cst_7 {dimension_numbers = #tpu.dot_dimension_numbers<[1], [0], [0], [1], [0, 0, 1, 1], [], []>} : vector<32x32xf32>, vector<32x128xf32>, vector<32x128xf32> -> vector<32x128xf32>
    %12 = vector.extract_strided_slice %2 {offsets = [0, 1], sizes = [32, 1], strides = [1, 1]} : vector<32x8xf32> to vector<32x1xf32>
    %13 = vector.broadcast %12 : vector<32x1xf32> to vector<32x128xf32>
    %14 = arith.addf %11, %13 : vector<32x128xf32>
    %cst_8 = arith.constant dense<0.000000e+00> : vector<128x128xf32>
    %15 = tpu.matmul %3, %0, %cst_8 {dimension_numbers = #tpu.dot_dimension_numbers<[1], [0], [0], [1], [0, 0, 1, 1], [], []>} : vector<128x32xf32>, vector<32x128xf32>, vector<128x128xf32> -> vector<128x128xf32>
    %16 = tpu.iota {dimensions = array<i32: 0>} : vector<128x128xi32>
    %c4_i32 = arith.constant 4 : i32
    %17 = vector.broadcast %c4_i32 : i32 to vector<128x128xi32>
    %18 = arith.shrsi %16, %17 : vector<128x128xi32>
    %19 = tpu.iota {dimensions = array<i32: 1>} : vector<128x128xi32>
    %c4_i32_9 = arith.constant 4 : i32
    %20 = vector.broadcast %c4_i32_9 : i32 to vector<128x128xi32>
    %21 = arith.shrsi %19, %20 : vector<128x128xi32>
    %22 = arith.cmpi eq, %18, %21 : vector<128x128xi32>
    %cst_10 = arith.constant 0.000000e+00 : f32
    %cst_11 = arith.constant -1.000000e+09 : f32
    %23 = vector.broadcast %cst_10 : f32 to vector<128x128xf32>
    %24 = vector.broadcast %cst_11 : f32 to vector<128x128xf32>
    %25 = arith.select %22, %23, %24 : vector<128x128xi1>, vector<128x128xf32>
    %c0_12 = arith.constant 0 : index
    %c0_13 = arith.constant 0 : index
    %26 = vector.load %arg6[%c0_12, %c0_13] : memref<128x1xf32, #tpu.memory_space<vmem>>, vector<128x1xf32>
    %27 = vector.broadcast %26 : vector<128x1xf32> to vector<128x128xf32>
    %28 = arith.addf %25, %27 : vector<128x128xf32>
    %cst_14 = arith.constant 0.000000e+00 : f32
    %29 = vector.broadcast %cst_14 : f32 to vector<32x128xf32>
    %30 = vector.extract_strided_slice %10 {offsets = [0, 0], sizes = [8, 128], strides = [1, 1]} : vector<32x128xf32> to vector<8x128xf32>
    %31 = vector.extract_strided_slice %14 {offsets = [0, 0], sizes = [8, 128], strides = [1, 1]} : vector<32x128xf32> to vector<8x128xf32>
    %32 = arith.mulf %30, %30 : vector<8x128xf32>
    %cst_15 = arith.constant dense<0.000000e+00> : vector<128xf32>
    %33 = vector.multi_reduction <add>, %32, %cst_15 [0] : vector<8x128xf32> to vector<128xf32>
    %34 = vector.shape_cast %33 : vector<128xf32> to vector<1x128xf32>
    %cst_16 = arith.constant 9.99999996E-13 : f32
    %35 = vector.broadcast %cst_16 : f32 to vector<1x128xf32>
    %36 = arith.addf %34, %35 : vector<1x128xf32>
    %37 = math.rsqrt %36 : vector<1x128xf32>
    %c0_17 = arith.constant 0 : index
    %38 = memref.load %arg7[%c0_17] : memref<4xf32, #tpu.memory_space<smem>>
    %39 = vector.broadcast %38 : f32 to vector<1x128xf32>
    %40 = arith.mulf %37, %39 : vector<1x128xf32>
    %41 = vector.broadcast %40 : vector<1x128xf32> to vector<8x128xf32>
    %42 = arith.mulf %30, %41 : vector<8x128xf32>
    %43 = arith.mulf %31, %31 : vector<8x128xf32>
    %cst_18 = arith.constant dense<0.000000e+00> : vector<128xf32>
    %44 = vector.multi_reduction <add>, %43, %cst_18 [0] : vector<8x128xf32> to vector<128xf32>
    %45 = vector.shape_cast %44 : vector<128xf32> to vector<1x128xf32>
    %cst_19 = arith.constant 9.99999996E-13 : f32
    %46 = vector.broadcast %cst_19 : f32 to vector<1x128xf32>
    %47 = arith.addf %45, %46 : vector<1x128xf32>
    %48 = math.rsqrt %47 : vector<1x128xf32>
    %49 = vector.broadcast %48 : vector<1x128xf32> to vector<8x128xf32>
    %50 = arith.mulf %31, %49 : vector<8x128xf32>
    %cst_20 = arith.constant dense<0.000000e+00> : vector<128x128xf32>
    %51 = tpu.matmul %42, %50, %cst_20 {dimension_numbers = #tpu.dot_dimension_numbers<[0], [0], [1], [1], [0, 1, 1, 1], [], []>} : vector<8x128xf32>, vector<8x128xf32>, vector<128x128xf32> -> vector<128x128xf32>
    %52 = arith.addf %51, %28 : vector<128x128xf32>
    %53 = vector.shape_cast %52 : vector<128x128xf32> to vector<8x16x128xf32>
    %c0_21 = arith.constant 0 : index
    %c0_22 = arith.constant 0 : index
    %c0_23 = arith.constant 0 : index
    %54 = vector.load %arg5[%c0_21, %c0_22, %c0_23] : memref<4x16x128xf32, #tpu.memory_space<vmem>>, vector<1x16x128xf32>
    %55 = vector.shape_cast %54 : vector<1x16x128xf32> to vector<16x128xf32>
    %56 = vector.shape_cast %55 : vector<16x128xf32> to vector<1x16x128xf32>
    %57 = vector.broadcast %56 : vector<1x16x128xf32> to vector<8x16x128xf32>
    %58 = arith.addf %53, %57 : vector<8x16x128xf32>
    %59 = vector.shape_cast %58 : vector<8x16x128xf32> to vector<128x128xf32>
    %cst_24 = arith.constant dense<0xFF800000> : vector<128xf32>
    %60 = vector.multi_reduction <maximumf>, %59, %cst_24 [1] : vector<128x128xf32> to vector<128xf32>
    %61 = vector.shape_cast %60 : vector<128xf32> to vector<128x1xf32>
    %62 = vector.broadcast %61 : vector<128x1xf32> to vector<128x128xf32>
    %63 = arith.subf %59, %62 : vector<128x128xf32>
    %64 = math.exp %63 : vector<128x128xf32>
    %cst_25 = arith.constant dense<0.000000e+00> : vector<128xf32>
    %65 = vector.multi_reduction <add>, %64, %cst_25 [1] : vector<128x128xf32> to vector<128xf32>
    %66 = vector.shape_cast %65 : vector<128xf32> to vector<128x1xf32>
    %67 = tpu.reciprocal %66 {approx = true} : vector<128x1xf32> -> vector<128x1xf32>
    %68 = vector.broadcast %67 : vector<128x1xf32> to vector<128x128xf32>
    %69 = arith.mulf %64, %68 : vector<128x128xf32>
    %70 = vector.extract_strided_slice %15 {offsets = [0, 0], sizes = [32, 128], strides = [1, 1]} : vector<128x128xf32> to vector<32x128xf32>
    %cst_26 = arith.constant dense<0.000000e+00> : vector<32x128xf32>
    %71 = tpu.matmul %70, %69, %cst_26 {dimension_numbers = #tpu.dot_dimension_numbers<[1], [1], [0], [0], [0, 0, 1, 0], [], []>} : vector<32x128xf32>, vector<128x128xf32>, vector<32x128xf32> -> vector<32x128xf32>
    %72 = arith.addf %29, %71 : vector<32x128xf32>
    %73 = vector.extract_strided_slice %10 {offsets = [8, 0], sizes = [8, 128], strides = [1, 1]} : vector<32x128xf32> to vector<8x128xf32>
    %74 = vector.extract_strided_slice %14 {offsets = [8, 0], sizes = [8, 128], strides = [1, 1]} : vector<32x128xf32> to vector<8x128xf32>
    %75 = arith.mulf %73, %73 : vector<8x128xf32>
    %cst_27 = arith.constant dense<0.000000e+00> : vector<128xf32>
    %76 = vector.multi_reduction <add>, %75, %cst_27 [0] : vector<8x128xf32> to vector<128xf32>
    %77 = vector.shape_cast %76 : vector<128xf32> to vector<1x128xf32>
    %cst_28 = arith.constant 9.99999996E-13 : f32
    %78 = vector.broadcast %cst_28 : f32 to vector<1x128xf32>
    %79 = arith.addf %77, %78 : vector<1x128xf32>
    %80 = math.rsqrt %79 : vector<1x128xf32>
    %c1 = arith.constant 1 : index
    %81 = memref.load %arg7[%c1] : memref<4xf32, #tpu.memory_space<smem>>
    %82 = vector.broadcast %81 : f32 to vector<1x128xf32>
    %83 = arith.mulf %80, %82 : vector<1x128xf32>
    %84 = vector.broadcast %83 : vector<1x128xf32> to vector<8x128xf32>
    %85 = arith.mulf %73, %84 : vector<8x128xf32>
    %86 = arith.mulf %74, %74 : vector<8x128xf32>
    %cst_29 = arith.constant dense<0.000000e+00> : vector<128xf32>
    %87 = vector.multi_reduction <add>, %86, %cst_29 [0] : vector<8x128xf32> to vector<128xf32>
    %88 = vector.shape_cast %87 : vector<128xf32> to vector<1x128xf32>
    %cst_30 = arith.constant 9.99999996E-13 : f32
    %89 = vector.broadcast %cst_30 : f32 to vector<1x128xf32>
    %90 = arith.addf %88, %89 : vector<1x128xf32>
    %91 = math.rsqrt %90 : vector<1x128xf32>
    %92 = vector.broadcast %91 : vector<1x128xf32> to vector<8x128xf32>
    %93 = arith.mulf %74, %92 : vector<8x128xf32>
    %cst_31 = arith.constant dense<0.000000e+00> : vector<128x128xf32>
    %94 = tpu.matmul %85, %93, %cst_31 {dimension_numbers = #tpu.dot_dimension_numbers<[0], [0], [1], [1], [0, 1, 1, 1], [], []>} : vector<8x128xf32>, vector<8x128xf32>, vector<128x128xf32> -> vector<128x128xf32>
    %95 = arith.addf %94, %28 : vector<128x128xf32>
    %96 = vector.shape_cast %95 : vector<128x128xf32> to vector<8x16x128xf32>
    %c1_32 = arith.constant 1 : index
    %c0_33 = arith.constant 0 : index
    %c0_34 = arith.constant 0 : index
    %97 = vector.load %arg5[%c1_32, %c0_33, %c0_34] : memref<4x16x128xf32, #tpu.memory_space<vmem>>, vector<1x16x128xf32>
    %98 = vector.shape_cast %97 : vector<1x16x128xf32> to vector<16x128xf32>
    %99 = vector.shape_cast %98 : vector<16x128xf32> to vector<1x16x128xf32>
    %100 = vector.broadcast %99 : vector<1x16x128xf32> to vector<8x16x128xf32>
    %101 = arith.addf %96, %100 : vector<8x16x128xf32>
    %102 = vector.shape_cast %101 : vector<8x16x128xf32> to vector<128x128xf32>
    %cst_35 = arith.constant dense<0xFF800000> : vector<128xf32>
    %103 = vector.multi_reduction <maximumf>, %102, %cst_35 [1] : vector<128x128xf32> to vector<128xf32>
    %104 = vector.shape_cast %103 : vector<128xf32> to vector<128x1xf32>
    %105 = vector.broadcast %104 : vector<128x1xf32> to vector<128x128xf32>
    %106 = arith.subf %102, %105 : vector<128x128xf32>
    %107 = math.exp %106 : vector<128x128xf32>
    %cst_36 = arith.constant dense<0.000000e+00> : vector<128xf32>
    %108 = vector.multi_reduction <add>, %107, %cst_36 [1] : vector<128x128xf32> to vector<128xf32>
    %109 = vector.shape_cast %108 : vector<128xf32> to vector<128x1xf32>
    %110 = tpu.reciprocal %109 {approx = true} : vector<128x1xf32> -> vector<128x1xf32>
    %111 = vector.broadcast %110 : vector<128x1xf32> to vector<128x128xf32>
    %112 = arith.mulf %107, %111 : vector<128x128xf32>
    %113 = vector.extract_strided_slice %15 {offsets = [32, 0], sizes = [32, 128], strides = [1, 1]} : vector<128x128xf32> to vector<32x128xf32>
    %cst_37 = arith.constant dense<0.000000e+00> : vector<32x128xf32>
    %114 = tpu.matmul %113, %112, %cst_37 {dimension_numbers = #tpu.dot_dimension_numbers<[1], [1], [0], [0], [0, 0, 1, 0], [], []>} : vector<32x128xf32>, vector<128x128xf32>, vector<32x128xf32> -> vector<32x128xf32>
    %115 = arith.addf %72, %114 : vector<32x128xf32>
    %116 = vector.extract_strided_slice %10 {offsets = [16, 0], sizes = [8, 128], strides = [1, 1]} : vector<32x128xf32> to vector<8x128xf32>
    %117 = vector.extract_strided_slice %14 {offsets = [16, 0], sizes = [8, 128], strides = [1, 1]} : vector<32x128xf32> to vector<8x128xf32>
    %118 = arith.mulf %116, %116 : vector<8x128xf32>
    %cst_38 = arith.constant dense<0.000000e+00> : vector<128xf32>
    %119 = vector.multi_reduction <add>, %118, %cst_38 [0] : vector<8x128xf32> to vector<128xf32>
    %120 = vector.shape_cast %119 : vector<128xf32> to vector<1x128xf32>
    %cst_39 = arith.constant 9.99999996E-13 : f32
    %121 = vector.broadcast %cst_39 : f32 to vector<1x128xf32>
    %122 = arith.addf %120, %121 : vector<1x128xf32>
    %123 = math.rsqrt %122 : vector<1x128xf32>
    %c2 = arith.constant 2 : index
    %124 = memref.load %arg7[%c2] : memref<4xf32, #tpu.memory_space<smem>>
    %125 = vector.broadcast %124 : f32 to vector<1x128xf32>
    %126 = arith.mulf %123, %125 : vector<1x128xf32>
    %127 = vector.broadcast %126 : vector<1x128xf32> to vector<8x128xf32>
    %128 = arith.mulf %116, %127 : vector<8x128xf32>
    %129 = arith.mulf %117, %117 : vector<8x128xf32>
    %cst_40 = arith.constant dense<0.000000e+00> : vector<128xf32>
    %130 = vector.multi_reduction <add>, %129, %cst_40 [0] : vector<8x128xf32> to vector<128xf32>
    %131 = vector.shape_cast %130 : vector<128xf32> to vector<1x128xf32>
    %cst_41 = arith.constant 9.99999996E-13 : f32
    %132 = vector.broadcast %cst_41 : f32 to vector<1x128xf32>
    %133 = arith.addf %131, %132 : vector<1x128xf32>
    %134 = math.rsqrt %133 : vector<1x128xf32>
    %135 = vector.broadcast %134 : vector<1x128xf32> to vector<8x128xf32>
    %136 = arith.mulf %117, %135 : vector<8x128xf32>
    %cst_42 = arith.constant dense<0.000000e+00> : vector<128x128xf32>
    %137 = tpu.matmul %128, %136, %cst_42 {dimension_numbers = #tpu.dot_dimension_numbers<[0], [0], [1], [1], [0, 1, 1, 1], [], []>} : vector<8x128xf32>, vector<8x128xf32>, vector<128x128xf32> -> vector<128x128xf32>
    %138 = arith.addf %137, %28 : vector<128x128xf32>
    %139 = vector.shape_cast %138 : vector<128x128xf32> to vector<8x16x128xf32>
    %c2_43 = arith.constant 2 : index
    %c0_44 = arith.constant 0 : index
    %c0_45 = arith.constant 0 : index
    %140 = vector.load %arg5[%c2_43, %c0_44, %c0_45] : memref<4x16x128xf32, #tpu.memory_space<vmem>>, vector<1x16x128xf32>
    %141 = vector.shape_cast %140 : vector<1x16x128xf32> to vector<16x128xf32>
    %142 = vector.shape_cast %141 : vector<16x128xf32> to vector<1x16x128xf32>
    %143 = vector.broadcast %142 : vector<1x16x128xf32> to vector<8x16x128xf32>
    %144 = arith.addf %139, %143 : vector<8x16x128xf32>
    %145 = vector.shape_cast %144 : vector<8x16x128xf32> to vector<128x128xf32>
    %cst_46 = arith.constant dense<0xFF800000> : vector<128xf32>
    %146 = vector.multi_reduction <maximumf>, %145, %cst_46 [1] : vector<128x128xf32> to vector<128xf32>
    %147 = vector.shape_cast %146 : vector<128xf32> to vector<128x1xf32>
    %148 = vector.broadcast %147 : vector<128x1xf32> to vector<128x128xf32>
    %149 = arith.subf %145, %148 : vector<128x128xf32>
    %150 = math.exp %149 : vector<128x128xf32>
    %cst_47 = arith.constant dense<0.000000e+00> : vector<128xf32>
    %151 = vector.multi_reduction <add>, %150, %cst_47 [1] : vector<128x128xf32> to vector<128xf32>
    %152 = vector.shape_cast %151 : vector<128xf32> to vector<128x1xf32>
    %153 = tpu.reciprocal %152 {approx = true} : vector<128x1xf32> -> vector<128x1xf32>
    %154 = vector.broadcast %153 : vector<128x1xf32> to vector<128x128xf32>
    %155 = arith.mulf %150, %154 : vector<128x128xf32>
    %156 = vector.extract_strided_slice %15 {offsets = [64, 0], sizes = [32, 128], strides = [1, 1]} : vector<128x128xf32> to vector<32x128xf32>
    %cst_48 = arith.constant dense<0.000000e+00> : vector<32x128xf32>
    %157 = tpu.matmul %156, %155, %cst_48 {dimension_numbers = #tpu.dot_dimension_numbers<[1], [1], [0], [0], [0, 0, 1, 0], [], []>} : vector<32x128xf32>, vector<128x128xf32>, vector<32x128xf32> -> vector<32x128xf32>
    %158 = arith.addf %115, %157 : vector<32x128xf32>
    %159 = vector.extract_strided_slice %10 {offsets = [24, 0], sizes = [8, 128], strides = [1, 1]} : vector<32x128xf32> to vector<8x128xf32>
    %160 = vector.extract_strided_slice %14 {offsets = [24, 0], sizes = [8, 128], strides = [1, 1]} : vector<32x128xf32> to vector<8x128xf32>
    %161 = arith.mulf %159, %159 : vector<8x128xf32>
    %cst_49 = arith.constant dense<0.000000e+00> : vector<128xf32>
    %162 = vector.multi_reduction <add>, %161, %cst_49 [0] : vector<8x128xf32> to vector<128xf32>
    %163 = vector.shape_cast %162 : vector<128xf32> to vector<1x128xf32>
    %cst_50 = arith.constant 9.99999996E-13 : f32
    %164 = vector.broadcast %cst_50 : f32 to vector<1x128xf32>
    %165 = arith.addf %163, %164 : vector<1x128xf32>
    %166 = math.rsqrt %165 : vector<1x128xf32>
    %c3 = arith.constant 3 : index
    %167 = memref.load %arg7[%c3] : memref<4xf32, #tpu.memory_space<smem>>
    %168 = vector.broadcast %167 : f32 to vector<1x128xf32>
    %169 = arith.mulf %166, %168 : vector<1x128xf32>
    %170 = vector.broadcast %169 : vector<1x128xf32> to vector<8x128xf32>
    %171 = arith.mulf %159, %170 : vector<8x128xf32>
    %172 = arith.mulf %160, %160 : vector<8x128xf32>
    %cst_51 = arith.constant dense<0.000000e+00> : vector<128xf32>
    %173 = vector.multi_reduction <add>, %172, %cst_51 [0] : vector<8x128xf32> to vector<128xf32>
    %174 = vector.shape_cast %173 : vector<128xf32> to vector<1x128xf32>
    %cst_52 = arith.constant 9.99999996E-13 : f32
    %175 = vector.broadcast %cst_52 : f32 to vector<1x128xf32>
    %176 = arith.addf %174, %175 : vector<1x128xf32>
    %177 = math.rsqrt %176 : vector<1x128xf32>
    %178 = vector.broadcast %177 : vector<1x128xf32> to vector<8x128xf32>
    %179 = arith.mulf %160, %178 : vector<8x128xf32>
    %cst_53 = arith.constant dense<0.000000e+00> : vector<128x128xf32>
    %180 = tpu.matmul %171, %179, %cst_53 {dimension_numbers = #tpu.dot_dimension_numbers<[0], [0], [1], [1], [0, 1, 1, 1], [], []>} : vector<8x128xf32>, vector<8x128xf32>, vector<128x128xf32> -> vector<128x128xf32>
    %181 = arith.addf %180, %28 : vector<128x128xf32>
    %182 = vector.shape_cast %181 : vector<128x128xf32> to vector<8x16x128xf32>
    %c3_54 = arith.constant 3 : index
    %c0_55 = arith.constant 0 : index
    %c0_56 = arith.constant 0 : index
    %183 = vector.load %arg5[%c3_54, %c0_55, %c0_56] : memref<4x16x128xf32, #tpu.memory_space<vmem>>, vector<1x16x128xf32>
    %184 = vector.shape_cast %183 : vector<1x16x128xf32> to vector<16x128xf32>
    %185 = vector.shape_cast %184 : vector<16x128xf32> to vector<1x16x128xf32>
    %186 = vector.broadcast %185 : vector<1x16x128xf32> to vector<8x16x128xf32>
    %187 = arith.addf %182, %186 : vector<8x16x128xf32>
    %188 = vector.shape_cast %187 : vector<8x16x128xf32> to vector<128x128xf32>
    %cst_57 = arith.constant dense<0xFF800000> : vector<128xf32>
    %189 = vector.multi_reduction <maximumf>, %188, %cst_57 [1] : vector<128x128xf32> to vector<128xf32>
    %190 = vector.shape_cast %189 : vector<128xf32> to vector<128x1xf32>
    %191 = vector.broadcast %190 : vector<128x1xf32> to vector<128x128xf32>
    %192 = arith.subf %188, %191 : vector<128x128xf32>
    %193 = math.exp %192 : vector<128x128xf32>
    %cst_58 = arith.constant dense<0.000000e+00> : vector<128xf32>
    %194 = vector.multi_reduction <add>, %193, %cst_58 [1] : vector<128x128xf32> to vector<128xf32>
    %195 = vector.shape_cast %194 : vector<128xf32> to vector<128x1xf32>
    %196 = tpu.reciprocal %195 {approx = true} : vector<128x1xf32> -> vector<128x1xf32>
    %197 = vector.broadcast %196 : vector<128x1xf32> to vector<128x128xf32>
    %198 = arith.mulf %193, %197 : vector<128x128xf32>
    %199 = vector.extract_strided_slice %15 {offsets = [96, 0], sizes = [32, 128], strides = [1, 1]} : vector<128x128xf32> to vector<32x128xf32>
    %cst_59 = arith.constant dense<0.000000e+00> : vector<32x128xf32>
    %200 = tpu.matmul %199, %198, %cst_59 {dimension_numbers = #tpu.dot_dimension_numbers<[1], [1], [0], [0], [0, 0, 1, 0], [], []>} : vector<32x128xf32>, vector<128x128xf32>, vector<32x128xf32> -> vector<32x128xf32>
    %201 = arith.addf %158, %200 : vector<32x128xf32>
    %202 = vector.extract_strided_slice %2 {offsets = [0, 2], sizes = [32, 1], strides = [1, 1]} : vector<32x8xf32> to vector<32x1xf32>
    %203 = vector.broadcast %202 : vector<32x1xf32> to vector<32x128xf32>
    %204 = arith.addf %201, %203 : vector<32x128xf32>
    %cst_60 = arith.constant dense<0.000000e+00> : vector<128xf32>
    %205 = vector.multi_reduction <add>, %204, %cst_60 [0] : vector<32x128xf32> to vector<128xf32>
    %206 = vector.shape_cast %205 : vector<128xf32> to vector<1x128xf32>
    %cst_61 = arith.constant 3.200000e+01 : f32
    %207 = vector.broadcast %cst_61 : f32 to vector<1x128xf32>
    %208 = arith.divf %206, %207 : vector<1x128xf32>
    %209 = vector.broadcast %208 : vector<1x128xf32> to vector<32x128xf32>
    %210 = arith.subf %204, %209 : vector<32x128xf32>
    %211 = arith.mulf %210, %210 : vector<32x128xf32>
    %cst_62 = arith.constant dense<0.000000e+00> : vector<128xf32>
    %212 = vector.multi_reduction <add>, %211, %cst_62 [0] : vector<32x128xf32> to vector<128xf32>
    %213 = vector.shape_cast %212 : vector<128xf32> to vector<1x128xf32>
    %cst_63 = arith.constant 3.200000e+01 : f32
    %214 = vector.broadcast %cst_63 : f32 to vector<1x128xf32>
    %215 = arith.divf %213, %214 : vector<1x128xf32>
    %216 = vector.broadcast %208 : vector<1x128xf32> to vector<32x128xf32>
    %217 = arith.subf %204, %216 : vector<32x128xf32>
    %cst_64 = arith.constant 9.99999974E-6 : f32
    %218 = vector.broadcast %cst_64 : f32 to vector<1x128xf32>
    %219 = arith.addf %215, %218 : vector<1x128xf32>
    %220 = math.rsqrt %219 : vector<1x128xf32>
    %221 = vector.broadcast %220 : vector<1x128xf32> to vector<32x128xf32>
    %222 = arith.mulf %217, %221 : vector<32x128xf32>
    %223 = vector.extract_strided_slice %2 {offsets = [0, 3], sizes = [32, 1], strides = [1, 1]} : vector<32x8xf32> to vector<32x1xf32>
    %224 = vector.broadcast %223 : vector<32x1xf32> to vector<32x128xf32>
    %225 = arith.mulf %222, %224 : vector<32x128xf32>
    %226 = vector.extract_strided_slice %2 {offsets = [0, 4], sizes = [32, 1], strides = [1, 1]} : vector<32x8xf32> to vector<32x1xf32>
    %227 = vector.broadcast %226 : vector<32x1xf32> to vector<32x128xf32>
    %228 = arith.addf %225, %227 : vector<32x128xf32>
    %c0_65 = arith.constant 0 : index
    %c0_66 = arith.constant 0 : index
    %229 = vector.load %arg1[%c0_65, %c0_66] : memref<32x128xf32, #tpu.memory_space<vmem>>, vector<32x128xf32>
    %230 = arith.addf %228, %229 : vector<32x128xf32>
    %c0_67 = arith.constant 0 : index
    %c0_68 = arith.constant 0 : index
    %231 = vector.load %arg8[%c0_67, %c0_68] : memref<32x128xf32, #tpu.memory_space<vmem>>, vector<32x128xf32>
    tpu.vector_store %arg8[%c0_67, %c0_68], %230 {strides = array<i32>} : memref<32x128xf32, #tpu.memory_space<vmem>>, vector<32x128xf32>,
    return
  }
  func.func @transform_0(%arg0: i32) -> (i32, i32) {
    %c0_i32 = arith.constant 0 : i32
    %c0_i32_0 = arith.constant 0 : i32
    %c0_i32_1 = arith.constant 0 : i32
    return %c0_i32, %c0_i32_0 : i32, i32
  }
  func.func @transform_1(%arg0: i32) -> (i32, i32) {
    %c0_i32 = arith.constant 0 : i32
    %c0_i32_0 = arith.constant 0 : i32
    %c0_i32_1 = arith.constant 0 : i32
    return %c0_i32, %c0_i32_0 : i32, i32
  }
  func.func @transform_2(%arg0: i32) -> (i32, i32) {
    %c0_i32 = arith.constant 0 : i32
    %c0_i32_0 = arith.constant 0 : i32
    %c0_i32_1 = arith.constant 0 : i32
    return %c0_i32, %c0_i32_0 : i32, i32
  }
  func.func @transform_3(%arg0: i32) -> (i32, i32) {
    %c0_i32 = arith.constant 0 : i32
    %c0_i32_0 = arith.constant 0 : i32
    %c0_i32_1 = arith.constant 0 : i32
    return %c0_i32, %c0_i32_0 : i32, i32
  }
  func.func @transform_4(%arg0: i32) -> (i32, i32, i32) {
    %c0_i32 = arith.constant 0 : i32
    %c0_i32_0 = arith.constant 0 : i32
    %c0_i32_1 = arith.constant 0 : i32
    %c0_i32_2 = arith.constant 0 : i32
    return %c0_i32, %c0_i32_0, %c0_i32_1 : i32, i32, i32
  }
  func.func @transform_5(%arg0: i32) -> (i32, i32) {
    %c0_i32 = arith.constant 0 : i32
    %c0_i32_0 = arith.constant 0 : i32
    %c0_i32_1 = arith.constant 0 : i32
    return %c0_i32, %c0_i32_0 : i32, i32
  }
  func.func @transform_6(%arg0: i32) -> i32 {
    %c0_i32 = arith.constant 0 : i32
    %c0_i32_0 = arith.constant 0 : i32
    return %c0_i32 : i32
  }
  func.func @transform_7(%arg0: i32) -> (i32, i32) {
    %c0_i32 = arith.constant 0 : i32
    %c0_i32_0 = arith.constant 0 : i32
    %c0_i32_1 = arith.constant 0 : i32
    return %c0_i32, %c0_i32_0 : i32, i32
  }
}

</mosaic_0001>

<bundles_post_ra>
// kernel: sub.8
= control target key start
LH: loop header
LB: loop body
LE: loop exit
PB: predicated region body
PF: predicated region fallthrough
CT: control target
= control target key end

     0   :  { %s30_s10 = smov 3  ;;  %s11_s11 = smov 3  ;;  %vm13_vm0 = vcmask 31744   ;;  %vm20_vm1 = vcmask 130144   ;;  %vm27_vm2 = vcmask 97344   ;;  %vm34_vm3 = vcmask 64544   ;;  %s70_s0 = inlined_call_operand.vmem [shape: s32[2,4,4], index: 0, kind: input, shape index: {}]   ;;  %s71_s1 = inlined_call_operand.vmem [shape: s32[2,16], index: 1, kind: output, shape index: {}]  }
   0x1   :  { %v44_v0 = vld [vmem:[%s70_s0 + $0x4] sm:$0xf]  ;;  %v9_v1 = vld [vmem:[%s70_s0] sm:$0xf]  ;;  %s16_s0 = smov 3  ;;  %s23_s12 = smov 3 }
   0x2   :  { %8 = vst [vmem:[#allocation1 + $0x8] sm:$0xf] %v44_v0  ;;  %10 = vst [vmem:[#allocation1] sm:$0xf] %v9_v1  ;;  %s48_s13 = smov 12   ;;  %s49_s14 = smov 4  }
   0x3   :  { %s50_s15 = smov 8  }
   0x9   :  { %v17_v2 = vld [vmem:[#allocation1 + $0x3] ss:$8 sm:%s16_s0]   ;;  %v31_v3 = vld [vmem:[#allocation1 + $0x1] ss:$8 sm:%s30_s10]   ;;  %v12_v4 = vld [vmem:[#allocation1] ss:$8 sm:%s11_s11]  }
   0xa   :  { %18 = vrot.lane.b32.xlu0 %v17_v2, %s48_s13  ;;  %32 = vrot.lane.b32.xlu1 %v31_v3, %s49_s14  ;;  %v24_v5 = vld [vmem:[#allocation1 + $0x2] ss:$8 sm:%s23_s12]   ;;  %14 = vst.msk [vmem:[#allocation0] sm:$0x3] %vm13_vm0, %v12_v4  }
   0xe   :  { %25 = vrot.lane.b32.xlu0 %v24_v5, %s50_s15 }
  0x7c   :  { %v19_v6 = vpop.permute.xlu0 %18   ;;  %v33_v7 = vpop.permute.xlu1 %32  }
  0x7d   :  { %21 = vst.msk [vmem:[#allocation0] sm:$0x3] %vm20_vm1, %v19_v6  }
  0x80   :  { %v26_v8 = vpop.permute.xlu0 %25  }
  0x81   :  { %28 = vst.msk [vmem:[#allocation0] sm:$0x3] %vm27_vm2, %v26_v8  }
  0x82   :  { %35 = vst.msk [vmem:[#allocation0] sm:$0x3] %vm34_vm3, %v33_v7  }
  0x89   :  { %v40_v9 = vld [vmem:[#allocation0] sm:$0x3] }
  0x8a   :  { %43 = vst [vmem:[%s71_s1] sm:$0x3] %v40_v9 }

// kernel: tile.7
= control target key start
LH: loop header
LB: loop body
LE: loop exit
PB: predicated region body
PF: predicated region fallthrough
CT: control target
= control target key end

     0   :  { %vm4_vm0 = vcmask 1047556   ;;  %s869_s14 = smov 112   ;;  %s870_s26 = smov 96   ;;  %vm6_vm1 = vcmask 130048   ;;  %vm79_vm2 = vcmask 1048448   ;;  %vm166_vm3 = vcmask 917248   ;;  %s1606_s0 = inlined_call_operand.vmem [shape: f32[4,16,8,16], index: 0, kind: input, shape index: {}]   ;;  %s1607_s1 = inlined_call_operand.vmem [shape: f32[4,16,128], index: 1, kind: output, shape index: {}]  }
   0x1   :  { %v706_v0 = vld [vmem:[%s1606_s0 + $0x47] ss:$8 sm:$0xf]   ;;  %v726_v24 = vld [vmem:[%s1606_s0 + $0x106] ss:$8 sm:$0xf]  }
   0x2   :  { %v707_v1 = vld [vmem:[%s1606_s0 + $0x47] ss:$8 sm:$0xf0]   ;;  %v727_v25 = vld [vmem:[%s1606_s0 + $0x106] ss:$8 sm:$0xf0]  }
   0x3   :  { %v97_v2 = vsel %vm4_vm0, %v707_v1, %v706_v0  ;;  %v701_v3 = vld [vmem:[%s1606_s0 + $0x7] ss:$8 sm:$0xf]   ;;  %v724_v26 = vld [vmem:[%s1606_s0 + $0x6] ss:$8 sm:$0xf]   ;;  %v173_v28 = vsel %vm4_vm0, %v727_v25, %v726_v24 }
   0x4   :  { %v702_v4 = vld [vmem:[%s1606_s0 + $0x7] ss:$8 sm:$0xf0]   ;;  %98 = vrot.lane.b32.xlu1 %v97_v2, %s869_s14  ;;  %v725_v27 = vld [vmem:[%s1606_s0 + $0x6] ss:$8 sm:$0xf0]  }
   0x5   :  { %v76_v5 = vsel %vm4_vm0, %v702_v4, %v701_v3  ;;  %v709_v6 = vld [vmem:[%s1606_s0 + $0x147] ss:$8 sm:$0xf]   ;;  %v163_v29 = vsel %vm4_vm0, %v725_v27, %v724_v26  ;;  %v732_v30 = vld [vmem:[%s1606_s0 + $0x146] ss:$8 sm:$0xf]  }
   0x6   :  { %v710_v7 = vld [vmem:[%s1606_s0 + $0x147] ss:$8 sm:$0xf0]   ;;  %77 = vrot.lane.b32.xlu0 %v76_v5, %s869_s14  ;;  %v733_v31 = vld [vmem:[%s1606_s0 + $0x146] ss:$8 sm:$0xf0]  }
   0x7   :  { %v108_v8 = vsel %vm4_vm0, %v710_v7, %v709_v6  ;;  %v703_v9 = vld [vmem:[%s1606_s0 + $0x107] ss:$8 sm:$0xf]   ;;  %v729_v32 = vld [vmem:[%s1606_s0 + $0x46] ss:$8 sm:$0xf]   ;;  %v195_v34 = vsel %vm4_vm0, %v733_v31, %v732_v30 }
   0x8   :  { %v704_v10 = vld [vmem:[%s1606_s0 + $0x107] ss:$8 sm:$0xf0]   ;;  %109 = vrot.lane.b32.xlu1 %v108_v8, %s869_s14  ;;  %v730_v33 = vld [vmem:[%s1606_s0 + $0x46] ss:$8 sm:$0xf0]  }
   0x9   :  { %v86_v11 = vsel %vm4_vm0, %v704_v10, %v703_v9  ;;  %v715_v12 = vld [vmem:[%s1606_s0 + $0x187] ss:$8 sm:$0xf]   ;;  %v184_v35 = vsel %vm4_vm0, %v730_v33, %v729_v32  ;;  %v738_v36 = vld [vmem:[%s1606_s0 + $0x186] ss:$8 sm:$0xf]  }
   0xa   :  { %v716_v13 = vld [vmem:[%s1606_s0 + $0x187] ss:$8 sm:$0xf0]   ;;  %87 = vrot.lane.b32.xlu0 %v86_v11, %s869_s14  ;;  %v739_v37 = vld [vmem:[%s1606_s0 + $0x186] ss:$8 sm:$0xf0]  }
   0xb   :  { %v712_v14 = vld [vmem:[%s1606_s0 + $0x87] ss:$8 sm:$0xf]   ;;  %v130_v16 = vsel %vm4_vm0, %v716_v13, %v715_v12  ;;  %v735_v38 = vld [vmem:[%s1606_s0 + $0x86] ss:$8 sm:$0xf]   ;;  %v217_v40 = vsel %vm4_vm0, %v739_v37, %v738_v36 }
   0xc   :  { %v713_v15 = vld [vmem:[%s1606_s0 + $0x87] ss:$8 sm:$0xf0]   ;;  %131 = vrot.lane.b32.xlu1 %v130_v16, %s869_s14  ;;  %v736_v39 = vld [vmem:[%s1606_s0 + $0x86] ss:$8 sm:$0xf0]  }
   0xd   :  { %v119_v17 = vsel %vm4_vm0, %v713_v15, %v712_v14  ;;  %v721_v18 = vld [vmem:[%s1606_s0 + $0x1c7] ss:$8 sm:$0xf]   ;;  %v206_v41 = vsel %vm4_vm0, %v736_v39, %v735_v38  ;;  %v744_v42 = vld [vmem:[%s1606_s0 + $0x1c6] ss:$8 sm:$0xf]  }
   0xe   :  { %v722_v19 = vld [vmem:[%s1606_s0 + $0x1c7] ss:$8 sm:$0xf0]   ;;  %120 = vrot.lane.b32.xlu0 %v119_v17, %s869_s14  ;;  %v745_v43 = vld [vmem:[%s1606_s0 + $0x1c6] ss:$8 sm:$0xf0]  }
   0xf   :  { %v718_v20 = vld [vmem:[%s1606_s0 + $0xc7] ss:$8 sm:$0xf]   ;;  %v152_v22 = vsel %vm4_vm0, %v722_v19, %v721_v18  ;;  %v741_v44 = vld [vmem:[%s1606_s0 + $0xc6] ss:$8 sm:$0xf]   ;;  %v239_v46 = vsel %vm4_vm0, %v745_v43, %v744_v42 }
  0x10   :  { %v719_v21 = vld [vmem:[%s1606_s0 + $0xc7] ss:$8 sm:$0xf0]   ;;  %153 = vrot.lane.b32.xlu1 %v152_v22, %s869_s14  ;;  %v742_v45 = vld [vmem:[%s1606_s0 + $0xc6] ss:$8 sm:$0xf0]  }
  0x11   :  { %v141_v23 = vsel %vm4_vm0, %v719_v21, %v718_v20  ;;  %v228_v47 = vsel %vm4_vm0, %v742_v45, %v741_v44  ;;  %v749_v48 = vld [vmem:[%s1606_s0 + $0x105] ss:$8 sm:$0xf]   ;;  %s871_s30 = smov 80   ;;  %s872_s5 = smov 64   ;;  %vm253_vm4 = vcmask 786048  }
  0x12   :  { %142 = vrot.lane.b32.xlu0 %v141_v23, %s869_s14  ;;  %v750_v49 = vld [vmem:[%s1606_s0 + $0x105] ss:$8 sm:$0xf0]   ;;  %v772_v8 = vld [vmem:[%s1606_s0 + $0x104] ss:$8 sm:$0xf]  }
  0x13   :  { %v747_v50 = vld [vmem:[%s1606_s0 + $0x5] ss:$8 sm:$0xf]   ;;  %v260_v52 = vsel %vm4_vm0, %v750_v49, %v749_v48  ;;  %v773_v9 = vld [vmem:[%s1606_s0 + $0x104] ss:$8 sm:$0xf0]  }
  0x14   :  { %174 = vrot.lane.b32.xlu1 %v173_v28, %s870_s26  ;;  %v748_v51 = vld [vmem:[%s1606_s0 + $0x5] ss:$8 sm:$0xf0]   ;;  %v770_v10 = vld [vmem:[%s1606_s0 + $0x4] ss:$8 sm:$0xf]   ;;  %v347_v12 = vsel %vm4_vm0, %v773_v9, %v772_v8 }
  0x15   :  { %v250_v53 = vsel %vm4_vm0, %v748_v51, %v747_v50  ;;  %v755_v54 = vld [vmem:[%s1606_s0 + $0x145] ss:$8 sm:$0xf]   ;;  %v771_v11 = vld [vmem:[%s1606_s0 + $0x4] ss:$8 sm:$0xf0]  }
  0x16   :  { %164 = vrot.lane.b32.xlu0 %v163_v29, %s870_s26  ;;  %v756_v55 = vld [vmem:[%s1606_s0 + $0x145] ss:$8 sm:$0xf0]   ;;  %v337_v13 = vsel %vm4_vm0, %v771_v11, %v770_v10  ;;  %v778_v14 = vld [vmem:[%s1606_s0 + $0x144] ss:$8 sm:$0xf]  }
  0x17   :  { %v752_v56 = vld [vmem:[%s1606_s0 + $0x45] ss:$8 sm:$0xf]   ;;  %v282_v58 = vsel %vm4_vm0, %v756_v55, %v755_v54  ;;  %v779_v15 = vld [vmem:[%s1606_s0 + $0x144] ss:$8 sm:$0xf0]  }
  0x18   :  { %196 = vrot.lane.b32.xlu1 %v195_v34, %s870_s26  ;;  %v753_v57 = vld [vmem:[%s1606_s0 + $0x45] ss:$8 sm:$0xf0]   ;;  %v775_v16 = vld [vmem:[%s1606_s0 + $0x44] ss:$8 sm:$0xf]   ;;  %v369_v18 = vsel %vm4_vm0, %v779_v15, %v778_v14 }
  0x19   :  { %v271_v59 = vsel %vm4_vm0, %v753_v57, %v752_v56  ;;  %v761_v60 = vld [vmem:[%s1606_s0 + $0x185] ss:$8 sm:$0xf]   ;;  %v776_v17 = vld [vmem:[%s1606_s0 + $0x44] ss:$8 sm:$0xf0]  }
  0x1a   :  { %185 = vrot.lane.b32.xlu0 %v184_v35, %s870_s26  ;;  %v762_v61 = vld [vmem:[%s1606_s0 + $0x185] ss:$8 sm:$0xf0]   ;;  %v358_v19 = vsel %vm4_vm0, %v776_v17, %v775_v16  ;;  %v784_v20 = vld [vmem:[%s1606_s0 + $0x184] ss:$8 sm:$0xf]  }
  0x1b   :  { %v758_v62 = vld [vmem:[%s1606_s0 + $0x85] ss:$8 sm:$0xf]   ;;  %v304_v0 = vsel %vm4_vm0, %v762_v61, %v761_v60  ;;  %v785_v21 = vld [vmem:[%s1606_s0 + $0x184] ss:$8 sm:$0xf0]  }
  0x1c   :  { %218 = vrot.lane.b32.xlu1 %v217_v40, %s870_s26  ;;  %v759_v63 = vld [vmem:[%s1606_s0 + $0x85] ss:$8 sm:$0xf0]   ;;  %v781_v22 = vld [vmem:[%s1606_s0 + $0x84] ss:$8 sm:$0xf]   ;;  %v391_v24 = vsel %vm4_vm0, %v785_v21, %v784_v20 }
  0x1d   :  { %v293_v1 = vsel %vm4_vm0, %v759_v63, %v758_v62  ;;  %v767_v2 = vld [vmem:[%s1606_s0 + $0x1c5] ss:$8 sm:$0xf]   ;;  %v782_v23 = vld [vmem:[%s1606_s0 + $0x84] ss:$8 sm:$0xf0]  }
  0x1e   :  { %207 = vrot.lane.b32.xlu0 %v206_v41, %s870_s26  ;;  %v768_v3 = vld [vmem:[%s1606_s0 + $0x1c5] ss:$8 sm:$0xf0]   ;;  %v790_v25 = vld [vmem:[%s1606_s0 + $0x1c4] ss:$8 sm:$0xf]   ;;  %v380_v27 = vsel %vm4_vm0, %v782_v23, %v781_v22 }
  0x1f   :  { %v764_v4 = vld [vmem:[%s1606_s0 + $0xc5] ss:$8 sm:$0xf]   ;;  %v326_v6 = vsel %vm4_vm0, %v768_v3, %v767_v2  ;;  %v791_v26 = vld [vmem:[%s1606_s0 + $0x1c4] ss:$8 sm:$0xf0]  }
  0x20   :  { %240 = vrot.lane.b32.xlu1 %v239_v46, %s870_s26  ;;  %v765_v5 = vld [vmem:[%s1606_s0 + $0xc5] ss:$8 sm:$0xf0]   ;;  %v787_v28 = vld [vmem:[%s1606_s0 + $0xc4] ss:$8 sm:$0xf]   ;;  %v413_v35 = vsel %vm4_vm0, %v791_v26, %v790_v25 }
  0x21   :  { %v315_v7 = vsel %vm4_vm0, %v765_v5, %v764_v4  ;;  %v788_v29 = vld [vmem:[%s1606_s0 + $0xc4] ss:$8 sm:$0xf0]   ;;  %v680_v30 = vld [vmem:[%s1606_s0 + $0x40] ss:$8 sm:$0xf]  }
  0x22   :  { %229 = vrot.lane.b32.xlu0 %v228_v47, %s870_s26  ;;  %v795_v31 = vld [vmem:[%s1606_s0 + $0x103] ss:$8 sm:$0xf]   ;;  %v681_v33 = vld [vmem:[%s1606_s0 + $0x40] ss:$8 sm:$0xf0]   ;;  %v402_v41 = vsel %vm4_vm0, %v788_v29, %v787_v28 }
  0x23   :  { %v796_v32 = vld [vmem:[%s1606_s0 + $0x103] ss:$8 sm:$0xf0]   ;;  %v2_v34 = vld [vmem:[%s1606_s0] ss:$8 sm:$0xf]   ;;  %v13_v38 = vsel %vm4_vm0, %v681_v33, %v680_v30 }
  0x24   :  { %261 = vrot.lane.b32.xlu1 %v260_v52, %s871_s30  ;;  %v793_v36 = vld [vmem:[%s1606_s0 + $0x3] ss:$8 sm:$0xf]   ;;  %v3_v39 = vld [vmem:[%s1606_s0] ss:$8 sm:$0xf0]  }
  0x25   :  { %v794_v37 = vld [vmem:[%s1606_s0 + $0x3] ss:$8 sm:$0xf0]   ;;  %v692_v40 = vld [vmem:[%s1606_s0 + $0x140] ss:$8 sm:$0xf]   ;;  %v5_v42 = vsel %vm4_vm0, %v3_v39, %v2_v34 }
  0x26   :  { %251 = vrot.lane.b32.xlu0 %v250_v53, %s871_s30  ;;  %682 = vst.msk [vmem:[%s1607_s1 + $0x8] sm:$0xff] %vm6_vm1, %v13_v38   ;;  %v693_v43 = vld [vmem:[%s1606_s0 + $0x140] ss:$8 sm:$0xf0]   ;;  %7 = vst.msk [vmem:[%s1607_s1] sm:$0xff] %vm6_vm1, %v5_v42   ;;  %v434_v53 = vsel %vm4_vm0, %v796_v32, %v795_v31  ;;  %s873_s25 = smov 48  }
  0x27   :  { %v689_v44 = vld [vmem:[%s1606_s0 + $0x100] ss:$8 sm:$0xf]   ;;  %v49_v45 = vsel %vm4_vm0, %v693_v43, %v692_v40  ;;  %v801_v48 = vld [vmem:[%s1606_s0 + $0x143] ss:$8 sm:$0xf]  }
  0x28   :  { %283 = vrot.lane.b32.xlu1 %v282_v58, %s871_s30  ;;  %v690_v46 = vld [vmem:[%s1606_s0 + $0x100] ss:$8 sm:$0xf0]   ;;  %v802_v49 = vld [vmem:[%s1606_s0 + $0x143] ss:$8 sm:$0xf0]   ;;  %v424_v58 = vsel %vm4_vm0, %v794_v37, %v793_v36 }
  0x29   :  { %v695_v47 = vld [vmem:[%s1606_s0 + $0x180] ss:$8 sm:$0xf]   ;;  %694 = vst.msk [vmem:[%s1607_s1 + $0x28] sm:$0xff] %vm6_vm1, %v49_v45   ;;  %v40_v50 = vsel %vm4_vm0, %v690_v46, %v689_v44  ;;  %v456_v2 = vsel %vm4_vm0, %v802_v49, %v801_v48  ;;  %s874_s4 = smov 32   ;;  %s875_s8 = smov 16  }
  0x2a   :  { %272 = vrot.lane.b32.xlu0 %v271_v59, %s871_s30  ;;  %v696_v51 = vld [vmem:[%s1606_s0 + $0x180] ss:$8 sm:$0xf0]   ;;  %v798_v54 = vld [vmem:[%s1606_s0 + $0x43] ss:$8 sm:$0xf]  }
  0x2b   :  { %v683_v52 = vld [vmem:[%s1606_s0 + $0x80] ss:$8 sm:$0xf]   ;;  %691 = vst.msk [vmem:[%s1607_s1 + $0x20] sm:$0xff] %vm6_vm1, %v40_v50   ;;  %v58_v55 = vsel %vm4_vm0, %v696_v51, %v695_v47  ;;  %vm340_vm5 = vcmask 654848   ;;  %vm427_vm6 = vcmask 523648  }
  0x2c   :  { %305 = vrot.lane.b32.xlu1 %v304_v0, %s871_s30  ;;  %v684_v56 = vld [vmem:[%s1606_s0 + $0x80] ss:$8 sm:$0xf0]   ;;  %697 = vst.msk [vmem:[%s1607_s1 + $0x30] sm:$0xff] %vm6_vm1, %v58_v55   ;;  %vm514_vm7 = vcmask 392448   ;;  %vm601_vm8 = vcmask 261248  }
  0x2d   :  { %v698_v57 = vld [vmem:[%s1606_s0 + $0x1c0] ss:$8 sm:$0xf]   ;;  %v22_v59 = vsel %vm4_vm0, %v684_v56, %v683_v52  ;;  %v799_v62 = vld [vmem:[%s1606_s0 + $0x43] ss:$8 sm:$0xf0]  }
  0x2e   :  { %294 = vrot.lane.b32.xlu0 %v293_v1, %s871_s30  ;;  %v699_v60 = vld [vmem:[%s1606_s0 + $0x1c0] ss:$8 sm:$0xf0]   ;;  %685 = vst.msk [vmem:[%s1607_s1 + $0x10] sm:$0xff] %vm6_vm1, %v22_v59   ;;  %v445_v3 = vsel %vm4_vm0, %v799_v62, %v798_v54 }
  0x2f   :  { %v686_v61 = vld [vmem:[%s1606_s0 + $0xc0] ss:$8 sm:$0xf]   ;;  %v67_v63 = vsel %vm4_vm0, %v699_v60, %v698_v57  ;;  %v807_v4 = vld [vmem:[%s1606_s0 + $0x183] ss:$8 sm:$0xf]  }
  0x30   :  { %327 = vrot.lane.b32.xlu1 %v326_v6, %s871_s30  ;;  %v687_v0 = vld [vmem:[%s1606_s0 + $0xc0] ss:$8 sm:$0xf0]   ;;  %700 = vst.msk [vmem:[%s1607_s1 + $0x38] sm:$0xff] %vm6_vm1, %v67_v63  }
  0x31   :  { %v31_v1 = vsel %vm4_vm0, %v687_v0, %v686_v61  ;;  %v808_v5 = vld [vmem:[%s1606_s0 + $0x183] ss:$8 sm:$0xf0]   ;;  %v818_v16 = vld [vmem:[%s1606_s0 + $0x102] ss:$8 sm:$0xf]  }
  0x32   :  { %316 = vrot.lane.b32.xlu0 %v315_v7, %s871_s30  ;;  %688 = vst.msk [vmem:[%s1607_s1 + $0x18] sm:$0xff] %vm6_vm1, %v31_v1   ;;  %v804_v6 = vld [vmem:[%s1606_s0 + $0x83] ss:$8 sm:$0xf]   ;;  %v478_v8 = vsel %vm4_vm0, %v808_v5, %v807_v4 }
  0x33   :  { %v805_v7 = vld [vmem:[%s1606_s0 + $0x83] ss:$8 sm:$0xf0]   ;;  %v819_v17 = vld [vmem:[%s1606_s0 + $0x102] ss:$8 sm:$0xf0]  }
  0x34   :  { %348 = vrot.lane.b32.xlu1 %v347_v12, %s872_s5  ;;  %v467_v9 = vsel %vm4_vm0, %v805_v7, %v804_v6  ;;  %v813_v10 = vld [vmem:[%s1606_s0 + $0x1c3] ss:$8 sm:$0xf]   ;;  %v521_v20 = vsel %vm4_vm0, %v819_v17, %v818_v16  ;;  %v824_v22 = vld [vmem:[%s1606_s0 + $0x142] ss:$8 sm:$0xf]  }
  0x35   :  { %v814_v11 = vld [vmem:[%s1606_s0 + $0x1c3] ss:$8 sm:$0xf0]   ;;  %v825_v23 = vld [vmem:[%s1606_s0 + $0x142] ss:$8 sm:$0xf0]  }
  0x36   :  { %338 = vrot.lane.b32.xlu0 %v337_v13, %s872_s5  ;;  %v810_v12 = vld [vmem:[%s1606_s0 + $0xc3] ss:$8 sm:$0xf]   ;;  %v500_v14 = vsel %vm4_vm0, %v814_v11, %v813_v10  ;;  %v822_v25 = vld [vmem:[%s1606_s0 + $0x42] ss:$8 sm:$0xf0]   ;;  %v543_v26 = vsel %vm4_vm0, %v825_v23, %v824_v22 }
  0x37   :  { %v811_v13 = vld [vmem:[%s1606_s0 + $0xc3] ss:$8 sm:$0xf0]   ;;  %v830_v28 = vld [vmem:[%s1606_s0 + $0x182] ss:$8 sm:$0xf]  }
  0x38   :  { %370 = vrot.lane.b32.xlu1 %v369_v18, %s872_s5  ;;  %v489_v15 = vsel %vm4_vm0, %v811_v13, %v810_v12  ;;  %v816_v18 = vld [vmem:[%s1606_s0 + $0x2] ss:$8 sm:$0xf]   ;;  %v841_v40 = vld [vmem:[%s1606_s0 + $0x101] ss:$8 sm:$0xf]  }
  0x39   :  { %v831_v29 = vld [vmem:[%s1606_s0 + $0x182] ss:$8 sm:$0xf0]   ;;  %v839_v42 = vld [vmem:[%s1606_s0 + $0x1] ss:$8 sm:$0xf]  }
  0x3a   :  { %359 = vrot.lane.b32.xlu0 %v358_v19, %s872_s5  ;;  %v817_v19 = vld [vmem:[%s1606_s0 + $0x2] ss:$8 sm:$0xf0]   ;;  %v565_v32 = vsel %vm4_vm0, %v831_v29, %v830_v28  ;;  %v840_v43 = vld [vmem:[%s1606_s0 + $0x1] ss:$8 sm:$0xf0]  }
  0x3b   :  { %v511_v21 = vsel %vm4_vm0, %v817_v19, %v816_v18  ;;  %v827_v30 = vld [vmem:[%s1606_s0 + $0x82] ss:$8 sm:$0xf]   ;;  %v598_v45 = vsel %vm4_vm0, %v840_v43, %v839_v42  ;;  %v847_v46 = vld [vmem:[%s1606_s0 + $0x141] ss:$8 sm:$0xf]  }
  0x3c   :  { %392 = vrot.lane.b32.xlu1 %v391_v24, %s872_s5  ;;  %v821_v24 = vld [vmem:[%s1606_s0 + $0x42] ss:$8 sm:$0xf]   ;;  %v848_v47 = vld [vmem:[%s1606_s0 + $0x141] ss:$8 sm:$0xf0]  }
  0x3d   :  { %v828_v31 = vld [vmem:[%s1606_s0 + $0x82] ss:$8 sm:$0xf0]   ;;  %v844_v48 = vld [vmem:[%s1606_s0 + $0x41] ss:$8 sm:$0xf]   ;;  %v630_v50 = vsel %vm4_vm0, %v848_v47, %v847_v46 }
  0x3e   :  { %381 = vrot.lane.b32.xlu0 %v380_v27, %s872_s5  ;;  %v532_v27 = vsel %vm4_vm0, %v822_v25, %v821_v24  ;;  %v554_v33 = vsel %vm4_vm0, %v828_v31, %v827_v30  ;;  %v836_v34 = vld [vmem:[%s1606_s0 + $0x1c2] ss:$8 sm:$0xf]   ;;  %v845_v49 = vld [vmem:[%s1606_s0 + $0x41] ss:$8 sm:$0xf0]  }
  0x3f   :  { %v833_v36 = vld [vmem:[%s1606_s0 + $0xc2] ss:$8 sm:$0xf]   ;;  %v619_v51 = vsel %vm4_vm0, %v845_v49, %v844_v48  ;;  %v853_v52 = vld [vmem:[%s1606_s0 + $0x181] ss:$8 sm:$0xf]  }
  0x40   :  { %414 = vrot.lane.b32.xlu1 %v413_v35, %s872_s5  ;;  %v837_v35 = vld [vmem:[%s1606_s0 + $0x1c2] ss:$8 sm:$0xf0]   ;;  %v850_v54 = vld [vmem:[%s1606_s0 + $0x81] ss:$8 sm:$0xf]  }
  0x41   :  { %v834_v37 = vld [vmem:[%s1606_s0 + $0xc2] ss:$8 sm:$0xf0]   ;;  %v587_v38 = vsel %vm4_vm0, %v837_v35, %v836_v34  ;;  %v851_v55 = vld [vmem:[%s1606_s0 + $0x81] ss:$8 sm:$0xf0]  }
  0x42   :  { %403 = vrot.lane.b32.xlu0 %v402_v41, %s872_s5  ;;  %v576_v39 = vsel %vm4_vm0, %v834_v37, %v833_v36  ;;  %v842_v41 = vld [vmem:[%s1606_s0 + $0x101] ss:$8 sm:$0xf0]   ;;  %v641_v57 = vsel %vm4_vm0, %v851_v55, %v850_v54 }
  0x43   :  { %v608_v44 = vsel %vm4_vm0, %v842_v41, %v841_v40  ;;  %v860_v59 = vld [vmem:[%s1606_s0 + $0x1c1] ss:$8 sm:$0xf0]  }
  0x44   :  { %435 = vrot.lane.b32.xlu1 %v434_v53, %s873_s25  ;;  %v854_v53 = vld [vmem:[%s1606_s0 + $0x181] ss:$8 sm:$0xf0]  }
  0x45   :  { %v652_v56 = vsel %vm4_vm0, %v854_v53, %v853_v52  ;;  %v856_v60 = vld [vmem:[%s1606_s0 + $0xc1] ss:$8 sm:$0xf]  }
  0x46   :  { %425 = vrot.lane.b32.xlu0 %v424_v58, %s873_s25  ;;  %v859_v58 = vld [vmem:[%s1606_s0 + $0x1c1] ss:$8 sm:$0xf]  }
  0x47   :  { %v857_v61 = vld [vmem:[%s1606_s0 + $0xc1] ss:$8 sm:$0xf0]   ;;  %v674_v62 = vsel %vm4_vm0, %v860_v59, %v859_v58 }
  0x48   :  { %457 = vrot.lane.b32.xlu1 %v456_v2, %s873_s25  ;;  %v663_v63 = vsel %vm4_vm0, %v857_v61, %v856_v60 }
  0x4a   :  { %446 = vrot.lane.b32.xlu0 %v445_v3, %s873_s25 }
  0x4c   :  { %479 = vrot.lane.b32.xlu1 %v478_v8, %s873_s25 }
  0x4e   :  { %468 = vrot.lane.b32.xlu0 %v467_v9, %s873_s25 }
  0x50   :  { %501 = vrot.lane.b32.xlu1 %v500_v14, %s873_s25 }
  0x52   :  { %490 = vrot.lane.b32.xlu0 %v489_v15, %s873_s25 }
  0x54   :  { %522 = vrot.lane.b32.xlu1 %v521_v20, %s874_s4 }
  0x56   :  { %512 = vrot.lane.b32.xlu0 %v511_v21, %s874_s4 }
  0x58   :  { %544 = vrot.lane.b32.xlu1 %v543_v26, %s874_s4 }
  0x5a   :  { %533 = vrot.lane.b32.xlu0 %v532_v27, %s874_s4 }
  0x5c   :  { %566 = vrot.lane.b32.xlu1 %v565_v32, %s874_s4 }
  0x5e   :  { %555 = vrot.lane.b32.xlu0 %v554_v33, %s874_s4 }
  0x60   :  { %588 = vrot.lane.b32.xlu1 %v587_v38, %s874_s4 }
  0x62   :  { %577 = vrot.lane.b32.xlu0 %v576_v39, %s874_s4 }
  0x64   :  { %609 = vrot.lane.b32.xlu1 %v608_v44, %s875_s8 }
  0x66   :  { %599 = vrot.lane.b32.xlu0 %v598_v45, %s875_s8 }
  0x68   :  { %631 = vrot.lane.b32.xlu1 %v630_v50, %s875_s8 }
  0x6a   :  { %620 = vrot.lane.b32.xlu0 %v619_v51, %s875_s8 }
  0x6c   :  { %653 = vrot.lane.b32.xlu1 %v652_v56, %s875_s8 }
  0x6e   :  { %642 = vrot.lane.b32.xlu0 %v641_v57, %s875_s8 }
  0x70   :  { %675 = vrot.lane.b32.xlu1 %v674_v62, %s875_s8 }
  0x72   :  { %664 = vrot.lane.b32.xlu0 %v663_v63, %s875_s8 }
  0x76   :  { %v99_v0 = vpop.permute.xlu1 %98  }
  0x77   :  { %708 = vst.msk [vmem:[%s1607_s1 + $0x8] sm:$0xff] %vm79_vm2, %v99_v0  }
  0x78   :  { %v78_v1 = vpop.permute.xlu0 %77  }
  0x79   :  { %80 = vst.msk [vmem:[%s1607_s1] sm:$0xff] %vm79_vm2, %v78_v1  }
  0x7a   :  { %v110_v2 = vpop.permute.xlu1 %109  }
  0x7b   :  { %711 = vst.msk [vmem:[%s1607_s1 + $0x28] sm:$0xff] %vm79_vm2, %v110_v2  }
  0x7c   :  { %v88_v3 = vpop.permute.xlu0 %87  }
  0x7d   :  { %705 = vst.msk [vmem:[%s1607_s1 + $0x20] sm:$0xff] %vm79_vm2, %v88_v3  }
  0x7e   :  { %v132_v4 = vpop.permute.xlu1 %131  }
  0x7f   :  { %717 = vst.msk [vmem:[%s1607_s1 + $0x30] sm:$0xff] %vm79_vm2, %v132_v4  }
  0x80   :  { %v121_v5 = vpop.permute.xlu0 %120  }
  0x81   :  { %714 = vst.msk [vmem:[%s1607_s1 + $0x10] sm:$0xff] %vm79_vm2, %v121_v5  }
  0x82   :  { %v154_v6 = vpop.permute.xlu1 %153  }
  0x83   :  { %723 = vst.msk [vmem:[%s1607_s1 + $0x38] sm:$0xff] %vm79_vm2, %v154_v6  }
  0x84   :  { %v143_v7 = vpop.permute.xlu0 %142  }
  0x85   :  { %720 = vst.msk [vmem:[%s1607_s1 + $0x18] sm:$0xff] %vm79_vm2, %v143_v7  }
  0x86   :  { %v175_v8 = vpop.permute.xlu1 %174  }
  0x87   :  { %728 = vst.msk [vmem:[%s1607_s1 + $0x20] sm:$0xff] %vm166_vm3, %v175_v8  }
  0x88   :  { %v165_v9 = vpop.permute.xlu0 %164  }
  0x89   :  { %167 = vst.msk [vmem:[%s1607_s1] sm:$0xff] %vm166_vm3, %v165_v9  }
  0x8a   :  { %v197_v10 = vpop.permute.xlu1 %196  }
  0x8b   :  { %734 = vst.msk [vmem:[%s1607_s1 + $0x28] sm:$0xff] %vm166_vm3, %v197_v10  }
  0x8c   :  { %v186_v11 = vpop.permute.xlu0 %185  }
  0x8d   :  { %731 = vst.msk [vmem:[%s1607_s1 + $0x8] sm:$0xff] %vm166_vm3, %v186_v11  }
  0x8e   :  { %v219_v12 = vpop.permute.xlu1 %218  }
  0x8f   :  { %740 = vst.msk [vmem:[%s1607_s1 + $0x30] sm:$0xff] %vm166_vm3, %v219_v12  }
  0x90   :  { %v208_v13 = vpop.permute.xlu0 %207  }
  0x91   :  { %737 = vst.msk [vmem:[%s1607_s1 + $0x10] sm:$0xff] %vm166_vm3, %v208_v13  }
  0x92   :  { %v241_v14 = vpop.permute.xlu1 %240  }
  0x93   :  { %746 = vst.msk [vmem:[%s1607_s1 + $0x38] sm:$0xff] %vm166_vm3, %v241_v14  }
  0x94   :  { %v230_v15 = vpop.permute.xlu0 %229  }
  0x95   :  { %743 = vst.msk [vmem:[%s1607_s1 + $0x18] sm:$0xff] %vm166_vm3, %v230_v15  }
  0x96   :  { %v262_v16 = vpop.permute.xlu1 %261  }
  0x97   :  { %751 = vst.msk [vmem:[%s1607_s1 + $0x20] sm:$0xff] %vm253_vm4, %v262_v16  }
  0x98   :  { %v252_v17 = vpop.permute.xlu0 %251  }
  0x99   :  { %254 = vst.msk [vmem:[%s1607_s1] sm:$0xff] %vm253_vm4, %v252_v17  }
  0x9a   :  { %v284_v18 = vpop.permute.xlu1 %283  }
  0x9b   :  { %757 = vst.msk [vmem:[%s1607_s1 + $0x28] sm:$0xff] %vm253_vm4, %v284_v18  }
  0x9c   :  { %v273_v19 = vpop.permute.xlu0 %272  }
  0x9d   :  { %754 = vst.msk [vmem:[%s1607_s1 + $0x8] sm:$0xff] %vm253_vm4, %v273_v19  }
  0x9e   :  { %v306_v20 = vpop.permute.xlu1 %305  }
  0x9f   :  { %763 = vst.msk [vmem:[%s1607_s1 + $0x30] sm:$0xff] %vm253_vm4, %v306_v20  }
  0xa0   :  { %v295_v21 = vpop.permute.xlu0 %294  }
  0xa1   :  { %760 = vst.msk [vmem:[%s1607_s1 + $0x10] sm:$0xff] %vm253_vm4, %v295_v21  }
  0xa2   :  { %v328_v22 = vpop.permute.xlu1 %327  }
  0xa3   :  { %769 = vst.msk [vmem:[%s1607_s1 + $0x38] sm:$0xff] %vm253_vm4, %v328_v22  }
  0xa4   :  { %v317_v23 = vpop.permute.xlu0 %316  }
  0xa5   :  { %766 = vst.msk [vmem:[%s1607_s1 + $0x18] sm:$0xff] %vm253_vm4, %v317_v23  }
  0xa6   :  { %v349_v24 = vpop.permute.xlu1 %348  }
  0xa7   :  { %774 = vst.msk [vmem:[%s1607_s1 + $0x20] sm:$0xff] %vm340_vm5, %v349_v24  }
  0xa8   :  { %v339_v25 = vpop.permute.xlu0 %338  }
  0xa9   :  { %341 = vst.msk [vmem:[%s1607_s1] sm:$0xff] %vm340_vm5, %v339_v25  }
  0xaa   :  { %v371_v26 = vpop.permute.xlu1 %370  }
  0xab   :  { %780 = vst.msk [vmem:[%s1607_s1 + $0x28] sm:$0xff] %vm340_vm5, %v371_v26  }
  0xac   :  { %v360_v27 = vpop.permute.xlu0 %359  }
  0xad   :  { %777 = vst.msk [vmem:[%s1607_s1 + $0x8] sm:$0xff] %vm340_vm5, %v360_v27  }
  0xae   :  { %v393_v28 = vpop.permute.xlu1 %392  }
  0xaf   :  { %786 = vst.msk [vmem:[%s1607_s1 + $0x30] sm:$0xff] %vm340_vm5, %v393_v28  }
  0xb0   :  { %v382_v29 = vpop.permute.xlu0 %381  }
  0xb1   :  { %783 = vst.msk [vmem:[%s1607_s1 + $0x10] sm:$0xff] %vm340_vm5, %v382_v29  }
  0xb2   :  { %v415_v30 = vpop.permute.xlu1 %414  }
  0xb3   :  { %792 = vst.msk [vmem:[%s1607_s1 + $0x38] sm:$0xff] %vm340_vm5, %v415_v30  }
  0xb4   :  { %v404_v31 = vpop.permute.xlu0 %403  }
  0xb5   :  { %789 = vst.msk [vmem:[%s1607_s1 + $0x18] sm:$0xff] %vm340_vm5, %v404_v31  }
  0xb6   :  { %v436_v32 = vpop.permute.xlu1 %435  }
  0xb7   :  { %797 = vst.msk [vmem:[%s1607_s1 + $0x20] sm:$0xff] %vm427_vm6, %v436_v32  }
  0xb8   :  { %v426_v33 = vpop.permute.xlu0 %425  }
  0xb9   :  { %428 = vst.msk [vmem:[%s1607_s1] sm:$0xff] %vm427_vm6, %v426_v33  }
  0xba   :  { %v458_v34 = vpop.permute.xlu1 %457  }
  0xbb   :  { %803 = vst.msk [vmem:[%s1607_s1 + $0x28] sm:$0xff] %vm427_vm6, %v458_v34  }
  0xbc   :  { %v447_v35 = vpop.permute.xlu0 %446  }
  0xbd   :  { %800 = vst.msk [vmem:[%s1607_s1 + $0x8] sm:$0xff] %vm427_vm6, %v447_v35  }
  0xbe   :  { %v480_v36 = vpop.permute.xlu1 %479  }
  0xbf   :  { %809 = vst.msk [vmem:[%s1607_s1 + $0x30] sm:$0xff] %vm427_vm6, %v480_v36  }
  0xc0   :  { %v469_v37 = vpop.permute.xlu0 %468  }
  0xc1   :  { %806 = vst.msk [vmem:[%s1607_s1 + $0x10] sm:$0xff] %vm427_vm6, %v469_v37  }
  0xc2   :  { %v502_v38 = vpop.permute.xlu1 %501  }
  0xc3   :  { %815 = vst.msk [vmem:[%s1607_s1 + $0x38] sm:$0xff] %vm427_vm6, %v502_v38  }
  0xc4   :  { %v491_v39 = vpop.permute.xlu0 %490  }
  0xc5   :  { %812 = vst.msk [vmem:[%s1607_s1 + $0x18] sm:$0xff] %vm427_vm6, %v491_v39  }
  0xc6   :  { %v523_v40 = vpop.permute.xlu1 %522  }
  0xc7   :  { %820 = vst.msk [vmem:[%s1607_s1 + $0x20] sm:$0xff] %vm514_vm7, %v523_v40  }
  0xc8   :  { %v513_v41 = vpop.permute.xlu0 %512  }
  0xc9   :  { %515 = vst.msk [vmem:[%s1607_s1] sm:$0xff] %vm514_vm7, %v513_v41  }
  0xca   :  { %v545_v42 = vpop.permute.xlu1 %544  }
  0xcb   :  { %826 = vst.msk [vmem:[%s1607_s1 + $0x28] sm:$0xff] %vm514_vm7, %v545_v42  }
  0xcc   :  { %v534_v43 = vpop.permute.xlu0 %533  }
  0xcd   :  { %823 = vst.msk [vmem:[%s1607_s1 + $0x8] sm:$0xff] %vm514_vm7, %v534_v43  }
  0xce   :  { %v567_v44 = vpop.permute.xlu1 %566  }
  0xcf   :  { %832 = vst.msk [vmem:[%s1607_s1 + $0x30] sm:$0xff] %vm514_vm7, %v567_v44  }
  0xd0   :  { %v556_v45 = vpop.permute.xlu0 %555  }
  0xd1   :  { %829 = vst.msk [vmem:[%s1607_s1 + $0x10] sm:$0xff] %vm514_vm7, %v556_v45  }
  0xd2   :  { %v589_v46 = vpop.permute.xlu1 %588  }
  0xd3   :  { %838 = vst.msk [vmem:[%s1607_s1 + $0x38] sm:$0xff] %vm514_vm7, %v589_v46  }
  0xd4   :  { %v578_v47 = vpop.permute.xlu0 %577  }
  0xd5   :  { %835 = vst.msk [vmem:[%s1607_s1 + $0x18] sm:$0xff] %vm514_vm7, %v578_v47  }
  0xd6   :  { %v610_v48 = vpop.permute.xlu1 %609  }
  0xd7   :  { %843 = vst.msk [vmem:[%s1607_s1 + $0x20] sm:$0xff] %vm601_vm8, %v610_v48  }
  0xd8   :  { %v600_v49 = vpop.permute.xlu0 %599  }
  0xd9   :  { %602 = vst.msk [vmem:[%s1607_s1] sm:$0xff] %vm601_vm8, %v600_v49  }
  0xda   :  { %v632_v50 = vpop.permute.xlu1 %631  }
  0xdb   :  { %849 = vst.msk [vmem:[%s1607_s1 + $0x28] sm:$0xff] %vm601_vm8, %v632_v50  }
  0xdc   :  { %v621_v51 = vpop.permute.xlu0 %620  }
  0xdd   :  { %846 = vst.msk [vmem:[%s1607_s1 + $0x8] sm:$0xff] %vm601_vm8, %v621_v51  }
  0xde   :  { %v654_v52 = vpop.permute.xlu1 %653  }
  0xdf   :  { %855 = vst.msk [vmem:[%s1607_s1 + $0x30] sm:$0xff] %vm601_vm8, %v654_v52  }
  0xe0   :  { %v643_v53 = vpop.permute.xlu0 %642  }
  0xe1   :  { %852 = vst.msk [vmem:[%s1607_s1 + $0x10] sm:$0xff] %vm601_vm8, %v643_v53  }
  0xe2   :  { %v676_v54 = vpop.permute.xlu1 %675  }
  0xe3   :  { %861 = vst.msk [vmem:[%s1607_s1 + $0x38] sm:$0xff] %vm601_vm8, %v676_v54  }
  0xe4   :  { %v665_v55 = vpop.permute.xlu0 %664  }
  0xe5   :  { %858 = vst.msk [vmem:[%s1607_s1 + $0x18] sm:$0xff] %vm601_vm8, %v665_v55  }

// kernel: window_cross_attention.1
= control target key start
LH: loop header
LB: loop body
LE: loop exit
PB: predicated region body
PF: predicated region fallthrough
CT: control target
= control target key end

     0   :  { %12 = vsyncpa [#allocation3], 0  ;;  %s5036_s0 = inlined_call_operand.vmem [shape: f32[32,128], index: 0, kind: input, shape index: {}]   ;;  %s5037_s1 = inlined_call_operand.vmem [shape: f32[32,128], index: 1, kind: input, shape index: {}]   ;;  %s5038_s2 = inlined_call_operand.vmem [shape: f32[192,32], index: 2, kind: input, shape index: {}]   ;;  %s5039_s3 = inlined_call_operand.vmem [shape: f32[32,8], index: 3, kind: input, shape index: {}]   ;;  %s5040_s4 = inlined_call_operand.vmem [shape: f32[4,16,128], index: 4, kind: input, shape index: {}]   ;;  %s5041_s5 = inlined_call_operand.vmem [shape: f32[128,1], index: 5, kind: input, shape index: {}]   ;;  %s5042_s6 = inlined_call_operand.vmem [shape: f32[4], index: 6, kind: input, shape index: {}]   ;;  %s5043_s7 = inlined_call_operand.vmem [shape: f32[32,128], index: 7, kind: output, shape index: {}]  }
   0x1   :  { %s31_s26 = sshll.u32 %s5042_s6, 4  ;;  %s32_s26 = int_to_ptr.vmem [resolvable:$true] %s31_s26 }
   0x2   :  { %s3684_s27 = scalar_lea.vmem %s32_s26, 16  ;;  %p3689_p1 = scmp.lt.s32.totalorder %s32_s26, %s32_s26 }
   0x3   :  { %p3685_p0 = scmp.ne.s32.totalorder %s32_s26, %s3684_s27  ;;  %p3690_p2 = scmp.lt.s32.totalorder %s3684_s27, %s3684_s27 }
   0x5   :  { %p3691_p3 = por %p3690_p2, %p3689_p1 }
   0x7   :  { %p3692_p4 = pnand %p3691_p3, %p3685_p0 }
   0x9   :  { %3695 = shalt.err (!%p3692_p4)
}
   0xa   :  { %s3698_s28 = smov [#allocation2]  }
   0xb   :  { %34 = dma.vmem_to_smem %s32_s26, 16, %s3698_s28, [#allocation3]  }
   0xc   :  { %3696 = dma.done.wait [#allocation3], 16  }
   0xd   :  { %3697 = vsyncadd [#allocation3], 4294967280 }
   0xe   :  { %38 = sfence }
   0xf   :  { %v74_v0 = vld [vmem:[%s5036_s0 + $0x18] sm:$0xff]  ;;  %v73_v1 = vld [vmem:[%s5036_s0 + $0x10] sm:$0xff]  ;;  %vm95_vm0 = vcmask 261120   ;;  %v59_v2 = vld [vmem:[%s5038_s2 + $0x80] sm:$0xff]  ;;  %v3699_v3 = vmov 0   ;;  %v5044_v15 = vmov 1  }
  0x10   :  { %3060 = vmatprep.subr.mxu0 %v74_v0  ;;  %3392 = vset.pattern.permute.xlu0 %v3699_v3  ;;  %v72_v4 = vld [vmem:[%s5036_s0 + $0x8] sm:$0xff]  ;;  %v42_v6 = vld [vmem:[%s5037_s1 + $0x18] sm:$0xff]  ;;  %v41_v7 = vld [vmem:[%s5037_s1 + $0x10] sm:$0xff]  ;;  %s2819_s24 = sld [smem:[#allocation2 + $0x1]]  ;;  %vm734_vm1 = vcmask 64512  }
  0x11   :  { %3061 = vmatpush3.msra.mxu0 %v74_v0  ;;  %3068 = vmatprep.mubr.msk.f32.mxu0 %vm95_vm0, %v59_v2  ;;  %v68_v5 = vld [vmem:[%s5039_s3 + $0x8] sm:$0xff]  ;;  %v71_v8 = vld [vmem:[%s5036_s0] sm:$0xff]  ;;  %v61_v16 = vld [vmem:[%s5038_s2 + $0x90] sm:$0xff]  ;;  %s688_s29 = sld [smem:[#allocation2]] }
  0x12   :  { %3062 = vmatprep.subr.mxu0 %v73_v1  ;;  %82 = vperm.xlu0 %3392, %v68_v5   ;;  %v67_v9 = vld [vmem:[%s5039_s3] sm:$0xff]  ;;  %v60_v10 = vld [vmem:[%s5038_s2 + $0x88] sm:$0xff]  ;;  %v65_v17 = vld [vmem:[%s5038_s2 + $0xb0] sm:$0xff]  ;;  %s2838_s16 = sld [smem:[#allocation2 + $0x2]] }
  0x13   :  { %3063 = vmatpush3.msra.mxu0 %v73_v1  ;;  %3074 = vmatprep.subr.mxu1 %v42_v6  ;;  %v40_v11 = vld [vmem:[%s5037_s1 + $0x8] sm:$0xff]  ;;  %v63_v12 = vld [vmem:[%s5038_s2 + $0xa0] sm:$0xff]  ;;  %v62_v18 = vld [vmem:[%s5038_s2 + $0x98] sm:$0xff]  ;;  %s2857_s17 = sld [smem:[#allocation2 + $0x3]] }
  0x14   :  { %3064 = vmatprep.subr.mxu0 %v72_v4  ;;  %3075 = vmatpush3.msra.mxu1 %v42_v6  ;;  %v39_v13 = vld [vmem:[%s5037_s1] sm:$0xff]  ;;  %v64_v14 = vld [vmem:[%s5038_s2 + $0xa8] sm:$0xff]  ;;  %v66_v19 = vld [vmem:[%s5038_s2 + $0xb8] sm:$0xff] }
  0x15   :  { %3065 = vmatpush3.msra.mxu0 %v72_v4  ;;  %3076 = vmatprep.subr.mxu1 %v41_v7  ;;  %v43_v20 = vld [vmem:[%s5038_s2] sm:$0xff]  ;;  %v44_v22 = vld [vmem:[%s5038_s2 + $0x8] sm:$0xff]  ;;  %v45_v4 = vld [vmem:[%s5038_s2 + $0x10] sm:$0xff] }
  0x16   :  { %3066 = vmatprep.subr.mxu0 %v71_v8  ;;  %77 = vperm.xlu0 %3392, %v67_v9   ;;  %v51_v21 = vld [vmem:[%s5038_s2 + $0x40] sm:$0xff]  ;;  %v52_v23 = vld [vmem:[%s5038_s2 + $0x48] sm:$0xff] }
  0x17   :  { %3067 = vmatpush3.msra.mxu0 %v71_v8  ;;  %3077 = vmatpush3.msra.mxu1 %v41_v7  ;;  %v54_v8 = vld [vmem:[%s5038_s2 + $0x58] sm:$0xff] }
  0x18   :  { %3069 = vmatmul.mubr.msk.f32.vlgmr.msra.gmra.mxu0 %vm95_vm0, %v60_v10  ;;  %3078 = vmatprep.subr.mxu1 %v40_v11  ;;  %v55_v10 = vld [vmem:[%s5038_s2 + $0x60] sm:$0xff] }
  0x19   :  { %3079 = vmatpush3.msra.mxu1 %v40_v11  ;;  %3082 = vmatprep.mubr.msk.f32.mxu1 %vm95_vm0, %v63_v12  ;;  %v56_v12 = vld [vmem:[%s5038_s2 + $0x68] sm:$0xff] }
  0x1a   :  { %3080 = vmatprep.subr.mxu1 %v39_v13  ;;  %3393 = vset.pattern.permute.xlu1 %v5044_v15 }
  0x1b   :  { %3081 = vmatpush3.msra.mxu1 %v39_v13  ;;  %198 = vperm.xlu1 %3393, %v68_v5   ;;  %v53_v5 = vld [vmem:[%s5038_s2 + $0x50] sm:$0xff] }
  0x1c   :  { %3083 = vmatmul.mubr.msk.f32.vlgmr.msra.gmra.mxu1 %vm95_vm0, %v64_v14  ;;  %3088 = vmatprep.subr.mxu0 %v42_v6 }
  0x1d   :  { %3376 = vmatprep.subr.mxu1 %v42_v6  ;;  %3089 = vmatpush3.msra.mxu0 %v42_v6 }
  0x1e   :  { %3380 = vmatpush3.msra.mxu1 %v42_v6  ;;  %3090 = vmatprep.subr.mxu0 %v41_v7 }
  0x1f   :  { %194 = vperm.xlu1 %3393, %v67_v9   ;;  %3377 = vmatprep.subr.mxu1 %v41_v7  ;;  %v47_v9 = vld [vmem:[%s5038_s2 + $0x20] sm:$0xff] }
  0x20   :  { %3091 = vmatpush3.msra.mxu0 %v41_v7  ;;  %3381 = vmatpush3.msra.mxu1 %v41_v7  ;;  %v46_v7 = vld [vmem:[%s5038_s2 + $0x18] sm:$0xff] }
  0x21   :  { %3092 = vmatprep.subr.mxu0 %v40_v11  ;;  %3378 = vmatprep.subr.mxu1 %v40_v11 }
  0x22   :  { %3093 = vmatpush3.msra.mxu0 %v40_v11  ;;  %3382 = vmatpush3.msra.mxu1 %v40_v11  ;;  %v48_v11 = vld [vmem:[%s5038_s2 + $0x28] sm:$0xff] }
  0x23   :  { %3094 = vmatprep.subr.mxu0 %v39_v13  ;;  %3379 = vmatprep.subr.mxu1 %v39_v13 }
  0x24   :  { %3095 = vmatpush3.msra.mxu0 %v39_v13  ;;  %3383 = vmatpush3.msra.mxu1 %v39_v13  ;;  %v1100_v13 = vstv %s2819_s24 }
  0x25   :  { %3071 = vmatprep.mubr.msk.f32.mxu0 %vm95_vm0, %v61_v16  ;;  %3085 = vmatprep.mubr.msk.f32.mxu1 %vm95_vm0, %v65_v17  ;;  %v689_v16 = vstv %s688_s29  ;;  %v49_v17 = vld [vmem:[%s5038_s2 + $0x30] sm:$0xff] }
  0x26   :  { %3072 = vmatmul.mubr.msk.f32.gmra.mxu0 %vm95_vm0, %v62_v18  ;;  %3086 = vmatmul.mubr.msk.f32.gmra.mxu1 %vm95_vm0, %v66_v19  ;;  %v57_v18 = vld [vmem:[%s5038_s2 + $0x70] sm:$0xff] }
  0x27   :  { %3096 = vmatprep.mubr.msk.f32.mxu0 %vm95_vm0, %v43_v20  ;;  %3108 = vmatprep.mubr.msk.f32.mxu1 %vm95_vm0, %v51_v21  ;;  %v50_v20 = vld [vmem:[%s5038_s2 + $0x38] sm:$0xff] }
  0x28   :  { %v58_v21 = vld [vmem:[%s5038_s2 + $0x78] sm:$0xff] }
  0x2a   :  { %3097 = vmatmul.mubr.msk.f32.vlgmr.msra.gmra.mxu0 %vm95_vm0, %v44_v22  ;;  %3109 = vmatmul.mubr.msk.f32.vlgmr.msra.gmra.mxu1 %vm95_vm0, %v52_v23 }
  0x2b   :  { %3099 = vmatprep.mubr.msk.f32.mxu0 %vm95_vm0, %v45_v4  ;;  %3111 = vmatprep.mubr.msk.f32.mxu1 %vm95_vm0, %v53_v5 }
  0x2e   :  { %3100 = vmatmul.mubr.msk.f32.gmra.mxu0 %vm95_vm0, %v46_v7  ;;  %3112 = vmatmul.mubr.msk.f32.gmra.mxu1 %vm95_vm0, %v54_v8 }
  0x2f   :  { %3102 = vmatprep.mubr.msk.f32.mxu0 %vm95_vm0, %v47_v9  ;;  %3114 = vmatprep.mubr.msk.f32.mxu1 %vm95_vm0, %v55_v10 }
  0x32   :  { %3103 = vmatmul.mubr.msk.f32.gmra.mxu0 %vm95_vm0, %v48_v11  ;;  %3115 = vmatmul.mubr.msk.f32.gmra.mxu1 %vm95_vm0, %v56_v12 }
  0x33   :  { %3105 = vmatprep.mubr.msk.f32.mxu0 %vm95_vm0, %v49_v17  ;;  %3117 = vmatprep.mubr.msk.f32.mxu1 %vm95_vm0, %v57_v18 }
  0x36   :  { %3106 = vmatmul.mubr.msk.f32.gmra.mxu0 %vm95_vm0, %v50_v20  ;;  %3118 = vmatmul.mubr.msk.f32.gmra.mxu1 %vm95_vm0, %v58_v21 }
  0x8d   :  { %v83_v24 = vpop.permute.xlu0 %82 }
  0x91   :  { %v78_v28 = vpop.permute.xlu0 %77 }
  0x96   :  { %v199_v25 = vpop.permute.xlu1 %198 }
  0x9a   :  { %v195_v33 = vpop.permute.xlu1 %194 }
  0xd8   :  { %v3070_v26 = vpop.f32.mrf.mxu0 }
  0xd9   :  { %v3828_v27 = vadd.f32 %v3070_v26, %v83_v24 }
  0xda   :  { %v174_v29 = vpop.f32.mrf.mxu0 }
  0xdb   :  { %v1090_v30 = vmul.f32 %v3828_v27, %v3828_v27  ;;  %v3832_v31 = vadd.f32 %v174_v29, %v78_v28 }
  0xdc   :  { %v3084_v32 = vpop.f32.mrf.mxu1 }
  0xdd   :  { %v1091_v34 = vrot.slane %v1090_v30, 4  ;;  %v679_v35 = vmul.f32 %v3832_v31, %v3832_v31  ;;  %v3836_v36 = vadd.f32 %v3084_v32, %v199_v25  ;;  %v577_v32 = vld [vmem:[%s5041_s5 + $0x50] sm:$0xff] }
  0xde   :  { %v287_v37 = vpop.f32.mrf.mxu1 }
  0xdf   :  { %v1092_v38 = vadd.f32 %v1091_v34, %v1090_v30  ;;  %v680_v39 = vrot.slane %v679_v35, 4  ;;  %v1103_v40 = vmul.f32 %v3836_v36, %v3836_v36  ;;  %v3840_v41 = vadd.f32 %v287_v37, %v195_v33  ;;  %v582_v33 = vld [vmem:[%s5041_s5 + $0x78] sm:$0xff]  ;;  %v580_v34 = vld [vmem:[%s5041_s5 + $0x68] sm:$0xff]  ;;  %v571_v37 = vld [vmem:[%s5041_s5 + $0x20] sm:$0xff] }
  0xe1   :  { %v1093_v42 = vrot.slane %v1092_v38, 2  ;;  %v681_v43 = vadd.f32 %v680_v39, %v679_v35  ;;  %v1104_v44 = vrot.slane %v1103_v40, 4  ;;  %v692_v45 = vmul.f32 %v3840_v41, %v3840_v41  ;;  %v573_v35 = vld [vmem:[%s5041_s5 + $0x30] sm:$0xff] }
  0xe2   :  { %v569_v39 = vld [vmem:[%s5041_s5 + $0x10] sm:$0xff] }
  0xe3   :  { %v1094_v46 = vadd.f32 %v1093_v42, %v1092_v38  ;;  %v682_v47 = vrot.slane %v681_v43, 2  ;;  %v1105_v48 = vadd.f32 %v1104_v44, %v1103_v40  ;;  %v693_v49 = vrot.slane %v692_v45, 4  ;;  %v576_v38 = vld [vmem:[%s5041_s5 + $0x48] sm:$0xff]  ;;  %v574_v40 = vld [vmem:[%s5041_s5 + $0x38] sm:$0xff] }
  0xe4   :  { %v572_v42 = vld [vmem:[%s5041_s5 + $0x28] sm:$0xff] }
  0xe5   :  { %v1095_v50 = vrot.slane %v1094_v46, 1  ;;  %v683_v51 = vadd.f32 %v682_v47, %v681_v43  ;;  %v1106_v52 = vrot.slane %v1105_v48, 2  ;;  %v694_v53 = vadd.f32 %v693_v49, %v692_v45  ;;  %v570_v43 = vld [vmem:[%s5041_s5 + $0x18] sm:$0xff] }
  0xe7   :  { %v1096_v54 = vadd.f32 %v1095_v50, %v1094_v46  ;;  %v684_v55 = vrot.slane %v683_v51, 1  ;;  %v1107_v56 = vadd.f32 %v1106_v52, %v1105_v48  ;;  %v695_v57 = vrot.slane %v694_v53, 2  ;;  %v568_v46 = vld [vmem:[%s5041_s5 + $0x8] sm:$0xff] }
  0xe9   :  { %v1097_v58 = vadd.f32 1e-12, %v1096_v54  ;;  %v685_v59 = vadd.f32 %v684_v55, %v683_v51  ;;  %v1108_v60 = vrot.slane %v1107_v56, 1  ;;  %v696_v61 = vadd.f32 %v695_v57, %v694_v53 }
  0xeb   :  { %3402 = vrsqrt.f32 %v1097_v58  ;;  %v686_v62 = vadd.f32 1e-12, %v685_v59  ;;  %v1109_v63 = vadd.f32 %v1108_v60, %v1107_v56  ;;  %v697_v0 = vrot.slane %v696_v61, 1 }
  0xed   :  { %3404 = vrsqrt.f32 %v686_v62  ;;  %v1110_v1 = vadd.f32 1e-12, %v1109_v63  ;;  %v698_v2 = vadd.f32 %v697_v0, %v696_v61 }
  0xef   :  { %3406 = vrsqrt.f32 %v1110_v1  ;;  %v699_v6 = vadd.f32 1e-12, %v698_v2  ;;  %v3966_v2 = vpop.f32.mrf.mxu0 }
  0xf1   :  { %3408 = vrsqrt.f32 %v699_v6  ;;  %v3970_v6 = vpop.f32.mrf.mxu0 }
  0xf3   :  { %v3974_v9 = vpop.f32.mrf.mxu0 }
  0xf4   :  { %5080 = vst [vmem:[#allocation5_spill] sm:$0xff] %v3974_v9 }
  0xf5   :  { %v420_v12 = vpop.f32.mrf.mxu0 }
  0xf8   :  { %v3403_v14 = vpop.eup %3402 }
  0xf9   :  { %v1101_v19 = vmul.f32 %v3403_v14, %v1100_v13 }
  0xfa   :  { %v3405_v22 = vpop.eup %3404 }
  0xfb   :  { %v1102_v23 = vmul.f32 %v1101_v19, %v3828_v27  ;;  %v690_v24 = vmul.f32 %v3405_v22, %v689_v16  ;;  %v581_v27 = vld [vmem:[%s5041_s5 + $0x70] sm:$0xff]  ;;  %v3980_v16 = vpop.f32.mrf.mxu0 }
  0xfc   :  { %v3407_v25 = vpop.eup %3406  ;;  %5081 = vst [vmem:[#allocation6_spill] sm:$0xff] %v3980_v16 }
  0xfd   :  { %v691_v26 = vmul.f32 %v690_v24, %v3832_v31  ;;  %1113 = vxpose.xlu0.b32.start.end [1/1] (short) %v1102_v23, 128  ;;  %v1112_v28 = vmul.f32 %v3407_v25, %v3836_v36  ;;  %v579_v31 = vld [vmem:[%s5041_s5 + $0x60] sm:$0xff]  ;;  %v578_v36 = vld [vmem:[%s5041_s5 + $0x58] sm:$0xff]  ;;  %v3983_v18 = vpop.f32.mrf.mxu0 }
  0xfe   :  { %v3409_v29 = vpop.eup %3408  ;;  %5082 = vst [vmem:[#allocation7_spill] sm:$0xff] %v3983_v18 }
  0xff   :  { %702 = vxpose.xlu1.b32.start.end [1/1] (short) %v691_v26, 128  ;;  %v701_v30 = vmul.f32 %v3409_v29, %v3840_v41  ;;  %3146 = vmatprep.subr.mxu0 %v1112_v28  ;;  %v567_v41 = vld [vmem:[%s5041_s5] sm:$0xff]  ;;  %v3986_v20 = vpop.f32.mrf.mxu0 }
 0x100   :  { %3147 = vmatpush3.msra.mxu0 %v1112_v28  ;;  %v3997_v28 = vpop.f32.mrf.mxu1 }
 0x101   :  { %3120 = vmatprep.subr.mxu1 %v701_v30  ;;  %v440_v22 = vpop.f32.mrf.mxu0 }
 0x102   :  { %3121 = vmatpush3.msra.mxu1 %v701_v30  ;;  %v4001_v30 = vpop.f32.mrf.mxu1 }
 0x11d   :  { %3394 = vset.pattern.permute.xlu1 %v3699_v3  ;;  %v575_v3 = vld [vmem:[%s5041_s5 + $0x40] sm:$0xff] }
 0x159   :  { %655 = vperm.xlu1 %3394, %v581_v27  }
 0x15d   :  { %645 = vperm.xlu1 %3394, %v579_v31   ;;  %v4005_v31 = vpop.f32.mrf.mxu1 }
 0x15e   :  { %5083 = vst [vmem:[#allocation8_spill] sm:$0xff] %v4005_v31 }
 0x161   :  { %635 = vperm.xlu1 %3394, %v577_v32  }
 0x162   :  { %660 = vperm.xlu0 %3392, %v582_v33  }
 0x165   :  { %625 = vperm.xlu1 %3394, %v575_v3   ;;  %v4011_v3 = vpop.f32.mrf.mxu1 }
 0x166   :  { %650 = vperm.xlu0 %3392, %v580_v34   ;;  %5084 = vst [vmem:[#allocation9_spill] sm:$0xff] %v4011_v3 }
 0x169   :  { %615 = vperm.xlu1 %3394, %v573_v35   ;;  %v499_v35 = vlaneseq }
 0x16a   :  { %640 = vperm.xlu0 %3392, %v578_v36   ;;  %v4015_v36 = vpop.f32.mrf.mxu1 }
 0x16b   :  { %5085 = vst [vmem:[#allocation10_spill] sm:$0xff] %v4015_v36 }
 0x16d   :  { %605 = vperm.xlu1 %3394, %v571_v37  }
 0x16e   :  { %630 = vperm.xlu0 %3392, %v576_v38   ;;  %v4019_v38 = vshrl.u32 %v499_v35, 7 }
 0x171   :  { %595 = vperm.xlu1 %3394, %v569_v39   ;;  %v4021_v39 = vpop.f32.mrf.mxu1 }
 0x172   :  { %620 = vperm.xlu0 %3392, %v574_v40   ;;  %5086 = vst [vmem:[#allocation11_spill] sm:$0xff] %v4021_v39 }
 0x175   :  { %585 = vperm.xlu1 %3394, %v567_v41   ;;  %v501_v41 = vadd.s32 8, %v4019_v38 }
 0x176   :  { %610 = vperm.xlu0 %3392, %v572_v42  }
 0x179   :  { %v1129_v44 = vpop.trf.xlu0 }
 0x17a   :  { %600 = vperm.xlu0 %3392, %v570_v43   ;;  %3148 = vmatprep.mubr.msk.f32.mxu0 %vm734_vm1, %v1129_v44  ;;  %v533_v43 = vand.u32 127, %v499_v35  ;;  %v4028_v44 = vpop.f32.mrf.mxu1  ;;  %v4077_v35 = vld [vmem:[%s5040_s4 + $0x10] sm:$0xff] }
 0x17b   :  { %v718_v45 = vpop.trf.xlu1  ;;  %5087 = vst [vmem:[#allocation12_spill] sm:$0xff] %v4028_v44 }
 0x17c   :  { %3122 = vmatprep.mubr.msk.f32.mxu1 %vm734_vm1, %v718_v45  ;;  %v517_v45 = vshra.s32 %v501_v41, 4 }
 0x17d   :  { %v1130_v47 = vpop.trf.xlu0 }
 0x17e   :  { %590 = vperm.xlu0 %3392, %v568_v46   ;;  %3149 = vmatmul.mubr.msk.f32.vlgmr.msra.gmra.mxu0 %vm734_vm1, %v1130_v47  ;;  %v4030_v47 = vshra.s32 %v533_v43, 4 }
 0x17f   :  { %v719_v48 = vpop.trf.xlu1 }
 0x180   :  { %3123 = vmatmul.mubr.msk.f32.vlgmr.msra.gmra.mxu1 %vm734_vm1, %v719_v48  ;;  %v516_v48 = vshra.s32 %v4019_v38, 4  ;;  %vm536_vm2 = vcmp.eq.s32.totalorder %v517_v45, %v4030_v47 }
 0x181   :  { %v1131_v49 = vpop.trf.xlu0 }
 0x182   :  { %3151 = vmatprep.mubr.msk.f32.mxu0 %vm734_vm1, %v1131_v49  ;;  %v4033_v49 = vpop.f32.mrf.mxu1  ;;  %vm535_vm3 = vcmp.eq.s32.totalorder %v516_v48, %v4030_v47 }
 0x183   :  { %v720_v50 = vpop.trf.xlu1  ;;  %5088 = vst [vmem:[#allocation13_spill] sm:$0xff] %v4033_v49 }
 0x184   :  { %3125 = vmatprep.mubr.msk.f32.mxu1 %vm734_vm1, %v720_v50 }
 0x185   :  { %v1132_v51 = vpop.trf.xlu0 }
 0x186   :  { %3152 = vmatmul.mubr.msk.f32.gmra.mxu0 %vm734_vm1, %v1132_v51  ;;  %v4035_v51 = vpop.f32.mrf.mxu0 }
 0x187   :  { %v721_v52 = vpop.trf.xlu1  ;;  %5089 = vst [vmem:[#allocation14_spill] sm:$0xff] %v4035_v51 }
 0x188   :  { %3126 = vmatmul.mubr.msk.f32.gmra.mxu1 %vm734_vm1, %v721_v52  ;;  %v503_v52 = vadd.s32 24, %v4019_v38 }
 0x189   :  { %v1133_v53 = vpop.trf.xlu0 }
 0x18a   :  { %3154 = vmatprep.mubr.msk.f32.mxu0 %vm734_vm1, %v1133_v53  ;;  %v502_v53 = vadd.s32 16, %v4019_v38 }
 0x18b   :  { %v722_v54 = vpop.trf.xlu1 }
 0x18c   :  { %3128 = vmatprep.mubr.msk.f32.mxu1 %vm734_vm1, %v722_v54  ;;  %v4041_v54 = vpop.f32.mrf.mxu1 }
 0x18d   :  { %v1134_v55 = vpop.trf.xlu0  ;;  %5090 = vst [vmem:[#allocation15_spill] sm:$0xff] %v4041_v54 }
 0x18e   :  { %3155 = vmatmul.mubr.msk.f32.gmra.mxu0 %vm734_vm1, %v1134_v55  ;;  %v5046_v55 = vmov -1e+09  }
 0x18f   :  { %v723_v56 = vpop.trf.xlu1 }
 0x190   :  { %3129 = vmatmul.mubr.msk.f32.gmra.mxu1 %vm734_vm1, %v723_v56  ;;  %v552_v56 = vsel %vm536_vm2, 0.0, %v5046_v55 }
 0x191   :  { %v1135_v57 = vpop.trf.xlu0 }
 0x192   :  { %3157 = vmatprep.mubr.msk.f32.mxu0 %vm734_vm1, %v1135_v57 }
 0x193   :  { %v724_v58 = vpop.trf.xlu1 }
 0x194   :  { %3131 = vmatprep.mubr.msk.f32.mxu1 %vm734_vm1, %v724_v58  ;;  %v4044_v58 = vpop.f32.mrf.mxu0 }
 0x195   :  { %v1136_v59 = vpop.trf.xlu0 }
 0x196   :  { %3158 = vmatmul.mubr.msk.f32.gmra.mxu0 %vm734_vm1, %v1136_v59  ;;  %v519_v59 = vshra.s32 %v503_v52, 4  ;;  %v4088_v52 = vld [vmem:[%s5040_s4] sm:$0xff] }
 0x197   :  { %v725_v60 = vpop.trf.xlu1 }
 0x198   :  { %3132 = vmatmul.mubr.msk.f32.gmra.mxu1 %vm734_vm1, %v725_v60  ;;  %v551_v60 = vsel %vm535_vm3, 0.0, %v5046_v55  ;;  %vm538_vm4 = vcmp.eq.s32.totalorder %v519_v59, %v4030_v47  ;;  %v507_v59 = vadd.s32 56, %v4019_v38 }
 0x199   :  { %v1137_v61 = vpop.trf.xlu0 }
 0x19a   :  { %3160 = vmatprep.mubr.msk.f32.mxu0 %vm734_vm1, %v1137_v61 }
 0x19b   :  { %v726_v62 = vpop.trf.xlu1 }
 0x19c   :  { %3134 = vmatprep.mubr.msk.f32.mxu1 %vm734_vm1, %v726_v62 }
 0x19d   :  { %v1138_v63 = vpop.trf.xlu0 }
 0x19e   :  { %3161 = vmatmul.mubr.msk.f32.gmra.mxu0 %vm734_vm1, %v1138_v63  ;;  %v518_v63 = vshra.s32 %v502_v53, 4 }
 0x19f   :  { %v727_v0 = vpop.trf.xlu1 }
 0x1a0   :  { %3135 = vmatmul.mubr.msk.f32.gmra.mxu1 %vm734_vm1, %v727_v0  ;;  %v4049_v0 = vpop.f32.mrf.mxu1  ;;  %vm537_vm5 = vcmp.eq.s32.totalorder %v518_v63, %v4030_v47 }
 0x1a1   :  { %v1139_v1 = vpop.trf.xlu0  ;;  %5092 = vst [vmem:[#allocation17_spill] sm:$0xff] %v4049_v0  ;;  %v553_v48 = vsel %vm537_vm5, 0.0, %v5046_v55 }
 0x1a2   :  { %3163 = vmatprep.mubr.msk.f32.mxu0 %vm734_vm1, %v1139_v1 }
 0x1a3   :  { %v728_v4 = vpop.trf.xlu1 }
 0x1a4   :  { %3137 = vmatprep.mubr.msk.f32.mxu1 %vm734_vm1, %v728_v4  ;;  %v4054_v4 = vld [vmem:[%s5040_s4 + $0x18] sm:$0xff] }
 0x1a5   :  { %v1140_v5 = vpop.trf.xlu0 }
 0x1a6   :  { %3164 = vmatmul.mubr.msk.f32.gmra.mxu0 %vm734_vm1, %v1140_v5  ;;  %v505_v5 = vadd.s32 40, %v4019_v38 }
 0x1a7   :  { %v729_v7 = vpop.trf.xlu1 }
 0x1a8   :  { %3138 = vmatmul.mubr.msk.f32.gmra.mxu1 %vm734_vm1, %v729_v7  ;;  %v521_v41 = vshra.s32 %v505_v5, 4 }
 0x1a9   :  { %v1141_v8 = vpop.trf.xlu0 }
 0x1aa   :  { %3166 = vmatprep.mubr.msk.f32.mxu0 %vm734_vm1, %v1141_v8  ;;  %vm540_vm6 = vcmp.eq.s32.totalorder %v521_v41, %v4030_v47 }
 0x1ab   :  { %v730_v10 = vpop.trf.xlu1 }
 0x1ac   :  { %3140 = vmatprep.mubr.msk.f32.mxu1 %vm734_vm1, %v730_v10  ;;  %v504_v10 = vadd.s32 32, %v4019_v38 }
 0x1ad   :  { %v1142_v11 = vpop.trf.xlu0 }
 0x1ae   :  { %3167 = vmatmul.mubr.msk.f32.gmra.mxu0 %vm734_vm1, %v1142_v11 }
 0x1af   :  { %v731_v13 = vpop.trf.xlu1 }
 0x1b0   :  { %3141 = vmatmul.mubr.msk.f32.gmra.mxu1 %vm734_vm1, %v731_v13  ;;  %v4065_v13 = vld [vmem:[%s5040_s4 + $0x8] sm:$0xff] }
 0x1b1   :  { %v1143_v14 = vpop.trf.xlu0 }
 0x1b2   :  { %3169 = vmatprep.mubr.msk.f32.mxu0 %vm734_vm1, %v1143_v14 }
 0x1b3   :  { %v732_v17 = vpop.trf.xlu1 }
 0x1b4   :  { %3143 = vmatprep.mubr.msk.f32.mxu1 %vm734_vm1, %v732_v17 }
 0x1b5   :  { %v1144_v19 = vpop.trf.xlu0 }
 0x1b6   :  { %3170 = vmatmul.mubr.msk.f32.gmra.mxu0 %vm734_vm1, %v1144_v19 }
 0x1b7   :  { %v733_v21 = vpop.trf.xlu1  ;;  %3242 = vmatprep.mubr.f32.mxu0 %v420_v12 }
 0x1b8   :  { %3144 = vmatmul.mubr.msk.f32.gmra.mxu1 %vm734_vm1, %v733_v21  ;;  %v554_v21 = vsel %vm538_vm4, 0.0, %v5046_v55 }
 0x1b9   :  { %3204 = vmatprep.mubr.f32.mxu1 %v440_v22 }
 0x1d4   :  { %v3991_v24 = vpop.permute.xlu1 %655 }
 0x1d8   :  { %v3995_v26 = vpop.permute.xlu1 %645 }
 0x1dc   :  { %v4003_v27 = vpop.permute.xlu1 %635 }
 0x1dd   :  { %v3989_v23 = vpop.permute.xlu0 %660 }
 0x1e0   :  { %v4009_v33 = vpop.permute.xlu1 %625 }
 0x1e1   :  { %v3993_v25 = vpop.permute.xlu0 %650 }
 0x1e4   :  { %v4017_v37 = vpop.permute.xlu1 %615 }
 0x1e5   :  { %v3999_v29 = vpop.permute.xlu0 %640 }
 0x1e8   :  { %v4026_v42 = vpop.permute.xlu1 %605 }
 0x1e9   :  { %v4007_v32 = vpop.permute.xlu0 %630 }
 0x1ec   :  { %v596_v50 = vpop.permute.xlu1 %595 }
 0x1ed   :  { %v4013_v34 = vpop.permute.xlu0 %620 }
 0x1f0   :  { %v586_v61 = vpop.permute.xlu1 %585 }
 0x1f1   :  { %v4023_v40 = vpop.permute.xlu0 %610  ;;  %v4058_v7 = vadd.f32 %v586_v61, %v551_v60  ;;  %v4098_v61 = vadd.f32 %v596_v50, %v553_v48 }
 0x1f3   :  { %5093 = vst [vmem:[#allocation18_spill] sm:$0xff] %v4058_v7  ;;  %5095 = vst [vmem:[#allocation20_spill] sm:$0xff] %v4098_v61 }
 0x1f5   :  { %v601_v46 = vpop.permute.xlu0 %600 }
 0x1f6   :  { %v4090_v53 = vadd.f32 %v601_v46, %v554_v21 }
 0x1f8   :  { %5094 = vst [vmem:[#allocation19_spill] sm:$0xff] %v4090_v53 }
 0x1f9   :  { %v591_v57 = vpop.permute.xlu0 %590 }
 0x1fa   :  { %v4047_v62 = vadd.f32 %v591_v57, %v552_v56  ;;  %v520_v56 = vshra.s32 %v504_v10, 4 }
 0x1fc   :  { %5091 = vst [vmem:[#allocation16_spill] sm:$0xff] %v4047_v62  ;;  %vm539_vm7 = vcmp.eq.s32.totalorder %v520_v56, %v4030_v47 }
 0x1fd   :  { %v555_v41 = vsel %vm539_vm7, 0.0, %v5046_v55 }
 0x23e   :  { %v3150_v1 = vpop.f32.mrf.mxu0 }
 0x23f   :  { %v1265_v8 = vadd.f32 %v3150_v1, %v4047_v62  ;;  %v506_v1 = vadd.s32 48, %v4019_v38 }
 0x240   :  { %v3124_v11 = vpop.f32.mrf.mxu1  ;;  %v1259_v12 = vpop.f32.mrf.mxu0 }
 0x241   :  { %v855_v14 = vadd.f32 %v3124_v11, %v4047_v62  ;;  %v1260_v17 = vadd.f32 %v1259_v12, %v4058_v7  ;;  %v4071_v19 = vadd.f32 %v4054_v4, %v1265_v8  ;;  %v556_v12 = vsel %vm540_vm6, 0.0, %v5046_v55 }
 0x242   :  { %v849_v22 = vpop.f32.mrf.mxu1  ;;  %v522_v48 = vshra.s32 %v506_v1, 4  ;;  %v508_v1 = vadd.s32 64, %v4019_v38 }
 0x243   :  { %v850_v43 = vadd.f32 %v849_v22, %v4058_v7  ;;  %1359 = vmax.xlane.f32.xlu1 %v4071_v19  ;;  %v4082_v45 = vadd.f32 %v4065_v13, %v855_v14  ;;  %v4094_v57 = vadd.f32 %v4077_v35, %v1260_v17  ;;  %v523_v17 = vshra.s32 %v507_v59, 4 }
 0x244   :  { %v509_v59 = vadd.s32 72, %v4019_v38  ;;  %vm541_vm9 = vcmp.eq.s32.totalorder %v522_v48, %v4030_v47 }
 0x245   :  { %948 = vmax.xlane.f32.xlu0 %v4082_v45  ;;  %v4103_v46 = vadd.f32 %v4088_v52, %v850_v43  ;;  %v4121_v43 = vadd.f32 %v4023_v40, %v556_v12  ;;  %vm542_vm8 = vcmp.eq.s32.totalorder %v523_v17, %v4030_v47  ;;  %v557_v48 = vsel %vm541_vm9, 0.0, %v5046_v55 }
 0x246   :  { %v3153_v60 = vpop.f32.mrf.mxu0 }
 0x247   :  { %v1275_v63 = vadd.f32 %v3153_v60, %v4090_v53  ;;  %1357 = vmax.xlane.f32.xlu1 %v4094_v57  ;;  %5096 = vst [vmem:[#allocation21_spill] sm:$0xff] %v4121_v43 }
 0x248   :  { %v3127_v5 = vpop.f32.mrf.mxu1  ;;  %v1269_v8 = vpop.f32.mrf.mxu0 }
 0x249   :  { %v865_v10 = vadd.f32 %v3127_v5, %v4090_v53  ;;  %v1270_v11 = vadd.f32 %v1269_v8, %v4098_v61  ;;  %946 = vmax.xlane.f32.xlu0 %v4103_v46  ;;  %v4111_v50 = vadd.f32 %v4054_v4, %v1275_v63  ;;  %v4130_v63 = vadd.f32 %v4026_v42, %v555_v41 }
 0x24a   :  { %v859_v14 = vpop.f32.mrf.mxu1 }
 0x24b   :  { %v860_v21 = vadd.f32 %v859_v14, %v4098_v61  ;;  %1363 = vmax.xlane.f32.xlu1 %v4111_v50  ;;  %v4117_v22 = vadd.f32 %v4065_v13, %v865_v10  ;;  %v4125_v56 = vadd.f32 %v4077_v35, %v1270_v11  ;;  %5097 = vst [vmem:[#allocation22_spill] sm:$0xff] %v4130_v63  ;;  %v558_v14 = vsel %vm542_vm8, 0.0, %v5046_v55 }
 0x24d   :  { %952 = vmax.xlane.f32.xlu0 %v4117_v22  ;;  %v4135_v40 = vadd.f32 %v4088_v52, %v860_v21  ;;  %v525_v21 = vshra.s32 %v509_v59, 4  ;;  %v511_v59 = vadd.s32 88, %v4019_v38 }
 0x24e   :  { %v3156_v60 = vpop.f32.mrf.mxu0 }
 0x24f   :  { %v1285_v5 = vadd.f32 %v3156_v60, %v4121_v43  ;;  %1361 = vmax.xlane.f32.xlu1 %v4125_v56  ;;  %vm544_vm10 = vcmp.eq.s32.totalorder %v525_v21, %v4030_v47 }
 0x250   :  { %v3130_v8 = vpop.f32.mrf.mxu1  ;;  %v1279_v10 = vpop.f32.mrf.mxu0 }
 0x251   :  { %v875_v11 = vadd.f32 %v3130_v8, %v4121_v43  ;;  %v1280_v12 = vadd.f32 %v1279_v10, %v4130_v63  ;;  %950 = vmax.xlane.f32.xlu0 %v4135_v40  ;;  %v4143_v42 = vadd.f32 %v4054_v4, %v1285_v5  ;;  %v4153_v8 = vadd.f32 %v4013_v34, %v558_v14 }
 0x252   :  { %v869_v17 = vpop.f32.mrf.mxu1  ;;  %v524_v10 = vshra.s32 %v508_v1, 4  ;;  %v510_v1 = vadd.s32 80, %v4019_v38 }
 0x253   :  { %v870_v41 = vadd.f32 %v869_v17, %v4130_v63  ;;  %1367 = vmax.xlane.f32.xlu1 %v4143_v42  ;;  %v4149_v60 = vadd.f32 %v4065_v13, %v875_v11  ;;  %5098 = vst [vmem:[#allocation23_spill] sm:$0xff] %v4153_v8  ;;  %v4157_v5 = vadd.f32 %v4077_v35, %v1280_v12 }
 0x254   :  { %v4162_v17 = vadd.f32 %v4017_v37, %v557_v48  ;;  %vm543_vm11 = vcmp.eq.s32.totalorder %v524_v10, %v4030_v47 }
 0x255   :  { %956 = vmax.xlane.f32.xlu0 %v4149_v60  ;;  %v4167_v34 = vadd.f32 %v4088_v52, %v870_v41  ;;  %v527_v41 = vshra.s32 %v511_v59, 4  ;;  %v513_v59 = vadd.s32 104, %v4019_v38 }
 0x256   :  { %v3159_v15 = vpop.f32.mrf.mxu0  ;;  %5099 = vst [vmem:[#allocation24_spill] sm:$0xff] %v4162_v17 }
 0x257   :  { %v1295_v11 = vadd.f32 %v3159_v15, %v4153_v8  ;;  %1365 = vmax.xlane.f32.xlu1 %v4157_v5  ;;  %v5100_v15 = vmov -1e+09   ;;  %vm546_vm12 = vcmp.eq.s32.totalorder %v527_v41, %v4030_v47 }
 0x258   :  { %v3133_v14 = vpop.f32.mrf.mxu1  ;;  %v1289_v12 = vpop.f32.mrf.mxu0  ;;  %v560_v48 = vsel %vm544_vm10, 0.0, %v5100_v15  ;;  %v559_v10 = vsel %vm543_vm11, 0.0, %v5100_v15 }
 0x259   :  { %v885_v55 = vadd.f32 %v3133_v14, %v4153_v8  ;;  %v1290_v21 = vadd.f32 %v1289_v12, %v4162_v17  ;;  %954 = vmax.xlane.f32.xlu0 %v4167_v34  ;;  %v4175_v37 = vadd.f32 %v4054_v4, %v1295_v11  ;;  %v4185_v14 = vadd.f32 %v4007_v32, %v560_v48 }
 0x25a   :  { %v879_v54 = vpop.f32.mrf.mxu1  ;;  %v526_v12 = vshra.s32 %v510_v1, 4  ;;  %v512_v1 = vadd.s32 96, %v4019_v38 }
 0x25b   :  { %v880_v36 = vadd.f32 %v879_v54, %v4162_v17  ;;  %1371 = vmax.xlane.f32.xlu1 %v4175_v37  ;;  %v4181_v0 = vadd.f32 %v4065_v13, %v885_v55  ;;  %5101 = vst [vmem:[#allocation25_spill] sm:$0xff] %v4185_v14  ;;  %v4189_v11 = vadd.f32 %v4077_v35, %v1290_v21 }
 0x25c   :  { %v4194_v54 = vadd.f32 %v4009_v33, %v559_v10  ;;  %vm545_vm13 = vcmp.eq.s32.totalorder %v526_v12, %v4030_v47 }
 0x25d   :  { %960 = vmax.xlane.f32.xlu0 %v4181_v0  ;;  %v4199_v32 = vadd.f32 %v4088_v52, %v880_v36  ;;  %v529_v36 = vshra.s32 %v513_v59, 4  ;;  %v561_v12 = vsel %vm545_vm13, 0.0, %v5100_v15  ;;  %v515_v59 = vadd.s32 120, %v4019_v38 }
 0x25e   :  { %v3162_v44 = vpop.f32.mrf.mxu0  ;;  %5102 = vst [vmem:[#allocation26_spill] sm:$0xff] %v4194_v54 }
 0x25f   :  { %v1305_v55 = vadd.f32 %v3162_v44, %v4185_v14  ;;  %1369 = vmax.xlane.f32.xlu1 %v4189_v11  ;;  %v562_v44 = vsel %vm546_vm12, 0.0, %v5100_v15  ;;  %vm548_vm14 = vcmp.eq.s32.totalorder %v529_v36, %v4030_v47  ;;  %v531_v36 = vshra.s32 %v515_v59, 4 }
 0x260   :  { %v3136_v48 = vpop.f32.mrf.mxu1  ;;  %v1299_v21 = vpop.f32.mrf.mxu0 }
 0x261   :  { %v895_v39 = vadd.f32 %v3136_v48, %v4185_v14  ;;  %v1300_v41 = vadd.f32 %v1299_v21, %v4194_v54  ;;  %958 = vmax.xlane.f32.xlu0 %v4199_v32  ;;  %v4207_v33 = vadd.f32 %v4054_v4, %v1305_v55  ;;  %v4217_v48 = vadd.f32 %v3999_v29, %v562_v44 }
 0x262   :  { %v889_v10 = vpop.f32.mrf.mxu1  ;;  %v528_v21 = vshra.s32 %v512_v1, 4  ;;  %vm550_vm0 = vcmp.eq.s32.totalorder %v531_v36, %v4030_v47 }
 0x263   :  { %v890_v31 = vadd.f32 %v889_v10, %v4194_v54  ;;  %1375 = vmax.xlane.f32.xlu1 %v4207_v33  ;;  %v4213_v17 = vadd.f32 %v4065_v13, %v895_v39  ;;  %5103 = vst [vmem:[#allocation27_spill] sm:$0xff] %v4217_v48  ;;  %v4221_v55 = vadd.f32 %v4077_v35, %v1300_v41 }
 0x264   :  { %v4226_v10 = vadd.f32 %v4003_v27, %v561_v12  ;;  %vm547_vm15 = vcmp.eq.s32.totalorder %v528_v21, %v4030_v47 }
 0x265   :  { %964 = vmax.xlane.f32.xlu0 %v4213_v17  ;;  %v4231_v29 = vadd.f32 %v4088_v52, %v890_v31  ;;  %v514_v31 = vadd.s32 112, %v4019_v38 }
 0x266   :  { %v3165_v14 = vpop.f32.mrf.mxu0  ;;  %5104 = vst [vmem:[#allocation28_spill] sm:$0xff] %v4226_v10 }
 0x267   :  { %v1315_v39 = vadd.f32 %v3165_v14, %v4217_v48  ;;  %1373 = vmax.xlane.f32.xlu1 %v4221_v55  ;;  %v564_v14 = vsel %vm548_vm14, 0.0, %v5100_v15 }
 0x268   :  { %v3139_v1 = vpop.f32.mrf.mxu1  ;;  %v1309_v44 = vpop.f32.mrf.mxu0 }
 0x269   :  { %v905_v41 = vadd.f32 %v3139_v1, %v4217_v48  ;;  %v1310_v54 = vadd.f32 %v1309_v44, %v4226_v10  ;;  %962 = vmax.xlane.f32.xlu0 %v4231_v29  ;;  %v4238_v27 = vadd.f32 %v4054_v4, %v1315_v39  ;;  %v563_v1 = vsel %vm547_vm15, 0.0, %v5100_v15 }
 0x26a   :  { %v899_v12 = vpop.f32.mrf.mxu1  ;;  %v4249_v44 = vadd.f32 %v3993_v25, %v564_v14  ;;  %v530_v39 = vshra.s32 %v514_v31, 4 }
 0x26b   :  { %v900_v8 = vadd.f32 %v899_v12, %v4226_v10  ;;  %1379 = vmax.xlane.f32.xlu1 %v4238_v27  ;;  %v4245_v21 = vadd.f32 %v4065_v13, %v905_v41  ;;  %v4253_v59 = vadd.f32 %v4077_v35, %v1310_v54  ;;  %v4257_v12 = vadd.f32 %v3995_v26, %v563_v1 }
 0x26c   :  { %5105 = vst [vmem:[#allocation29_spill] sm:$0xff] %v4249_v44  ;;  %v566_v26 = vsel %vm550_vm0, 0.0, %v5100_v15  ;;  %vm549_vm2 = vcmp.eq.s32.totalorder %v530_v39, %v4030_v47 }
 0x26d   :  { %968 = vmax.xlane.f32.xlu0 %v4245_v21  ;;  %5106 = vst [vmem:[#allocation30_spill] sm:$0xff] %v4257_v12  ;;  %v4262_v10 = vadd.f32 %v4088_v52, %v900_v8 }
 0x26e   :  { %v3168_v38 = vpop.f32.mrf.mxu0 }
 0x26f   :  { %v1325_v41 = vadd.f32 %v3168_v38, %v4249_v44  ;;  %1377 = vmax.xlane.f32.xlu1 %v4253_v59  ;;  %v4278_v38 = vadd.f32 %v3989_v23, %v566_v26 }
 0x270   :  { %v3142_v25 = vpop.f32.mrf.mxu1  ;;  %v1319_v14 = vpop.f32.mrf.mxu0 }
 0x271   :  { %v915_v48 = vadd.f32 %v3142_v25, %v4249_v44  ;;  %v1320_v54 = vadd.f32 %v1319_v14, %v4257_v12  ;;  %966 = vmax.xlane.f32.xlu0 %v4262_v10  ;;  %v4268_v36 = vadd.f32 %v4054_v4, %v1325_v41  ;;  %5107 = vst [vmem:[#allocation31_spill] sm:$0xff] %v4278_v38  ;;  %v565_v25 = vsel %vm549_vm2, 0.0, %v5100_v15 }
 0x272   :  { %v909_v31 = vpop.f32.mrf.mxu1  ;;  %v4291_v23 = vadd.f32 %v3991_v24, %v565_v25 }
 0x273   :  { %v910_v1 = vadd.f32 %v909_v31, %v4257_v12  ;;  %1383 = vmax.xlane.f32.xlu1 %v4268_v36  ;;  %v4275_v8 = vadd.f32 %v4065_v13, %v915_v48  ;;  %v4282_v41 = vadd.f32 %v4077_v35, %v1320_v54 }
 0x274   :  { %5108 = vst [vmem:[#allocation32_spill] sm:$0xff] %v4291_v23 }
 0x275   :  { %972 = vmax.xlane.f32.xlu0 %v4275_v8  ;;  %v4288_v39 = vadd.f32 %v4088_v52, %v910_v1 }
 0x276   :  { %v3171_v14 = vpop.f32.mrf.mxu0 }
 0x277   :  { %v1335_v47 = vadd.f32 %v3171_v14, %v4278_v38  ;;  %1381 = vmax.xlane.f32.xlu1 %v4282_v41 }
 0x278   :  { %v3145_v48 = vpop.f32.mrf.mxu1  ;;  %v1329_v31 = vpop.f32.mrf.mxu0 }
 0x279   :  { %v925_v26 = vadd.f32 %v3145_v48, %v4278_v38  ;;  %970 = vmax.xlane.f32.xlu0 %v4288_v39  ;;  %v1330_v54 = vadd.f32 %v1329_v31, %v4291_v23  ;;  %v4300_v14 = vadd.f32 %v4054_v4, %v1335_v47  ;;  %v4316_v4 = vld [vmem:[%s5039_s3 + $0x10] sm:$0xff] }
 0x27a   :  { %v919_v12 = vpop.f32.mrf.mxu1 }
 0x27b   :  { %v4297_v15 = vadd.f32 %v4065_v13, %v925_v26  ;;  %v920_v24 = vadd.f32 %v919_v12, %v4291_v23  ;;  %v4306_v1 = vadd.f32 %v4077_v35, %v1330_v54  ;;  %v5109_v13 = vmov 1   ;;  %v4323_v35 = vld [vmem:[%s5039_s3 + $0x18] sm:$0xff] }
 0x27d   :  { %976 = vmax.xlane.f32.xlu1 %v4297_v15  ;;  %1387 = vmax.xlane.f32.xlu0 %v4300_v14  ;;  %v4310_v25 = vadd.f32 %v4088_v52, %v920_v24 }
 0x281   :  { %1385 = vmax.xlane.f32.xlu0 %v4306_v1 }
 0x285   :  { %974 = vmax.xlane.f32.xlu0 %v4310_v25 }
 0x28e   :  { %87 = vperm.xlu1 %3394, %v4316_v4  }
 0x292   :  { %3395 = vset.pattern.permute.xlu1 %v5109_v13 }
 0x29b   :  { %92 = vperm.xlu0 %3392, %v4323_v35  }
 0x29f   :  { %3396 = vset.pattern.permute.xlu0 %v5109_v13 }
 0x2cc   :  { %v4327_v52 = vpop.xlane.xlu1 %1359 }
 0x2ce   :  { %v4329_v12 = vpop.xlane.xlu0 %948 }
 0x2d0   :  { %v4331_v47 = vpop.xlane.xlu1 %1357 }
 0x2d2   :  { %v4333_v48 = vpop.xlane.xlu0 %946 }
 0x2d4   :  { %v4335_v31 = vpop.xlane.xlu1 %1363 }
 0x2d6   :  { %v4337_v26 = vpop.xlane.xlu0 %952 }
 0x2d8   :  { %v4339_v54 = vpop.xlane.xlu1 %1361 }
 0x2da   :  { %v4341_v24 = vpop.xlane.xlu0 %950 }
 0x2dc   :  { %v1368_v23 = vpop.xlane.xlu1 %1367 }
 0x2dd   :  { %v1394_v44 = vsub.f32 %v4143_v42, %v1368_v23 }
 0x2de   :  { %v4344_v13 = vpop.xlane.xlu0 %956 }
 0x2df   :  { %v1415_v38 = vmul.f32 1.442695, %v1394_v44 }
 0x2e0   :  { %v4346_v63 = vpop.xlane.xlu1 %1365 }
 0x2e1   :  { %3410 = vpow2.f32 %v1415_v38 }
 0x2e2   :  { %v4348_v43 = vpop.xlane.xlu0 %954 }
 0x2e4   :  { %v1372_v61 = vpop.xlane.xlu1 %1371 }
 0x2e5   :  { %v1396_v53 = vsub.f32 %v4175_v37, %v1372_v61 }
 0x2e6   :  { %v961_v7 = vpop.xlane.xlu0 %960 }
 0x2e7   :  { %v1419_v62 = vmul.f32 1.442695, %v1396_v53  ;;  %v985_v49 = vsub.f32 %v4181_v0, %v961_v7 }
 0x2e8   :  { %v1370_v3 = vpop.xlane.xlu1 %1369 }
 0x2e9   :  { %3412 = vpow2.f32 %v1419_v62  ;;  %v1008_v16 = vmul.f32 1.442695, %v985_v49  ;;  %v1395_v42 = vsub.f32 %v4189_v11, %v1370_v3 }
 0x2ea   :  { %v959_v23 = vpop.xlane.xlu0 %958 }
 0x2eb   :  { %3414 = vpow2.f32 %v1008_v16  ;;  %v1417_v44 = vmul.f32 1.442695, %v1395_v42  ;;  %v984_v18 = vsub.f32 %v4199_v32, %v959_v23 }
 0x2ec   :  { %v1376_v38 = vpop.xlane.xlu1 %1375 }
 0x2ed   :  { %3416 = vpow2.f32 %v1417_v44  ;;  %v1006_v9 = vmul.f32 1.442695, %v984_v18  ;;  %v1398_v51 = vsub.f32 %v4207_v33, %v1376_v38 }
 0x2ee   :  { %v4355_v61 = vpop.eup %3410  ;;  %v965_v53 = vpop.xlane.xlu0 %964 }
 0x2ef   :  { %3418 = vpow2.f32 %v1006_v9  ;;  %v1423_v0 = vmul.f32 1.442695, %v1398_v51  ;;  %v987_v62 = vsub.f32 %v4213_v17, %v965_v53  ;;  %1447 = vadd.xlane.f32.xlu1 %v4355_v61 }
 0x2f0   :  { %v1374_v3 = vpop.xlane.xlu1 %1373 }
 0x2f1   :  { %v1012_v49 = vmul.f32 1.442695, %v987_v62  ;;  %v1397_v16 = vsub.f32 %v4221_v55, %v1374_v3  ;;  %3420 = vpow2.f32 %v1423_v0 }
 0x2f2   :  { %v963_v7 = vpop.xlane.xlu0 %962 }
 0x2f3   :  { %3422 = vpow2.f32 %v1012_v49  ;;  %v1421_v37 = vmul.f32 1.442695, %v1397_v16  ;;  %v986_v18 = vsub.f32 %v4231_v29, %v963_v7 }
 0x2f4   :  { %v1380_v11 = vpop.xlane.xlu1 %1379 }
 0x2f5   :  { %v1010_v32 = vmul.f32 1.442695, %v986_v18  ;;  %v1400_v33 = vsub.f32 %v4238_v27, %v1380_v11  ;;  %3424 = vpow2.f32 %v1421_v37 }
 0x2f6   :  { %v4362_v9 = vpop.eup %3412  ;;  %v969_v51 = vpop.xlane.xlu0 %968 }
 0x2f7   :  { %3426 = vpow2.f32 %v1010_v32  ;;  %v1427_v17 = vmul.f32 1.442695, %v1400_v33  ;;  %v989_v42 = vsub.f32 %v4245_v21, %v969_v51  ;;  %1451 = vadd.xlane.f32.xlu1 %v4362_v9 }
 0x2f8   :  { %v4366_v55 = vpop.eup %3414  ;;  %v1378_v23 = vpop.xlane.xlu1 %1377 }
 0x2f9   :  { %v1016_v44 = vmul.f32 1.442695, %v989_v42  ;;  %v1399_v29 = vsub.f32 %v4253_v59, %v1378_v23  ;;  %1040 = vadd.xlane.f32.xlu0 %v4366_v55  ;;  %3428 = vpow2.f32 %v1427_v17 }
 0x2fa   :  { %v4370_v38 = vpop.eup %3416  ;;  %v967_v27 = vpop.xlane.xlu0 %966 }
 0x2fb   :  { %3430 = vpow2.f32 %v1016_v44  ;;  %v1425_v53 = vmul.f32 1.442695, %v1399_v29  ;;  %v988_v0 = vsub.f32 %v4262_v10, %v967_v27  ;;  %1449 = vadd.xlane.f32.xlu1 %v4370_v38 }
 0x2fc   :  { %v4374_v21 = vpop.eup %3418  ;;  %v1384_v62 = vpop.xlane.xlu1 %1383 }
 0x2fd   :  { %v1014_v3 = vmul.f32 1.442695, %v988_v0  ;;  %v1402_v49 = vsub.f32 %v4268_v36, %v1384_v62  ;;  %1038 = vadd.xlane.f32.xlu0 %v4374_v21  ;;  %3432 = vpow2.f32 %v1425_v53 }
 0x2fe   :  { %v973_v59 = vpop.xlane.xlu0 %972  ;;  %v4378_v16 = vpop.eup %3420 }
 0x2ff   :  { %3434 = vpow2.f32 %v1014_v3  ;;  %v1431_v7 = vmul.f32 1.442695, %v1402_v49  ;;  %v991_v37 = vsub.f32 %v4275_v8, %v973_v59 }
 0x300   :  { %v4381_v18 = vpop.eup %3422  ;;  %v1382_v10 = vpop.xlane.xlu1 %1381 }
 0x301   :  { %v1020_v11 = vmul.f32 1.442695, %v991_v37  ;;  %v1401_v32 = vsub.f32 %v4282_v41, %v1382_v10  ;;  %1455 = vadd.xlane.f32.xlu0 %v4378_v16  ;;  %1044 = vadd.xlane.f32.xlu1 %v4381_v18  ;;  %3436 = vpow2.f32 %v1431_v7  ;;  %v983_v10 = vsub.f32 %v4149_v60, %v4344_v13 }
 0x302   :  { %v971_v36 = vpop.xlane.xlu0 %970  ;;  %v4386_v33 = vpop.eup %3424  ;;  %v982_v60 = vsub.f32 %v4167_v34, %v4348_v43  ;;  %v1390_v43 = vsub.f32 %v4071_v19, %v4327_v52  ;;  %v979_v19 = vsub.f32 %v4082_v45, %v4329_v12 }
 0x303   :  { %3438 = vpow2.f32 %v1020_v11  ;;  %v1429_v51 = vmul.f32 1.442695, %v1401_v32  ;;  %v990_v17 = vsub.f32 %v4288_v39, %v971_v36 }
 0x304   :  { %v4389_v42 = vpop.eup %3426 }
 0x305   :  { %v1018_v8 = vmul.f32 1.442695, %v990_v17  ;;  %1453 = vadd.xlane.f32.xlu0 %v4386_v33  ;;  %1042 = vadd.xlane.f32.xlu1 %v4389_v42  ;;  %3440 = vpow2.f32 %v1429_v51  ;;  %v1004_v51 = vmul.f32 1.442695, %v983_v10  ;;  %v1391_v17 = vsub.f32 %v4125_v56, %v4339_v54 }
 0x306   :  { %v977_v41 = vpop.xlane.xlu1 %976  ;;  %v1388_v23 = vpop.xlane.xlu0 %1387  ;;  %v980_v54 = vsub.f32 %v4135_v40, %v4341_v24  ;;  %v996_v40 = vmul.f32 1.442695, %v979_v19  ;;  %v1389_v24 = vsub.f32 %v4094_v57, %v4331_v47 }
 0x307   :  { %v4393_v44 = vpop.eup %3428  ;;  %3442 = vpow2.f32 %v1018_v8  ;;  %v993_v29 = vsub.f32 %v4297_v15, %v977_v41  ;;  %v1404_v27 = vsub.f32 %v4300_v14, %v1388_v23  ;;  %v1393_v15 = vsub.f32 %v4157_v5, %v4346_v63 }
 0x308   :  { %v4397_v53 = vpop.eup %3430  ;;  %v1392_v63 = vsub.f32 %v4111_v50, %v4335_v31  ;;  %v981_v50 = vsub.f32 %v4117_v22, %v4337_v26  ;;  %v1002_v31 = vmul.f32 1.442695, %v982_v60  ;;  %v1409_v34 = vmul.f32 1.442695, %v1391_v17 }
 0x309   :  { %v1024_v39 = vmul.f32 1.442695, %v993_v29  ;;  %v1435_v0 = vmul.f32 1.442695, %v1404_v27  ;;  %1459 = vadd.xlane.f32.xlu1 %v4393_v44  ;;  %1048 = vadd.xlane.f32.xlu0 %v4397_v53  ;;  %v1413_v5 = vmul.f32 1.442695, %v1393_v15  ;;  %v978_v60 = vsub.f32 %v4103_v46, %v4333_v48 }
 0x30a   :  { %v1386_v62 = vpop.xlane.xlu0 %1385  ;;  %v4401_v3 = vpop.eup %3432  ;;  %v1000_v56 = vmul.f32 1.442695, %v981_v50  ;;  %v1407_v26 = vmul.f32 1.442695, %v1390_v43  ;;  %v998_v52 = vmul.f32 1.442695, %v980_v54 }
 0x30b   :  { %3444 = vpow2.f32 %v1024_v39  ;;  %v1403_v49 = vsub.f32 %v4306_v1, %v1386_v62  ;;  %v1405_v45 = vmul.f32 1.442695, %v1389_v24 }
 0x30c   :  { %v4404_v59 = vpop.eup %3434  ;;  %3446 = vpow2.f32 %v1435_v0 }
 0x30d   :  { %v1433_v14 = vmul.f32 1.442695, %v1403_v49  ;;  %1457 = vadd.xlane.f32.xlu1 %v4401_v3  ;;  %1046 = vadd.xlane.f32.xlu0 %v4404_v59  ;;  %v88_v49 = vpop.permute.xlu1 %87 }
 0x30e   :  { %v975_v7 = vpop.xlane.xlu0 %974  ;;  %v4410_v37 = vpop.eup %3436  ;;  %v185_v15 = vadd.f32 %v3970_v6, %v88_v49 }
 0x30f   :  { %3448 = vpow2.f32 %v1433_v14  ;;  %v992_v1 = vsub.f32 %v4310_v25, %v975_v7  ;;  %v1411_v25 = vmul.f32 1.442695, %v1392_v63 }
 0x310   :  { %v4415_v11 = vpop.eup %3438  ;;  %v1671_v7 = vmul.f32 %v185_v15, %v185_v15 }
 0x311   :  { %v1022_v32 = vmul.f32 1.442695, %v992_v1  ;;  %1463 = vadd.xlane.f32.xlu1 %v4410_v37  ;;  %1052 = vadd.xlane.f32.xlu0 %v4415_v11 }
 0x312   :  { %v4421_v36 = vpop.eup %3440  ;;  %v1672_v1 = vrot.slane %v1671_v7, 4 }
 0x313   :  { %3450 = vpow2.f32 %v1022_v32 }
 0x314   :  { %v4425_v13 = vpop.eup %3442  ;;  %3452 = vpow2.f32 %v1413_v5  ;;  %v1673_v63 = vadd.f32 %v1672_v1, %v1671_v7 }
 0x315   :  { %1461 = vadd.xlane.f32.xlu1 %v4421_v36  ;;  %1050 = vadd.xlane.f32.xlu0 %v4425_v13  ;;  %3454 = vpow2.f32 %v1004_v51 }
 0x316   :  { %3456 = vpow2.f32 %v1411_v25  ;;  %v1674_v5 = vrot.slane %v1673_v63, 2  ;;  %v994_v25 = vmul.f32 1.442695, %v978_v60  ;;  %v93_v50 = vpop.permute.xlu0 %92 }
 0x317   :  { %3458 = vpow2.f32 %v1002_v31  ;;  %v190_v31 = vadd.f32 %v3966_v2, %v93_v50 }
 0x318   :  { %v4433_v8 = vpop.eup %3444  ;;  %3460 = vpow2.f32 %v1409_v34  ;;  %v1675_v32 = vadd.f32 %v1674_v5, %v1673_v63 }
 0x319   :  { %v4437_v41 = vpop.eup %3446  ;;  %1056 = vadd.xlane.f32.xlu0 %v4433_v8  ;;  %3462 = vpow2.f32 %v1000_v56  ;;  %v2171_v43 = vmul.f32 %v190_v31, %v190_v31  ;;  %v1681_v56 = vstv %s2838_s16 }
 0x31a   :  { %1467 = vadd.xlane.f32.xlu1 %v4437_v41  ;;  %3464 = vpow2.f32 %v1407_v26  ;;  %v1676_v51 = vrot.slane %v1675_v32, 1 }
 0x31b   :  { %3466 = vpow2.f32 %v998_v52  ;;  %v2172_v54 = vrot.slane %v2171_v43, 4 }
 0x31c   :  { %v4443_v22 = vpop.eup %3448  ;;  %3468 = vpow2.f32 %v996_v40  ;;  %v1677_v6 = vadd.f32 %v1676_v51, %v1675_v32  ;;  %v2181_v32 = vstv %s2857_s17 }
 0x31d   :  { %3470 = vpow2.f32 %v1405_v45  ;;  %v2173_v48 = vadd.f32 %v2172_v54, %v2171_v43 }
 0x31e   :  { %1465 = vadd.xlane.f32.xlu1 %v4443_v22  ;;  %v1678_v17 = vadd.f32 1e-12, %v1677_v6  ;;  %3472 = vpow2.f32 %v994_v25 }
 0x320   :  { %v4448_v23 = vpop.eup %3450  ;;  %3474 = vrsqrt.f32 %v1678_v17 }
 0x321   :  { %v4450_v29 = vpop.eup %3452  ;;  %1054 = vadd.xlane.f32.xlu0 %v4448_v23 }
 0x322   :  { %1445 = vadd.xlane.f32.xlu1 %v4450_v29  ;;  %v4456_v27 = vpop.eup %3454 }
 0x323   :  { %v4458_v39 = vpop.eup %3456 }
 0x324   :  { %v4462_v12 = vpop.eup %3458 }
 0x325   :  { %1036 = vadd.xlane.f32.xlu0 %v4456_v27  ;;  %v4464_v0 = vpop.eup %3460 }
 0x326   :  { %1443 = vadd.xlane.f32.xlu1 %v4458_v39  ;;  %v4468_v57 = vpop.eup %3462 }
 0x327   :  { %v4470_v47 = vpop.eup %3464 }
 0x328   :  { %v4474_v62 = vpop.eup %3466 }
 0x329   :  { %1034 = vadd.xlane.f32.xlu0 %v4462_v12  ;;  %v4478_v14 = vpop.eup %3468 }
 0x32a   :  { %1441 = vadd.xlane.f32.xlu1 %v4464_v0  ;;  %v4481_v10 = vpop.eup %3470 }
 0x32b   :  { %v4489_v34 = vpop.eup %3472 }
 0x32d   :  { %1032 = vadd.xlane.f32.xlu0 %v4468_v57 }
 0x32e   :  { %1439 = vadd.xlane.f32.xlu1 %v4470_v47 }
 0x331   :  { %1030 = vadd.xlane.f32.xlu0 %v4474_v62 }
 0x335   :  { %1028 = vadd.xlane.f32.xlu0 %v4478_v14 }
 0x339   :  { %1437 = vadd.xlane.f32.xlu0 %v4481_v10 }
 0x33f   :  { %202 = vperm.xlu1 %3395, %v4316_v4   ;;  %v3475_v4 = vpop.eup %3474 }
 0x340   :  { %v1682_v46 = vmul.f32 %v3475_v4, %v1681_v56 }
 0x342   :  { %v1683_v26 = vmul.f32 %v1682_v46, %v185_v15 }
 0x34f   :  { %206 = vperm.xlu0 %3396, %v4323_v35   ;;  %v2174_v35 = vrot.slane %v2173_v48, 2 }
 0x351   :  { %v2175_v19 = vadd.f32 %v2174_v35, %v2173_v48 }
 0x353   :  { %v2176_v52 = vrot.slane %v2175_v19, 1 }
 0x355   :  { %v2177_v40 = vadd.f32 %v2176_v52, %v2175_v19 }
 0x357   :  { %v2178_v24 = vadd.f32 1e-12, %v2177_v40 }
 0x359   :  { %3476 = vrsqrt.f32 %v2178_v24 }
 0x363   :  { %1026 = vadd.xlane.f32.xlu1 %v4489_v34 }
 0x366   :  { %v3477_v5 = vpop.eup %3476 }
 0x367   :  { %v2182_v6 = vmul.f32 %v3477_v5, %v2181_v32 }
 0x369   :  { %v2183_v50 = vmul.f32 %v2182_v6, %v190_v31 }
 0x36d   :  { %1694 = vxpose.xlu0.b32.start.end [1/1] (short) %v1683_v26, 128 }
 0x378   :  { %v4492_v45 = vpop.xlane.xlu1 %1447 }
 0x380   :  { %v4494_v2 = vpop.xlane.xlu1 %1451 }
 0x382   :  { %v4496_v49 = vpop.xlane.xlu0 %1040 }
 0x384   :  { %v4498_v7 = vpop.xlane.xlu1 %1449 }
 0x386   :  { %v4500_v1 = vpop.xlane.xlu0 %1038 }
 0x38a   :  { %v1045_v63 = vpop.xlane.xlu1 %1044  ;;  %v1456_v15 = vpop.xlane.xlu0 %1455 }
 0x38e   :  { %v4502_v51 = vpop.xlane.xlu1 %1042  ;;  %v1454_v60 = vpop.xlane.xlu0 %1453 }
 0x392   :  { %v1460_v25 = vpop.xlane.xlu1 %1459  ;;  %v1049_v17 = vpop.xlane.xlu0 %1048 }
 0x396   :  { %2194 = vxpose.xlu1.b32.start.end [1/1] (short) %v2183_v50, 128  ;;  %v1458_v43 = vpop.xlane.xlu1 %1457  ;;  %v1047_v4 = vpop.xlane.xlu0 %1046 }
 0x39a   :  { %v1464_v56 = vpop.xlane.xlu1 %1463  ;;  %v1053_v54 = vpop.xlane.xlu0 %1052 }
 0x39e   :  { %v1462_v46 = vpop.xlane.xlu1 %1461  ;;  %v1051_v48 = vpop.xlane.xlu0 %1050 }
 0x3a2   :  { %v1057_v26 = vpop.xlane.xlu0 %1056 }
 0x3a3   :  { %v1468_v35 = vpop.xlane.xlu1 %1467  ;;  %3478 = vrcp.f32 %v1057_v26 }
 0x3a4   :  { %3480 = vrcp.f32 %v1468_v35 }
 0x3a5   :  { %3482 = vrcp.f32 %v1464_v56 }
 0x3a7   :  { %v1466_v19 = vpop.xlane.xlu1 %1465 }
 0x3a8   :  { %3484 = vrcp.f32 %v1466_v19 }
 0x3a9   :  { %3486 = vrcp.f32 %v1053_v54 }
 0x3aa   :  { %v1055_v52 = vpop.xlane.xlu0 %1054 }
 0x3ab   :  { %v4504_v40 = vpop.xlane.xlu1 %1445  ;;  %3488 = vrcp.f32 %v1055_v52 }
 0x3ac   :  { %3490 = vrcp.f32 %v1462_v46 }
 0x3ad   :  { %3492 = vrcp.f32 %v1051_v48 }
 0x3ae   :  { %v4506_v31 = vpop.xlane.xlu0 %1036  ;;  %3494 = vrcp.f32 %v1460_v25 }
 0x3af   :  { %v4508_v24 = vpop.xlane.xlu1 %1443  ;;  %3496 = vrcp.f32 %v1049_v17 }
 0x3b0   :  { %v3479_v5 = vpop.eup %3478  ;;  %3498 = vrcp.f32 %v1458_v43 }
 0x3b1   :  { %v3481_v32 = vpop.eup %3480  ;;  %v1089_v6 = vmul.f32 %v3479_v5, %v4433_v8  ;;  %3500 = vrcp.f32 %v1047_v4 }
 0x3b2   :  { %v4511_v50 = vpop.xlane.xlu0 %1034  ;;  %v1500_v56 = vmul.f32 %v3481_v32, %v4437_v41  ;;  %v3483_v26 = vpop.eup %3482  ;;  %3502 = vrcp.f32 %v1456_v15 }
 0x3b3   :  { %v4514_v54 = vpop.xlane.xlu1 %1441  ;;  %3210 = vmatprep.subr.mxu0 %v1089_v6  ;;  %v1498_v41 = vmul.f32 %v3483_v26, %v4410_v37  ;;  %3504 = vrcp.f32 %v1045_v63 }
 0x3b4   :  { %3172 = vmatprep.subr.mxu1 %v1500_v56  ;;  %3211 = vmatpush3.xpose.msra.mxu0 %v1089_v6  ;;  %3506 = vrcp.f32 %v1454_v60 }
 0x3b5   :  { %v3485_v46 = vpop.eup %3484  ;;  %3173 = vmatpush3.xpose.msra.mxu1 %v1500_v56  ;;  %3508 = vrcp.f32 %v4502_v51 }
 0x3b6   :  { %v4516_v48 = vpop.xlane.xlu0 %1032  ;;  %v1499_v25 = vmul.f32 %v3485_v46, %v4443_v22  ;;  %v3487_v35 = vpop.eup %3486  ;;  %3510 = vrcp.f32 %v4494_v2 }
 0x3b7   :  { %v4519_v8 = vpop.xlane.xlu1 %1439  ;;  %v1087_v22 = vmul.f32 %v3487_v35, %v4415_v11  ;;  %3512 = vrcp.f32 %v4496_v49 }
 0x3b8   :  { %v3489_v19 = vpop.eup %3488  ;;  %3174 = vmatprep.subr.mxu1 %v1499_v25  ;;  %3514 = vrcp.f32 %v4498_v7 }
 0x3b9   :  { %v3491_v17 = vpop.eup %3490  ;;  %3175 = vmatpush3.xpose.msra.mxu1 %v1499_v25  ;;  %v1088_v43 = vmul.f32 %v3489_v19, %v4448_v23  ;;  %3516 = vrcp.f32 %v4500_v1 }
 0x3ba   :  { %3176 = vmatprep.subr.mxu1 %v1498_v41  ;;  %v4523_v52 = vpop.xlane.xlu0 %1030  ;;  %v3493_v4 = vpop.eup %3492  ;;  %v1497_v37 = vmul.f32 %v3491_v17, %v4421_v36  ;;  %3518 = vrcp.f32 %v4492_v45 }
 0x3bb   :  { %v203_v5 = vpop.permute.xlu1 %202  ;;  %3212 = vmatprep.subr.mxu0 %v1088_v43  ;;  %v3495_v15 = vpop.eup %3494  ;;  %v1086_v23 = vmul.f32 %v3493_v4, %v4425_v13  ;;  %3520 = vrcp.f32 %v4506_v31 }
 0x3bc   :  { %v4527_v32 = vadd.f32 %v4001_v30, %v203_v5  ;;  %3213 = vmatpush3.xpose.msra.mxu0 %v1088_v43  ;;  %v3497_v63 = vpop.eup %3496  ;;  %v1496_v30 = vmul.f32 %v3495_v15, %v4393_v44  ;;  %3522 = vrcp.f32 %v4504_v40 }
 0x3bd   :  { %3177 = vmatpush3.xpose.msra.mxu1 %v1498_v41  ;;  %3214 = vmatprep.subr.mxu0 %v1087_v22  ;;  %v3499_v36 = vpop.eup %3498  ;;  %v1085_v51 = vmul.f32 %v3497_v63, %v4397_v53  ;;  %3524 = vrcp.f32 %v4511_v50 }
 0x3be   :  { %3178 = vmatprep.subr.mxu1 %v1497_v37  ;;  %v1684_v11 = vmul.f32 %v4527_v32, %v4527_v32  ;;  %v4535_v60 = vpop.xlane.xlu0 %1028  ;;  %v3501_v13 = vpop.eup %3500  ;;  %v1495_v6 = vmul.f32 %v3499_v36, %v4401_v3  ;;  %3526 = vrcp.f32 %v4508_v24 }
 0x3bf   :  { %v3503_v56 = vpop.eup %3502  ;;  %v1084_v44 = vmul.f32 %v3501_v13, %v4404_v59  ;;  %3528 = vrcp.f32 %v4516_v48 }
 0x3c0   :  { %3215 = vmatpush3.xpose.msra.mxu0 %v1087_v22  ;;  %v1685_v2 = vrot.slane %v1684_v11, 4  ;;  %v3505_v49 = vpop.eup %3504  ;;  %v1494_v7 = vmul.f32 %v3503_v56, %v4378_v16  ;;  %3530 = vrcp.f32 %v4514_v54 }
 0x3c1   :  { %3179 = vmatpush3.xpose.msra.mxu1 %v1497_v37  ;;  %3216 = vmatprep.subr.mxu0 %v1086_v23  ;;  %v3507_v46 = vpop.eup %3506  ;;  %v1083_v1 = vmul.f32 %v3505_v49, %v4381_v18  ;;  %3532 = vrcp.f32 %v4523_v52 }
 0x3c2   :  { %3180 = vmatprep.subr.mxu1 %v1496_v30  ;;  %v4542_v26 = vpop.xlane.xlu0 %1437  ;;  %v1686_v53 = vadd.f32 %v1685_v2, %v1684_v11  ;;  %v3509_v59 = vpop.eup %3508  ;;  %v1493_v35 = vmul.f32 %v3507_v46, %v4386_v33  ;;  %3534 = vrcp.f32 %v4519_v8 }
 0x3c3   :  { %v3511_v16 = vpop.eup %3510  ;;  %3536 = vrcp.f32 %v4535_v60 }
 0x3c4   :  { %3217 = vmatpush3.xpose.msra.mxu0 %v1086_v23  ;;  %v1687_v45 = vrot.slane %v1686_v53, 2  ;;  %v3513_v31 = vpop.eup %3512  ;;  %v1492_v41 = vmul.f32 %v3511_v16, %v4362_v9  ;;  %3538 = vrcp.f32 %v4542_v26 }
 0x3c5   :  { %3181 = vmatpush3.xpose.msra.mxu1 %v1496_v30  ;;  %3218 = vmatprep.subr.mxu0 %v1085_v51  ;;  %v3515_v33 = vpop.eup %3514  ;;  %v1081_v17 = vmul.f32 %v3513_v31, %v4366_v55 }
 0x3c6   :  { %3182 = vmatprep.subr.mxu1 %v1495_v6  ;;  %v1688_v18 = vadd.f32 %v1687_v45, %v1686_v53  ;;  %v3517_v43 = vpop.eup %3516  ;;  %v1491_v24 = vmul.f32 %v3515_v33, %v4370_v38  ;;  %v5110_v53 = vld [vmem:[#allocation14_spill] sm:$0xff] }
 0x3c7   :  { %v3519_v5 = vpop.eup %3518  ;;  %v1080_v9 = vmul.f32 %v3517_v43, %v4374_v21 }
 0x3c8   :  { %3219 = vmatpush3.xpose.msra.mxu0 %v1085_v51  ;;  %v3521_v22 = vpop.eup %3520  ;;  %v1490_v54 = vmul.f32 %v3519_v5, %v4355_v61 }
 0x3c9   :  { %3183 = vmatpush3.xpose.msra.mxu1 %v1495_v6  ;;  %3220 = vmatprep.subr.mxu0 %v1084_v44  ;;  %v3523_v4 = vpop.eup %3522  ;;  %v1079_v38 = vmul.f32 %v3521_v22, %v4456_v27 }
 0x3ca   :  { %3184 = vmatprep.subr.mxu1 %v1494_v7  ;;  %v207_v3 = vpop.permute.xlu0 %206  ;;  %v3525_v37 = vpop.eup %3524  ;;  %v1489_v8 = vmul.f32 %v3523_v4, %v4450_v29 }
 0x3cb   :  { %v4550_v25 = vadd.f32 %v3997_v28, %v207_v3  ;;  %v1082_v28 = vmul.f32 %v3509_v59, %v4389_v42  ;;  %v1689_v42 = vrot.slane %v1688_v18, 1  ;;  %v3527_v15 = vpop.eup %3526  ;;  %v1078_v61 = vmul.f32 %v3525_v37, %v4462_v12  ;;  %v5112_v59 = vld [vmem:[#allocation7_spill] sm:$0xff] }
 0x3cc   :  { %3221 = vmatpush3.xpose.msra.mxu0 %v1084_v44  ;;  %v3529_v23 = vpop.eup %3528  ;;  %v1488_v27 = vmul.f32 %v3527_v15, %v4458_v39 }
 0x3cd   :  { %v2184_v19 = vmul.f32 %v4550_v25, %v4550_v25  ;;  %3185 = vmatpush3.xpose.msra.mxu1 %v1494_v7  ;;  %3222 = vmatprep.subr.mxu0 %v1083_v1  ;;  %v1690_v55 = vadd.f32 %v1689_v42, %v1688_v18  ;;  %v3531_v11 = vpop.eup %3530  ;;  %v1077_v60 = vmul.f32 %v3529_v23, %v4468_v57 }
 0x3ce   :  { %3186 = vmatprep.subr.mxu1 %v1493_v35  ;;  %v3533_v30 = vpop.eup %3532  ;;  %v1487_v36 = vmul.f32 %v3531_v11, %v4464_v0  ;;  %v5116_v11 = vld [vmem:[#allocation16_spill] sm:$0xff] }
 0x3cf   :  { %v2185_v40 = vrot.slane %v2184_v19, 4  ;;  %v1691_v52 = vadd.f32 1e-12, %v1690_v55  ;;  %v3535_v51 = vpop.eup %3534  ;;  %v1076_v12 = vmul.f32 %v3533_v30, %v4474_v62 }
 0x3d0   :  { %3223 = vmatpush3.xpose.msra.mxu0 %v1083_v1  ;;  %v3537_v13 = vpop.eup %3536  ;;  %v1486_v39 = vmul.f32 %v3535_v51, %v4470_v47  ;;  %v5117_v51 = vld [vmem:[#allocation18_spill] sm:$0xff] }
 0x3d1   :  { %3187 = vmatpush3.xpose.msra.mxu1 %v1493_v35  ;;  %3224 = vmatprep.subr.mxu0 %v1082_v28  ;;  %v2186_v50 = vadd.f32 %v2185_v40, %v2184_v19  ;;  %3540 = vrsqrt.f32 %v1691_v52  ;;  %v3539_v6 = vpop.eup %3538  ;;  %v1075_v56 = vmul.f32 %v3537_v13, %v4478_v14 }
 0x3d2   :  { %3188 = vmatprep.subr.mxu1 %v1492_v41  ;;  %v1485_v26 = vmul.f32 %v3539_v6, %v4481_v10 }
 0x3d3   :  { %v2187_v48 = vrot.slane %v2186_v50, 2 }
 0x3d4   :  { %3225 = vmatpush3.xpose.msra.mxu0 %v1082_v28 }
 0x3d5   :  { %3189 = vmatpush3.xpose.msra.mxu1 %v1492_v41  ;;  %3226 = vmatprep.subr.mxu0 %v1081_v17  ;;  %v2188_v21 = vadd.f32 %v2187_v48, %v2186_v50 }
 0x3d6   :  { %3190 = vmatprep.subr.mxu1 %v1491_v24 }
 0x3d7   :  { %v2189_v63 = vrot.slane %v2188_v21, 1 }
 0x3d8   :  { %3227 = vmatpush3.xpose.msra.mxu0 %v1081_v17 }
 0x3d9   :  { %3191 = vmatpush3.xpose.msra.mxu1 %v1491_v24  ;;  %3228 = vmatprep.subr.mxu0 %v1080_v9  ;;  %v2190_v29 = vadd.f32 %v2189_v63, %v2188_v21  ;;  %v5114_v24 = vld [vmem:[#allocation9_spill] sm:$0xff] }
 0x3da   :  { %3192 = vmatprep.subr.mxu1 %v1490_v54  ;;  %v5115_v21 = vld [vmem:[#allocation13_spill] sm:$0xff] }
 0x3db   :  { %v2191_v2 = vadd.f32 1e-12, %v2190_v29  ;;  %v4633_v29 = vld [vmem:[%s5040_s4 + $0x20] sm:$0xff] }
 0x3dc   :  { %3229 = vmatpush3.xpose.msra.mxu0 %v1080_v9 }
 0x3dd   :  { %3193 = vmatpush3.xpose.msra.mxu1 %v1490_v54  ;;  %3230 = vmatprep.subr.mxu0 %v1079_v38  ;;  %3542 = vrsqrt.f32 %v2191_v2 }
 0x3de   :  { %3194 = vmatprep.subr.mxu1 %v1489_v8  ;;  %v3541_v44 = vpop.eup %3540 }
 0x3df   :  { %v1693_v47 = vmul.f32 %v3541_v44, %v4527_v32  ;;  %v5119_v44 = vld [vmem:[#allocation20_spill] sm:$0xff] }
 0x3e0   :  { %3231 = vmatpush3.xpose.msra.mxu0 %v1079_v38 }
 0x3e1   :  { %3195 = vmatpush3.xpose.msra.mxu1 %v1489_v8  ;;  %3232 = vmatprep.subr.mxu0 %v1078_v61 }
 0x3e2   :  { %3196 = vmatprep.subr.mxu1 %v1488_v27 }
 0x3e4   :  { %3233 = vmatpush3.xpose.msra.mxu0 %v1078_v61 }
 0x3e5   :  { %3197 = vmatpush3.xpose.msra.mxu1 %v1488_v27  ;;  %3234 = vmatprep.subr.mxu0 %v1077_v60  ;;  %v4627_v27 = vld [vmem:[%s5040_s4 + $0x28] sm:$0xff] }
 0x3e6   :  { %3198 = vmatprep.subr.mxu1 %v1487_v36 }
 0x3e8   :  { %3235 = vmatpush3.xpose.msra.mxu0 %v1077_v60 }
 0x3e9   :  { %3199 = vmatpush3.xpose.msra.mxu1 %v1487_v36  ;;  %3236 = vmatprep.subr.mxu0 %v1076_v12  ;;  %v1710_v57 = vpop.trf.xlu0 }
 0x3ea   :  { %3200 = vmatprep.subr.mxu1 %v1486_v39  ;;  %v3543_v10 = vpop.eup %3542 }
 0x3eb   :  { %v2193_v32 = vmul.f32 %v3543_v10, %v4550_v25  ;;  %v5120_v10 = vld [vmem:[#allocation21_spill] sm:$0xff] }
 0x3ec   :  { %v1027_v0 = vpop.xlane.xlu1 %1026  ;;  %3237 = vmatpush3.xpose.msra.mxu0 %v1076_v12 }
 0x3ed   :  { %3544 = vrcp.f32 %v1027_v0  ;;  %3201 = vmatpush3.xpose.msra.mxu1 %v1486_v39  ;;  %3238 = vmatprep.subr.mxu0 %v1075_v56  ;;  %v1711_v62 = vpop.trf.xlu0  ;;  %v5118_v39 = vld [vmem:[#allocation19_spill] sm:$0xff] }
 0x3ee   :  { %3202 = vmatprep.subr.mxu1 %v1485_v26 }
 0x3f0   :  { %3239 = vmatpush3.xpose.msra.mxu0 %v1075_v56 }
 0x3f1   :  { %3203 = vmatpush3.xpose.msra.mxu1 %v1485_v26  ;;  %v1712_v49 = vpop.trf.xlu0 }
 0x3f2   :  { %3248 = vmatprep.subr.mxu1 %v1693_v47 }
 0x3f4   :  { %3205 = vmatmul.mubr.f32.vlgmr.msra.gmra.mxu1 %v3986_v20  ;;  %v5111_v20 = vld [vmem:[#allocation5_spill] sm:$0xff] }
 0x3f5   :  { %3207 = vmatprep.mubr.f32.mxu1 %v4044_v58  ;;  %3249 = vmatpush3.msra.mxu1 %v1693_v47  ;;  %v1713_v14 = vpop.trf.xlu0 }
 0x3f8   :  { %3208 = vmatmul.mubr.f32.gmra.mxu1 %v5110_v53 }
 0x3f9   :  { %v1714_v7 = vpop.trf.xlu0  ;;  %3250 = vmatprep.mubr.msk.f32.mxu1 %vm734_vm1, %v1710_v57 }
 0x3fa   :  { %v3545_v46 = vpop.eup %3544 }
 0x3fb   :  { %v1074_v3 = vmul.f32 %v3545_v46, %v4489_v34  ;;  %v5113_v34 = vld [vmem:[#allocation6_spill] sm:$0xff] }
 0x3fc   :  { %3251 = vmatmul.mubr.msk.f32.vlgmr.msra.gmra.mxu1 %vm734_vm1, %v1711_v62 }
 0x3fd   :  { %3240 = vmatprep.subr.mxu0 %v1074_v3  ;;  %v1715_v1 = vpop.trf.xlu0  ;;  %3253 = vmatprep.mubr.msk.f32.mxu1 %vm734_vm1, %v1712_v49 }
 0x3fe   :  { %3241 = vmatpush3.xpose.msra.mxu0 %v1074_v3 }
 0x3ff   :  { %3312 = vmatprep.subr.mxu0 %v2193_v32 }
 0x400   :  { %3254 = vmatmul.mubr.msk.f32.gmra.mxu1 %vm734_vm1, %v1713_v14 }
 0x401   :  { %3243 = vmatmul.mubr.f32.vlgmr.msra.gmra.mxu0 %v5111_v20  ;;  %v1716_v58 = vpop.trf.xlu0  ;;  %3256 = vmatprep.mubr.msk.f32.mxu1 %vm734_vm1, %v1714_v7  ;;  %v5121_v20 = vld [vmem:[#allocation22_spill] sm:$0xff] }
 0x402   :  { %3245 = vmatprep.mubr.f32.mxu0 %v5112_v59  ;;  %3313 = vmatpush3.msra.mxu0 %v2193_v32 }
 0x404   :  { %3257 = vmatmul.mubr.msk.f32.gmra.mxu1 %vm734_vm1, %v1715_v1 }
 0x405   :  { %3246 = vmatmul.mubr.f32.gmra.mxu0 %v5113_v34  ;;  %v1717_v25 = vpop.trf.xlu0  ;;  %3259 = vmatprep.mubr.msk.f32.mxu1 %vm734_vm1, %v1716_v58 }
 0x408   :  { %3260 = vmatmul.mubr.msk.f32.gmra.mxu1 %vm734_vm1, %v1717_v25 }
 0x409   :  { %v1718_v45 = vpop.trf.xlu0 }
 0x40a   :  { %3262 = vmatprep.mubr.msk.f32.mxu1 %vm734_vm1, %v1718_v45 }
 0x40d   :  { %v1719_v35 = vpop.trf.xlu0 }
 0x40e   :  { %3263 = vmatmul.mubr.msk.f32.gmra.mxu1 %vm734_vm1, %v1719_v35  ;;  %v5122_v35 = vld [vmem:[#allocation23_spill] sm:$0xff] }
 0x411   :  { %v1720_v16 = vpop.trf.xlu0 }
 0x412   :  { %v2210_v19 = vpop.trf.xlu1  ;;  %3265 = vmatprep.mubr.msk.f32.mxu1 %vm734_vm1, %v1720_v16 }
 0x413   :  { %3314 = vmatprep.mubr.msk.f32.mxu0 %vm734_vm1, %v2210_v19 }
 0x415   :  { %v1721_v28 = vpop.trf.xlu0 }
 0x416   :  { %v2211_v31 = vpop.trf.xlu1  ;;  %3266 = vmatmul.mubr.msk.f32.gmra.mxu1 %vm734_vm1, %v1721_v28 }
 0x417   :  { %3315 = vmatmul.mubr.msk.f32.vlgmr.msra.gmra.mxu0 %vm734_vm1, %v2211_v31  ;;  %v5123_v31 = vld [vmem:[#allocation24_spill] sm:$0xff] }
 0x419   :  { %v1722_v18 = vpop.trf.xlu0 }
 0x41a   :  { %v2212_v40 = vpop.trf.xlu1  ;;  %3268 = vmatprep.mubr.msk.f32.mxu1 %vm734_vm1, %v1722_v18 }
 0x41b   :  { %3317 = vmatprep.mubr.msk.f32.mxu0 %vm734_vm1, %v2212_v40 }
 0x41d   :  { %v1723_v41 = vpop.trf.xlu0 }
 0x41e   :  { %v2213_v33 = vpop.trf.xlu1  ;;  %3269 = vmatmul.mubr.msk.f32.gmra.mxu1 %vm734_vm1, %v1723_v41 }
 0x41f   :  { %3318 = vmatmul.mubr.msk.f32.gmra.mxu0 %vm734_vm1, %v2213_v33 }
 0x421   :  { %v1724_v17 = vpop.trf.xlu0 }
 0x422   :  { %v2214_v43 = vpop.trf.xlu1  ;;  %3271 = vmatprep.mubr.msk.f32.mxu1 %vm734_vm1, %v1724_v17 }
 0x423   :  { %3320 = vmatprep.mubr.msk.f32.mxu0 %vm734_vm1, %v2214_v43 }
 0x425   :  { %v1725_v42 = vpop.trf.xlu0 }
 0x426   :  { %v2215_v50 = vpop.trf.xlu1  ;;  %3272 = vmatmul.mubr.msk.f32.gmra.mxu1 %vm734_vm1, %v1725_v42 }
 0x427   :  { %3321 = vmatmul.mubr.msk.f32.gmra.mxu0 %vm734_vm1, %v2215_v50  ;;  %3306 = vmatprep.mubr.f32.mxu1 %v5114_v24 }
 0x42a   :  { %v2216_v5 = vpop.trf.xlu1 }
 0x42b   :  { %3323 = vmatprep.mubr.msk.f32.mxu0 %vm734_vm1, %v2216_v5 }
 0x42e   :  { %v2217_v9 = vpop.trf.xlu1 }
 0x42f   :  { %3324 = vmatmul.mubr.msk.f32.gmra.mxu0 %vm734_vm1, %v2217_v9  ;;  %v5124_v9 = vld [vmem:[#allocation31_spill] sm:$0xff] }
 0x432   :  { %v2218_v22 = vpop.trf.xlu1 }
 0x433   :  { %3326 = vmatprep.mubr.msk.f32.mxu0 %vm734_vm1, %v2218_v22 }
 0x436   :  { %v2219_v55 = vpop.trf.xlu1 }
 0x437   :  { %3327 = vmatmul.mubr.msk.f32.gmra.mxu0 %vm734_vm1, %v2219_v55 }
 0x43a   :  { %v2220_v48 = vpop.trf.xlu1 }
 0x43b   :  { %3329 = vmatprep.mubr.msk.f32.mxu0 %vm734_vm1, %v2220_v48  ;;  %v5125_v48 = vld [vmem:[#allocation29_spill] sm:$0xff] }
 0x43e   :  { %v2221_v54 = vpop.trf.xlu1 }
 0x43f   :  { %3330 = vmatmul.mubr.msk.f32.gmra.mxu0 %vm734_vm1, %v2221_v54 }
 0x442   :  { %v2222_v4 = vpop.trf.xlu1 }
 0x443   :  { %3332 = vmatprep.mubr.msk.f32.mxu0 %vm734_vm1, %v2222_v4 }
 0x446   :  { %v2223_v38 = vpop.trf.xlu1 }
 0x447   :  { %3333 = vmatmul.mubr.msk.f32.gmra.mxu0 %vm734_vm1, %v2223_v38 }
 0x44a   :  { %v2224_v37 = vpop.trf.xlu1 }
 0x44b   :  { %3335 = vmatprep.mubr.msk.f32.mxu0 %vm734_vm1, %v2224_v37 }
 0x44e   :  { %v2225_v52 = vpop.trf.xlu1 }
 0x44f   :  { %3336 = vmatmul.mubr.msk.f32.gmra.mxu0 %vm734_vm1, %v2225_v52 }
 0x450   :  { %3370 = vmatprep.mubr.f32.mxu0 %v5115_v21  ;;  %v5126_v21 = vld [vmem:[#allocation32_spill] sm:$0xff] }
 0x4b4   :  { %v3206_v8 = vpop.f32.mrf.mxu1 }
 0x4b6   :  { %v1567_v15 = vpop.f32.mrf.mxu1 }
 0x4b8   :  { %v3209_v61 = vpop.f32.mrf.mxu1 }
 0x4ba   :  { %v1577_v23 = vpop.f32.mrf.mxu1 }
 0x4bc   :  { %v3252_v63 = vpop.f32.mrf.mxu1 }
 0x4bd   :  { %v1846_v60 = vadd.f32 %v3252_v63, %v5116_v11 }
 0x4be   :  { %v1840_v30 = vpop.f32.mrf.mxu1 }
 0x4bf   :  { %v4636_v36 = vadd.f32 %v4627_v27, %v1846_v60  ;;  %v1841_v12 = vadd.f32 %v1840_v30, %v5117_v51 }
 0x4c0   :  { %v3255_v13 = vpop.f32.mrf.mxu1 }
 0x4c1   :  { %v4640_v2 = vadd.f32 %v4633_v29, %v1841_v12  ;;  %v1856_v6 = vadd.f32 %v3255_v13, %v5118_v39  ;;  %v3244_v57 = vpop.f32.mrf.mxu0 }
 0x4c2   :  { %v4643_v56 = vadd.f32 %v3244_v57, %v3206_v8  ;;  %v1850_v0 = vpop.f32.mrf.mxu1 }
 0x4c3   :  { %v4646_v26 = vadd.f32 %v4627_v27, %v1856_v6  ;;  %v1851_v62 = vadd.f32 %v1850_v0, %v5119_v44  ;;  %v1652_v47 = vpop.f32.mrf.mxu0 }
 0x4c4   :  { %v4649_v49 = vadd.f32 %v1652_v47, %v1567_v15  ;;  %v3258_v14 = vpop.f32.mrf.mxu1 }
 0x4c5   :  { %v4652_v53 = vadd.f32 %v4633_v29, %v1851_v62  ;;  %v1866_v7 = vadd.f32 %v3258_v14, %v5120_v10  ;;  %v3247_v46 = vpop.f32.mrf.mxu0 }
 0x4c6   :  { %v4655_v3 = vadd.f32 %v3247_v46, %v3209_v61  ;;  %v1860_v32 = vpop.f32.mrf.mxu1 }
 0x4c7   :  { %v4658_v1 = vadd.f32 %v4627_v27, %v1866_v7  ;;  %v1861_v58 = vadd.f32 %v1860_v32, %v5121_v20  ;;  %v1662_v59 = vpop.f32.mrf.mxu0  ;;  %v4705_v7 = vld [vmem:[%s5040_s4 + $0x38] sm:$0xff]  ;;  %v5127_v32 = vld [vmem:[#allocation30_spill] sm:$0xff] }
 0x4c8   :  { %v4661_v34 = vadd.f32 %v1662_v59, %v1577_v23  ;;  %v3261_v25 = vpop.f32.mrf.mxu1 }
 0x4c9   :  { %v4664_v45 = vadd.f32 %v4633_v29, %v1861_v58  ;;  %v1876_v16 = vadd.f32 %v3261_v25, %v5122_v35 }
 0x4ca   :  { %v1870_v19 = vpop.f32.mrf.mxu1 }
 0x4cb   :  { %v4668_v28 = vadd.f32 %v4627_v27, %v1876_v16  ;;  %v1871_v18 = vadd.f32 %v1870_v19, %v5123_v31  ;;  %v4715_v16 = vld [vmem:[%s5040_s4 + $0x30] sm:$0xff] }
 0x4cd   :  { %v4672_v40 = vadd.f32 %v4633_v29, %v1871_v18 }
 0x4ce   :  { %v4674_v41 = vpop.f32.mrf.mxu1 }
 0x4d0   :  { %v4676_v33 = vpop.f32.mrf.mxu1 }
 0x4d6   :  { %v3267_v17 = vpop.f32.mrf.mxu1 }
 0x4d7   :  { %v4678_v24 = vpop.f32.mrf.mxu0 }
 0x4d8   :  { %v1890_v43 = vpop.f32.mrf.mxu1 }
 0x4d9   :  { %v4681_v55 = vpop.f32.mrf.mxu0 }
 0x4de   :  { %v3270_v42 = vpop.f32.mrf.mxu1 }
 0x4df   :  { %v1906_v54 = vadd.f32 %v3270_v42, %v5125_v48  ;;  %v4687_v37 = vpop.f32.mrf.mxu0  ;;  %v5128_v42 = vld [vmem:[#allocation27_spill] sm:$0xff] }
 0x4e0   :  { %v1900_v50 = vpop.f32.mrf.mxu1 }
 0x4e1   :  { %v4691_v52 = vadd.f32 %v4627_v27, %v1906_v54  ;;  %v4694_v15 = vpop.f32.mrf.mxu0 }
 0x4e6   :  { %v3273_v5 = vpop.f32.mrf.mxu1 }
 0x4e7   :  { %v1916_v22 = vadd.f32 %v3273_v5, %v5124_v9  ;;  %v3322_v61 = vpop.f32.mrf.mxu0 }
 0x4e8   :  { %v1910_v38 = vpop.f32.mrf.mxu1 }
 0x4e9   :  { %v4685_v4 = vadd.f32 %v4627_v27, %v1916_v22  ;;  %v1911_v8 = vadd.f32 %v1910_v38, %v5126_v21  ;;  %v2360_v63 = vpop.f32.mrf.mxu0  ;;  %v1901_v22 = vadd.f32 %v1900_v50, %v5127_v32  ;;  %v5129_v38 = vld [vmem:[#allocation28_spill] sm:$0xff]  ;;  %v5130_v50 = vld [vmem:[#allocation25_spill] sm:$0xff] }
 0x4eb   :  { %1968 = vmax.xlane.f32.xlu0 %v4685_v4  ;;  %v4698_v23 = vadd.f32 %v4633_v29, %v1911_v8  ;;  %v1896_v8 = vadd.f32 %v3267_v17, %v5128_v42 }
 0x4ef   :  { %1964 = vmax.xlane.f32.xlu0 %v4691_v52  ;;  %v3325_v60 = vpop.f32.mrf.mxu0 }
 0x4f1   :  { %v2370_v30 = vpop.f32.mrf.mxu0 }
 0x4f3   :  { %1966 = vmax.xlane.f32.xlu0 %v4698_v23 }
 0x4f7   :  { %v3328_v12 = vpop.f32.mrf.mxu0 }
 0x4f9   :  { %v2380_v13 = vpop.f32.mrf.mxu0 }
 0x4ff   :  { %v3331_v6 = vpop.f32.mrf.mxu0 }
 0x500   :  { %v2396_v5 = vadd.f32 %v3331_v6, %v5128_v42  ;;  %v4739_v6 = vadd.f32 %v4633_v29, %v1901_v22 }
 0x501   :  { %v2390_v57 = vpop.f32.mrf.mxu0 }
 0x507   :  { %v3334_v0 = vpop.f32.mrf.mxu0 }
 0x508   :  { %v2406_v19 = vadd.f32 %v3334_v0, %v5125_v48  ;;  %v4733_v48 = vadd.f32 %v4705_v7, %v2396_v5  ;;  %v2386_v0 = vadd.f32 %v3328_v12, %v5130_v50  ;;  %v1886_v12 = vadd.f32 %v4674_v41, %v5130_v50 }
 0x509   :  { %v2400_v62 = vpop.f32.mrf.mxu0 }
 0x50a   :  { %v2401_v58 = vadd.f32 %v2400_v62, %v5127_v32  ;;  %v4729_v54 = vadd.f32 %v4705_v7, %v2406_v19  ;;  %v4753_v17 = vadd.f32 %v4705_v7, %v2386_v0  ;;  %v2371_v19 = vadd.f32 %v2370_v30, %v5123_v31 }
 0x50b   :  { %v2361_v31 = vadd.f32 %v2360_v63, %v5121_v20  ;;  %v2351_v20 = vadd.f32 %v4694_v15, %v5119_v44  ;;  %v2341_v44 = vadd.f32 %v4681_v55, %v5117_v51 }
 0x50d   :  { %v4824_v15 = vadd.f32 %v4715_v16, %v2341_v44 }
 0x50f   :  { %v3337_v47 = vpop.f32.mrf.mxu0 }
 0x510   :  { %v2416_v14 = vadd.f32 %v3337_v47, %v5124_v9  ;;  %v4724_v9 = vadd.f32 %v4715_v16, %v2401_v58  ;;  %v4748_v47 = vadd.f32 %v4627_v27, %v1896_v8  ;;  %v2376_v58 = vadd.f32 %v3325_v60, %v5122_v35 }
 0x511   :  { %v2410_v46 = vpop.f32.mrf.mxu0  ;;  %v4785_v60 = vadd.f32 %v4715_v16, %v2371_v19 }
 0x512   :  { %v4709_v59 = vadd.f32 %v4705_v7, %v2416_v14  ;;  %v2411_v25 = vadd.f32 %v2410_v46, %v5126_v21  ;;  %v2391_v21 = vadd.f32 %v2390_v57, %v5129_v38  ;;  %v1891_v57 = vadd.f32 %v1890_v43, %v5129_v38  ;;  %v5131_v14 = vld [vmem:[#allocation26_spill] sm:$0xff] }
 0x513   :  { %v2381_v46 = vadd.f32 %v2380_v13, %v5131_v14  ;;  %v1881_v13 = vadd.f32 %v4676_v33, %v5131_v14  ;;  %v4775_v41 = vadd.f32 %v4705_v7, %v2376_v58 }
 0x514   :  { %v4719_v18 = vadd.f32 %v4715_v16, %v2411_v25  ;;  %2468 = vmax.xlane.f32.xlu1 %v4709_v59  ;;  %v4744_v62 = vadd.f32 %v4715_v16, %v2391_v21  ;;  %v4760_v32 = vadd.f32 %v4633_v29, %v1891_v57  ;;  %v4769_v25 = vadd.f32 %v4627_v27, %v1886_v12 }
 0x515   :  { %v4765_v43 = vadd.f32 %v4715_v16, %v2381_v46  ;;  %v4780_v35 = vadd.f32 %v4633_v29, %v1881_v13  ;;  %v2366_v27 = vadd.f32 %v3322_v61, %v5120_v10  ;;  %v2356_v29 = vadd.f32 %v4687_v37, %v5118_v39 }
 0x516   :  { %2466 = vmax.xlane.f32.xlu0 %v4719_v18  ;;  %v4798_v10 = vadd.f32 %v4715_v16, %v2361_v31  ;;  %v2346_v39 = vadd.f32 %v4678_v24, %v5116_v11  ;;  %v4812_v37 = vadd.f32 %v4715_v16, %v2351_v20 }
 0x517   :  { %v4790_v33 = vadd.f32 %v4705_v7, %v2366_v27  ;;  %v4803_v61 = vadd.f32 %v4705_v7, %v2356_v29 }
 0x518   :  { %2462 = vmax.xlane.f32.xlu1 %v4724_v9  ;;  %v4817_v63 = vadd.f32 %v4705_v7, %v2346_v39 }
 0x51a   :  { %2464 = vmax.xlane.f32.xlu0 %v4729_v54 }
 0x51c   :  { %2460 = vmax.xlane.f32.xlu1 %v4733_v48 }
 0x51e   :  { %1962 = vmax.xlane.f32.xlu0 %v4739_v6 }
 0x520   :  { %2458 = vmax.xlane.f32.xlu1 %v4744_v62 }
 0x522   :  { %1960 = vmax.xlane.f32.xlu0 %v4748_v47 }
 0x524   :  { %2456 = vmax.xlane.f32.xlu1 %v4753_v17 }
 0x526   :  { %1958 = vmax.xlane.f32.xlu0 %v4760_v32 }
 0x528   :  { %2454 = vmax.xlane.f32.xlu1 %v4765_v43 }
 0x52a   :  { %1956 = vmax.xlane.f32.xlu0 %v4769_v25 }
 0x52c   :  { %2452 = vmax.xlane.f32.xlu1 %v4775_v41 }
 0x52e   :  { %1954 = vmax.xlane.f32.xlu0 %v4780_v35 }
 0x530   :  { %2450 = vmax.xlane.f32.xlu1 %v4785_v60 }
 0x532   :  { %1952 = vmax.xlane.f32.xlu0 %v4668_v28 }
 0x534   :  { %2448 = vmax.xlane.f32.xlu1 %v4790_v33 }
 0x536   :  { %1950 = vmax.xlane.f32.xlu0 %v4672_v40 }
 0x538   :  { %2446 = vmax.xlane.f32.xlu1 %v4798_v10 }
 0x53a   :  { %1948 = vmax.xlane.f32.xlu0 %v4658_v1 }
 0x53c   :  { %2444 = vmax.xlane.f32.xlu1 %v4803_v61 }
 0x53e   :  { %1946 = vmax.xlane.f32.xlu0 %v4664_v45 }
 0x540   :  { %2442 = vmax.xlane.f32.xlu1 %v4812_v37 }
 0x542   :  { %1944 = vmax.xlane.f32.xlu0 %v4646_v26 }
 0x544   :  { %2440 = vmax.xlane.f32.xlu1 %v4817_v63 }
 0x546   :  { %1942 = vmax.xlane.f32.xlu0 %v4652_v53 }
 0x548   :  { %2438 = vmax.xlane.f32.xlu1 %v4824_v15 }
 0x54a   :  { %1940 = vmax.xlane.f32.xlu0 %v4636_v36 }
 0x54e   :  { %1938 = vmax.xlane.f32.xlu0 %v4640_v2 }
 0x574   :  { %v1969_v11 = vpop.xlane.xlu0 %1968 }
 0x575   :  { %v1985_v24 = vsub.f32 %v4685_v4, %v1969_v11 }
 0x577   :  { %v2016_v30 = vmul.f32 1.442695, %v1985_v24 }
 0x578   :  { %v1965_v51 = vpop.xlane.xlu0 %1964 }
 0x579   :  { %3546 = vpow2.f32 %v2016_v30  ;;  %v1983_v7 = vsub.f32 %v4691_v52, %v1965_v51 }
 0x57b   :  { %v2012_v5 = vmul.f32 1.442695, %v1983_v7 }
 0x57c   :  { %v1967_v55 = vpop.xlane.xlu0 %1966 }
 0x57d   :  { %v1984_v16 = vsub.f32 %v4698_v23, %v1967_v55 }
 0x57f   :  { %v2014_v42 = vmul.f32 1.442695, %v1984_v16 }
 0x581   :  { %3548 = vpow2.f32 %v2014_v42 }
 0x582   :  { %3550 = vpow2.f32 %v2012_v5 }
 0x586   :  { %v4833_v22 = vpop.eup %3546 }
 0x587   :  { %2048 = vadd.xlane.f32.xlu0 %v4833_v22 }
 0x58e   :  { %v4836_v38 = vpop.eup %3548 }
 0x58f   :  { %2046 = vadd.xlane.f32.xlu0 %v4836_v38  ;;  %v4839_v4 = vpop.eup %3550 }
 0x593   :  { %2044 = vadd.xlane.f32.xlu0 %v4839_v4 }
 0x59d   :  { %v2469_v21 = vpop.xlane.xlu1 %2468 }
 0x59e   :  { %v2485_v52 = vsub.f32 %v4709_v59, %v2469_v21 }
 0x59f   :  { %v2467_v23 = vpop.xlane.xlu0 %2466 }
 0x5a0   :  { %v2516_v8 = vmul.f32 1.442695, %v2485_v52  ;;  %v2484_v50 = vsub.f32 %v4719_v18, %v2467_v23 }
 0x5a1   :  { %v2463_v0 = vpop.xlane.xlu1 %2462 }
 0x5a2   :  { %3552 = vpow2.f32 %v2516_v8  ;;  %v2514_v57 = vmul.f32 1.442695, %v2484_v50  ;;  %v2482_v58 = vsub.f32 %v4724_v9, %v2463_v0 }
 0x5a3   :  { %v2465_v14 = vpop.xlane.xlu0 %2464 }
 0x5a4   :  { %v2483_v46 = vsub.f32 %v4729_v54, %v2465_v14  ;;  %3554 = vpow2.f32 %v2514_v57  ;;  %v2510_v59 = vmul.f32 1.442695, %v2482_v58 }
 0x5a5   :  { %v2461_v12 = vpop.xlane.xlu1 %2460 }
 0x5a6   :  { %v2512_v13 = vmul.f32 1.442695, %v2483_v46  ;;  %v2481_v29 = vsub.f32 %v4733_v48, %v2461_v12 }
 0x5a7   :  { %v1963_v19 = vpop.xlane.xlu0 %1962 }
 0x5a8   :  { %v1982_v27 = vsub.f32 %v4739_v6, %v1963_v19  ;;  %3556 = vpow2.f32 %v2512_v13  ;;  %v2508_v54 = vmul.f32 1.442695, %v2481_v29 }
 0x5a9   :  { %v2459_v31 = vpop.xlane.xlu1 %2458 }
 0x5aa   :  { %v2010_v18 = vmul.f32 1.442695, %v1982_v27  ;;  %v2480_v11 = vsub.f32 %v4744_v62, %v2459_v31 }
 0x5ab   :  { %v1961_v20 = vpop.xlane.xlu0 %1960 }
 0x5ac   :  { %3558 = vpow2.f32 %v2010_v18  ;;  %v1981_v39 = vsub.f32 %v4748_v47, %v1961_v20  ;;  %v2506_v51 = vmul.f32 1.442695, %v2480_v11 }
 0x5ad   :  { %v2457_v44 = vpop.xlane.xlu1 %2456  ;;  %3560 = vpow2.f32 %v2510_v59 }
 0x5ae   :  { %v2008_v9 = vmul.f32 1.442695, %v1981_v39  ;;  %v2479_v55 = vsub.f32 %v4753_v17, %v2457_v44 }
 0x5af   :  { %v4850_v24 = vpop.eup %3552  ;;  %v1959_v30 = vpop.xlane.xlu0 %1958 }
 0x5b0   :  { %3562 = vpow2.f32 %v2008_v9  ;;  %v1980_v6 = vsub.f32 %v4760_v32, %v1959_v30  ;;  %2548 = vadd.xlane.f32.xlu1 %v4850_v24  ;;  %v2504_v5 = vmul.f32 1.442695, %v2479_v55 }
 0x5b1   :  { %v2455_v48 = vpop.xlane.xlu1 %2454  ;;  %3564 = vpow2.f32 %v2508_v54  ;;  %v4855_v7 = vpop.eup %3554 }
 0x5b2   :  { %v2006_v47 = vmul.f32 1.442695, %v1980_v6  ;;  %v2478_v32 = vsub.f32 %v4765_v43, %v2455_v48 }
 0x5b3   :  { %v1957_v16 = vpop.xlane.xlu0 %1956 }
 0x5b4   :  { %3566 = vpow2.f32 %v2006_v47  ;;  %v1979_v62 = vsub.f32 %v4769_v25, %v1957_v16  ;;  %2546 = vadd.xlane.f32.xlu1 %v4855_v7  ;;  %v2502_v25 = vmul.f32 1.442695, %v2478_v32 }
 0x5b5   :  { %v2453_v42 = vpop.xlane.xlu1 %2452  ;;  %3568 = vpow2.f32 %v2506_v51  ;;  %v4860_v52 = vpop.eup %3556 }
 0x5b6   :  { %v2004_v21 = vmul.f32 1.442695, %v1979_v62  ;;  %v2477_v0 = vsub.f32 %v4775_v41, %v2453_v42 }
 0x5b7   :  { %v1955_v23 = vpop.xlane.xlu0 %1954 }
 0x5b8   :  { %3570 = vpow2.f32 %v2004_v21  ;;  %v1978_v17 = vsub.f32 %v4780_v35, %v1955_v23  ;;  %2544 = vadd.xlane.f32.xlu1 %v4860_v52  ;;  %v2500_v58 = vmul.f32 1.442695, %v2477_v0 }
 0x5b9   :  { %v4864_v8 = vpop.eup %3558  ;;  %v2451_v50 = vpop.xlane.xlu1 %2450  ;;  %3572 = vpow2.f32 %v2504_v5 }
 0x5ba   :  { %v2002_v57 = vmul.f32 1.442695, %v1978_v17  ;;  %2042 = vadd.xlane.f32.xlu0 %v4864_v8  ;;  %v4868_v43 = vpop.eup %3560  ;;  %v2476_v13 = vsub.f32 %v4785_v60, %v2451_v50 }
 0x5bb   :  { %v1953_v14 = vpop.xlane.xlu0 %1952 }
 0x5bc   :  { %3574 = vpow2.f32 %v2002_v57  ;;  %v1977_v46 = vsub.f32 %v4668_v28, %v1953_v14  ;;  %2542 = vadd.xlane.f32.xlu1 %v4868_v43  ;;  %v2498_v29 = vmul.f32 1.442695, %v2476_v13 }
 0x5bd   :  { %v4872_v35 = vpop.eup %3562  ;;  %v2449_v12 = vpop.xlane.xlu1 %2448  ;;  %3576 = vpow2.f32 %v2502_v25 }
 0x5be   :  { %v2000_v19 = vmul.f32 1.442695, %v1977_v46  ;;  %2040 = vadd.xlane.f32.xlu0 %v4872_v35  ;;  %v4876_v41 = vpop.eup %3564  ;;  %v2475_v18 = vsub.f32 %v4790_v33, %v2449_v12 }
 0x5bf   :  { %v1951_v27 = vpop.xlane.xlu0 %1950 }
 0x5c0   :  { %3578 = vpow2.f32 %v2000_v19  ;;  %v1976_v31 = vsub.f32 %v4672_v40, %v1951_v27  ;;  %2540 = vadd.xlane.f32.xlu1 %v4876_v41  ;;  %v2496_v11 = vmul.f32 1.442695, %v2475_v18 }
 0x5c1   :  { %v4880_v28 = vpop.eup %3566  ;;  %v2447_v59 = vpop.xlane.xlu1 %2446  ;;  %3580 = vpow2.f32 %v2500_v58 }
 0x5c2   :  { %v1998_v20 = vmul.f32 1.442695, %v1976_v31  ;;  %2038 = vadd.xlane.f32.xlu0 %v4880_v28  ;;  %v4884_v60 = vpop.eup %3568  ;;  %v2474_v9 = vsub.f32 %v4798_v10, %v2447_v59 }
 0x5c3   :  { %v1949_v39 = vpop.xlane.xlu0 %1948 }
 0x5c4   :  { %3582 = vpow2.f32 %v1998_v20  ;;  %v1975_v44 = vsub.f32 %v4658_v1, %v1949_v39  ;;  %2538 = vadd.xlane.f32.xlu1 %v4884_v60  ;;  %v2494_v55 = vmul.f32 1.442695, %v2474_v9 }
 0x5c5   :  { %v4888_v40 = vpop.eup %3570  ;;  %v2445_v54 = vpop.xlane.xlu1 %2444  ;;  %3584 = vpow2.f32 %v2498_v29 }
 0x5c6   :  { %v1996_v30 = vmul.f32 1.442695, %v1975_v44  ;;  %2036 = vadd.xlane.f32.xlu0 %v4888_v40  ;;  %v4892_v33 = vpop.eup %3572  ;;  %v2473_v47 = vsub.f32 %v4803_v61, %v2445_v54 }
 0x5c7   :  { %v1947_v6 = vpop.xlane.xlu0 %1946 }
 0x5c8   :  { %3586 = vpow2.f32 %v1996_v30  ;;  %v1974_v48 = vsub.f32 %v4664_v45, %v1947_v6  ;;  %2536 = vadd.xlane.f32.xlu1 %v4892_v33  ;;  %v2492_v32 = vmul.f32 1.442695, %v2473_v47  ;;  %v3702_v30 = vmov 2  }
 0x5c9   :  { %v4896_v1 = vpop.eup %3574  ;;  %v2443_v51 = vpop.xlane.xlu1 %2442  ;;  %3588 = vpow2.f32 %v2496_v11  ;;  %3398 = vset.pattern.permute.xlu1 %v3702_v30  ;;  %3397 = vset.pattern.permute.xlu0 %v3702_v30  ;;  %v3703_v47 = vmov 4  }
 0x5ca   :  { %v1994_v16 = vmul.f32 1.442695, %v1974_v48  ;;  %2034 = vadd.xlane.f32.xlu0 %v4896_v1  ;;  %v4900_v10 = vpop.eup %3576  ;;  %v2472_v21 = vsub.f32 %v4812_v37, %v2443_v51  ;;  %v3676_v48 = vld [vmem:[%s5039_s3 + $0x8] sm:$0xff]  ;;  %v3677_v51 = vld [vmem:[%s5039_s3] sm:$0xff] }
 0x5cb   :  { %v1945_v62 = vpop.xlane.xlu0 %1944 }
 0x5cc   :  { %3590 = vpow2.f32 %v1994_v16  ;;  %v1973_v42 = vsub.f32 %v4646_v26, %v1945_v62  ;;  %2534 = vadd.xlane.f32.xlu1 %v4900_v10  ;;  %v2490_v25 = vmul.f32 1.442695, %v2472_v21  ;;  %v3679_v62 = vld [vmem:[%s5039_s3 + $0x18] sm:$0xff] }
 0x5cd   :  { %v4904_v45 = vpop.eup %3578  ;;  %v2441_v5 = vpop.xlane.xlu1 %2440  ;;  %3592 = vpow2.f32 %v2494_v55  ;;  %v3678_v55 = vld [vmem:[%s5039_s3 + $0x10] sm:$0xff] }
 0x5ce   :  { %v1992_v23 = vmul.f32 1.442695, %v1973_v42  ;;  %2032 = vadd.xlane.f32.xlu0 %v4904_v45  ;;  %v4908_v61 = vpop.eup %3580  ;;  %v2471_v0 = vsub.f32 %v4817_v63, %v2441_v5  ;;  %v3704_v5 = vmov 3  }
 0x5cf   :  { %v1943_v17 = vpop.xlane.xlu0 %1942 }
 0x5d0   :  { %3594 = vpow2.f32 %v1992_v23  ;;  %v1972_v50 = vsub.f32 %v4652_v53, %v1943_v17  ;;  %2532 = vadd.xlane.f32.xlu1 %v4908_v61  ;;  %v2488_v58 = vmul.f32 1.442695, %v2471_v0 }
 0x5d1   :  { %v4912_v26 = vpop.eup %3582  ;;  %3596 = vpow2.f32 %v2492_v32  ;;  %v2439_v14 = vpop.xlane.xlu1 %2438 }
 0x5d2   :  { %v1990_v57 = vmul.f32 1.442695, %v1972_v50  ;;  %2030 = vadd.xlane.f32.xlu0 %v4912_v26  ;;  %v4916_v37 = vpop.eup %3584  ;;  %v2470_v13 = vsub.f32 %v4824_v15, %v2439_v14 }
 0x5d3   :  { %v1941_v46 = vpop.xlane.xlu0 %1940 }
 0x5d4   :  { %3598 = vpow2.f32 %v1990_v57  ;;  %v1971_v12 = vsub.f32 %v4636_v36, %v1941_v46  ;;  %2530 = vadd.xlane.f32.xlu1 %v4916_v37  ;;  %v2486_v59 = vmul.f32 1.442695, %v2470_v13 }
 0x5d5   :  { %v4920_v53 = vpop.eup %3586  ;;  %3600 = vpow2.f32 %v2490_v25 }
 0x5d6   :  { %v1988_v19 = vmul.f32 1.442695, %v1971_v12  ;;  %2028 = vadd.xlane.f32.xlu0 %v4920_v53  ;;  %v4924_v63 = vpop.eup %3588 }
 0x5d7   :  { %v1939_v27 = vpop.xlane.xlu0 %1938 }
 0x5d8   :  { %3602 = vpow2.f32 %v1988_v19  ;;  %v1970_v31 = vsub.f32 %v4640_v2, %v1939_v27  ;;  %2528 = vadd.xlane.f32.xlu1 %v4924_v63 }
 0x5d9   :  { %v4928_v36 = vpop.eup %3590  ;;  %3604 = vpow2.f32 %v2488_v58 }
 0x5da   :  { %v1986_v29 = vmul.f32 1.442695, %v1970_v31  ;;  %2026 = vadd.xlane.f32.xlu0 %v4928_v36  ;;  %v4931_v18 = vpop.eup %3592 }
 0x5dc   :  { %3606 = vpow2.f32 %v1986_v29  ;;  %2526 = vadd.xlane.f32.xlu1 %v4931_v18 }
 0x5dd   :  { %v4934_v15 = vpop.eup %3594  ;;  %3608 = vpow2.f32 %v2486_v59 }
 0x5de   :  { %2024 = vadd.xlane.f32.xlu0 %v4934_v15  ;;  %v4937_v2 = vpop.eup %3596 }
 0x5e0   :  { %2524 = vadd.xlane.f32.xlu1 %v4937_v2 }
 0x5e1   :  { %v4940_v20 = vpop.eup %3598 }
 0x5e2   :  { %2022 = vadd.xlane.f32.xlu0 %v4940_v20  ;;  %v4943_v39 = vpop.eup %3600 }
 0x5e4   :  { %2522 = vadd.xlane.f32.xlu1 %v4943_v39 }
 0x5e5   :  { %v4946_v44 = vpop.eup %3602 }
 0x5e6   :  { %2020 = vadd.xlane.f32.xlu0 %v4946_v44  ;;  %v4949_v54 = vpop.eup %3604 }
 0x5e8   :  { %2520 = vadd.xlane.f32.xlu1 %v4949_v54 }
 0x5e9   :  { %v4952_v11 = vpop.eup %3606 }
 0x5ea   :  { %2018 = vadd.xlane.f32.xlu0 %v4952_v11  ;;  %v4955_v9 = vpop.eup %3608 }
 0x5ec   :  { %2518 = vadd.xlane.f32.xlu1 %v4955_v9 }
 0x5fd   :  { %2676 = vperm.xlu1 %3398, %v3676_v48  }
 0x600   :  { %2672 = vperm.xlu0 %3397, %v3677_v51  }
 0x601   :  { %2680 = vperm.xlu1 %3398, %v3678_v55  }
 0x604   :  { %3401 = vset.pattern.permute.xlu0 %v3703_v47 }
 0x605   :  { %2751 = vperm.xlu0 %3401, %v3676_v48   ;;  %2684 = vperm.xlu1 %3398, %v3679_v62  }
 0x609   :  { %3399 = vset.pattern.permute.xlu1 %v3704_v5 }
 0x60a   :  { %2727 = vperm.xlu1 %3399, %v3677_v51  }
 0x60e   :  { %2731 = vperm.xlu1 %3399, %v3676_v48  }
 0x610   :  { %v2049_v6 = vpop.xlane.xlu0 %2048 }
 0x611   :  { %3610 = vrcp.f32 %v2049_v6 }
 0x612   :  { %2735 = vperm.xlu1 %3399, %v3678_v55  }
 0x616   :  { %2739 = vperm.xlu1 %3399, %v3679_v62  }
 0x618   :  { %v2047_v16 = vpop.xlane.xlu0 %2046 }
 0x619   :  { %3612 = vrcp.f32 %v2047_v16 }
 0x61a   :  { %3400 = vset.pattern.permute.xlu1 %v3703_v47 }
 0x61b   :  { %2747 = vperm.xlu1 %3400, %v3677_v51  }
 0x61c   :  { %v2045_v42 = vpop.xlane.xlu0 %2044 }
 0x61d   :  { %3614 = vrcp.f32 %v2045_v42 }
 0x61e   :  { %v3611_v32 = vpop.eup %3610 }
 0x61f   :  { %v2081_v21 = vmul.f32 %v3611_v32, %v4833_v22  ;;  %2755 = vperm.xlu1 %3400, %v3678_v55  }
 0x621   :  { %3274 = vmatprep.subr.mxu1 %v2081_v21 }
 0x622   :  { %3275 = vmatpush3.xpose.msra.mxu1 %v2081_v21 }
 0x623   :  { %2759 = vperm.xlu1 %3400, %v3679_v62  }
 0x626   :  { %v3613_v23 = vpop.eup %3612 }
 0x627   :  { %v2080_v17 = vmul.f32 %v3613_v23, %v4836_v38 }
 0x629   :  { %3276 = vmatprep.subr.mxu1 %v2080_v17 }
 0x62a   :  { %v3615_v50 = vpop.eup %3614  ;;  %3277 = vmatpush3.xpose.msra.mxu1 %v2080_v17 }
 0x62b   :  { %v2079_v25 = vmul.f32 %v3615_v50, %v4839_v4 }
 0x62d   :  { %3278 = vmatprep.subr.mxu1 %v2079_v25 }
 0x62e   :  { %3279 = vmatpush3.xpose.msra.mxu1 %v2079_v25 }
 0x639   :  { %v2549_v22 = vpop.xlane.xlu1 %2548 }
 0x63a   :  { %3616 = vrcp.f32 %v2549_v22 }
 0x63d   :  { %v2547_v0 = vpop.xlane.xlu1 %2546 }
 0x63e   :  { %3618 = vrcp.f32 %v2547_v0 }
 0x641   :  { %v2545_v57 = vpop.xlane.xlu1 %2544 }
 0x642   :  { %3620 = vrcp.f32 %v2545_v57 }
 0x643   :  { %v2043_v14 = vpop.xlane.xlu0 %2042 }
 0x644   :  { %3622 = vrcp.f32 %v2043_v14 }
 0x645   :  { %v2543_v38 = vpop.xlane.xlu1 %2542 }
 0x646   :  { %3624 = vrcp.f32 %v2543_v38 }
 0x647   :  { %v3617_v46 = vpop.eup %3616  ;;  %v2041_v12 = vpop.xlane.xlu0 %2040 }
 0x648   :  { %3626 = vrcp.f32 %v2041_v12  ;;  %v2581_v4 = vmul.f32 %v3617_v46, %v4850_v24 }
 0x649   :  { %v2541_v58 = vpop.xlane.xlu1 %2540 }
 0x64a   :  { %3628 = vrcp.f32 %v2541_v58  ;;  %3338 = vmatprep.subr.mxu0 %v2581_v4 }
 0x64b   :  { %v3619_v13 = vpop.eup %3618  ;;  %3339 = vmatpush3.xpose.msra.mxu0 %v2581_v4  ;;  %v2039_v19 = vpop.xlane.xlu0 %2038 }
 0x64c   :  { %3630 = vrcp.f32 %v2039_v19  ;;  %v2580_v27 = vmul.f32 %v3619_v13, %v4855_v7 }
 0x64d   :  { %v2539_v31 = vpop.xlane.xlu1 %2538 }
 0x64e   :  { %3632 = vrcp.f32 %v2539_v31  ;;  %3340 = vmatprep.subr.mxu0 %v2580_v27 }
 0x64f   :  { %v3621_v59 = vpop.eup %3620  ;;  %3341 = vmatpush3.xpose.msra.mxu0 %v2580_v27  ;;  %v2037_v29 = vpop.xlane.xlu0 %2036 }
 0x650   :  { %3634 = vrcp.f32 %v2037_v29  ;;  %v2579_v30 = vmul.f32 %v3621_v59, %v4860_v52 }
 0x651   :  { %v3623_v6 = vpop.eup %3622  ;;  %v2537_v24 = vpop.xlane.xlu1 %2536 }
 0x652   :  { %3636 = vrcp.f32 %v2537_v24  ;;  %3342 = vmatprep.subr.mxu0 %v2579_v30  ;;  %v2078_v48 = vmul.f32 %v3623_v6, %v4864_v8 }
 0x653   :  { %v3625_v51 = vpop.eup %3624  ;;  %3343 = vmatpush3.xpose.msra.mxu0 %v2579_v30  ;;  %v2035_v55 = vpop.xlane.xlu0 %2034 }
 0x654   :  { %3638 = vrcp.f32 %v2035_v55  ;;  %3280 = vmatprep.subr.mxu1 %v2078_v48  ;;  %v2578_v7 = vmul.f32 %v3625_v51, %v4868_v43 }
 0x655   :  { %v3627_v47 = vpop.eup %3626  ;;  %v2535_v16 = vpop.xlane.xlu1 %2534  ;;  %3281 = vmatpush3.xpose.msra.mxu1 %v2078_v48 }
 0x656   :  { %3640 = vrcp.f32 %v2535_v16  ;;  %3344 = vmatprep.subr.mxu0 %v2578_v7  ;;  %v2077_v52 = vmul.f32 %v3627_v47, %v4872_v35 }
 0x657   :  { %v3629_v62 = vpop.eup %3628  ;;  %3345 = vmatpush3.xpose.msra.mxu0 %v2578_v7  ;;  %v2033_v42 = vpop.xlane.xlu0 %2032 }
 0x658   :  { %3642 = vrcp.f32 %v2033_v42  ;;  %3282 = vmatprep.subr.mxu1 %v2077_v52  ;;  %v2577_v8 = vmul.f32 %v3629_v62, %v4876_v41 }
 0x659   :  { %v3631_v5 = vpop.eup %3630  ;;  %v2533_v32 = vpop.xlane.xlu1 %2532  ;;  %3283 = vmatpush3.xpose.msra.mxu1 %v2077_v52 }
 0x65a   :  { %3644 = vrcp.f32 %v2533_v32  ;;  %3346 = vmatprep.subr.mxu0 %v2577_v8  ;;  %v2076_v43 = vmul.f32 %v3631_v5, %v4880_v28 }
 0x65b   :  { %v3633_v21 = vpop.eup %3632  ;;  %3347 = vmatpush3.xpose.msra.mxu0 %v2577_v8  ;;  %v2031_v23 = vpop.xlane.xlu0 %2030 }
 0x65c   :  { %3646 = vrcp.f32 %v2031_v23  ;;  %3284 = vmatprep.subr.mxu1 %v2076_v43  ;;  %v2576_v35 = vmul.f32 %v3633_v21, %v4884_v60  ;;  %v5132_v21 = vld [vmem:[#allocation8_spill] sm:$0xff] }
 0x65d   :  { %v3635_v17 = vpop.eup %3634  ;;  %v2531_v50 = vpop.xlane.xlu1 %2530  ;;  %3285 = vmatpush3.xpose.msra.mxu1 %v2076_v43  ;;  %v5134_v23 = vld [vmem:[#allocation12_spill] sm:$0xff] }
 0x65e   :  { %3648 = vrcp.f32 %v2531_v50  ;;  %3348 = vmatprep.subr.mxu0 %v2576_v35  ;;  %v2075_v41 = vmul.f32 %v3635_v17, %v4888_v40  ;;  %v5137_v17 = vld [vmem:[#allocation15_spill] sm:$0xff] }
 0x65f   :  { %v3637_v25 = vpop.eup %3636  ;;  %3349 = vmatpush3.xpose.msra.mxu0 %v2576_v35  ;;  %v2029_v22 = vpop.xlane.xlu0 %2028  ;;  %v5136_v35 = vld [vmem:[#allocation10_spill] sm:$0xff] }
 0x660   :  { %3650 = vrcp.f32 %v2029_v22  ;;  %3286 = vmatprep.subr.mxu1 %v2075_v41  ;;  %v2575_v28 = vmul.f32 %v3637_v25, %v4892_v33 }
 0x661   :  { %v3639_v0 = vpop.eup %3638  ;;  %v2529_v57 = vpop.xlane.xlu1 %2528  ;;  %3287 = vmatpush3.xpose.msra.mxu1 %v2075_v41 }
 0x662   :  { %3652 = vrcp.f32 %v2529_v57  ;;  %3350 = vmatprep.subr.mxu0 %v2575_v28  ;;  %v2074_v60 = vmul.f32 %v3639_v0, %v4896_v1 }
 0x663   :  { %v3641_v14 = vpop.eup %3640  ;;  %3351 = vmatpush3.xpose.msra.mxu0 %v2575_v28  ;;  %v2027_v38 = vpop.xlane.xlu0 %2026 }
 0x664   :  { %3654 = vrcp.f32 %v2027_v38  ;;  %3288 = vmatprep.subr.mxu1 %v2074_v60  ;;  %v2574_v40 = vmul.f32 %v3641_v14, %v4900_v10 }
 0x665   :  { %v3643_v46 = vpop.eup %3642  ;;  %v2527_v12 = vpop.xlane.xlu1 %2526  ;;  %3289 = vmatpush3.xpose.msra.mxu1 %v2074_v60 }
 0x666   :  { %3656 = vrcp.f32 %v2527_v12  ;;  %3352 = vmatprep.subr.mxu0 %v2574_v40  ;;  %v2073_v33 = vmul.f32 %v3643_v46, %v4904_v45 }
 0x667   :  { %v3645_v4 = vpop.eup %3644  ;;  %3353 = vmatpush3.xpose.msra.mxu0 %v2574_v40  ;;  %v2025_v58 = vpop.xlane.xlu0 %2024 }
 0x668   :  { %3658 = vrcp.f32 %v2025_v58  ;;  %3290 = vmatprep.subr.mxu1 %v2073_v33  ;;  %v2573_v1 = vmul.f32 %v3645_v4, %v4908_v61 }
 0x669   :  { %v3647_v13 = vpop.eup %3646  ;;  %v2525_v19 = vpop.xlane.xlu1 %2524  ;;  %3291 = vmatpush3.xpose.msra.mxu1 %v2073_v33 }
 0x66a   :  { %3660 = vrcp.f32 %v2525_v19  ;;  %3354 = vmatprep.subr.mxu0 %v2573_v1  ;;  %v2072_v10 = vmul.f32 %v3647_v13, %v4912_v26 }
 0x66b   :  { %v3649_v27 = vpop.eup %3648  ;;  %3355 = vmatpush3.xpose.msra.mxu0 %v2573_v1  ;;  %v2023_v31 = vpop.xlane.xlu0 %2022 }
 0x66c   :  { %3662 = vrcp.f32 %v2023_v31  ;;  %3292 = vmatprep.subr.mxu1 %v2072_v10  ;;  %v2572_v45 = vmul.f32 %v3649_v27, %v4916_v37 }
 0x66d   :  { %v3651_v59 = vpop.eup %3650  ;;  %v2523_v29 = vpop.xlane.xlu1 %2522  ;;  %3293 = vmatpush3.xpose.msra.mxu1 %v2072_v10 }
 0x66e   :  { %3664 = vrcp.f32 %v2523_v29  ;;  %3356 = vmatprep.subr.mxu0 %v2572_v45  ;;  %v2071_v61 = vmul.f32 %v3651_v59, %v4920_v53 }
 0x66f   :  { %v3653_v30 = vpop.eup %3652  ;;  %3357 = vmatpush3.xpose.msra.mxu0 %v2572_v45  ;;  %v2021_v6 = vpop.xlane.xlu0 %2020 }
 0x670   :  { %3666 = vrcp.f32 %v2021_v6  ;;  %3294 = vmatprep.subr.mxu1 %v2071_v61  ;;  %v2571_v26 = vmul.f32 %v3653_v30, %v4924_v63 }
 0x671   :  { %v3655_v24 = vpop.eup %3654  ;;  %v2521_v48 = vpop.xlane.xlu1 %2520  ;;  %3295 = vmatpush3.xpose.msra.mxu1 %v2071_v61 }
 0x672   :  { %3668 = vrcp.f32 %v2521_v48  ;;  %3358 = vmatprep.subr.mxu0 %v2571_v26  ;;  %v2070_v37 = vmul.f32 %v3655_v24, %v4928_v36 }
 0x673   :  { %v3657_v51 = vpop.eup %3656  ;;  %3359 = vmatpush3.xpose.msra.mxu0 %v2571_v26  ;;  %v2019_v55 = vpop.xlane.xlu0 %2018 }
 0x674   :  { %3670 = vrcp.f32 %v2019_v55  ;;  %3296 = vmatprep.subr.mxu1 %v2070_v37  ;;  %v2570_v53 = vmul.f32 %v3657_v51, %v4931_v18 }
 0x675   :  { %v3659_v7 = vpop.eup %3658  ;;  %v2519_v47 = vpop.xlane.xlu1 %2518  ;;  %3297 = vmatpush3.xpose.msra.mxu1 %v2070_v37 }
 0x676   :  { %3672 = vrcp.f32 %v2519_v47  ;;  %3360 = vmatprep.subr.mxu0 %v2570_v53  ;;  %v2069_v63 = vmul.f32 %v3659_v7, %v4934_v15 }
 0x677   :  { %v3661_v16 = vpop.eup %3660  ;;  %3361 = vmatpush3.xpose.msra.mxu0 %v2570_v53 }
 0x678   :  { %3298 = vmatprep.subr.mxu1 %v2069_v63  ;;  %v2569_v52 = vmul.f32 %v3661_v16, %v4937_v2 }
 0x679   :  { %v3663_v36 = vpop.eup %3662  ;;  %3299 = vmatpush3.xpose.msra.mxu1 %v2069_v63 }
 0x67a   :  { %3362 = vmatprep.subr.mxu0 %v2569_v52  ;;  %v2068_v62 = vmul.f32 %v3663_v36, %v4940_v20 }
 0x67b   :  { %v3665_v42 = vpop.eup %3664  ;;  %3363 = vmatpush3.xpose.msra.mxu0 %v2569_v52  ;;  %v2673_v0 = vpop.permute.xlu0 %2672 }
 0x67c   :  { %3300 = vmatprep.subr.mxu1 %v2068_v62  ;;  %v2568_v18 = vmul.f32 %v3665_v42, %v4943_v39 }
 0x67d   :  { %v3667_v8 = vpop.eup %3666  ;;  %3301 = vmatpush3.xpose.msra.mxu1 %v2068_v62 }
 0x67e   :  { %3364 = vmatprep.subr.mxu0 %v2568_v18  ;;  %v2067_v15 = vmul.f32 %v3667_v8, %v4946_v44  ;;  %v5133_v44 = vld [vmem:[#allocation11_spill] sm:$0xff] }
 0x67f   :  { %v3669_v5 = vpop.eup %3668  ;;  %3365 = vmatpush3.xpose.msra.mxu0 %v2568_v18 }
 0x680   :  { %3302 = vmatprep.subr.mxu1 %v2067_v15  ;;  %v2567_v2 = vmul.f32 %v3669_v5, %v4949_v54  ;;  %v5135_v54 = vld [vmem:[#allocation17_spill] sm:$0xff] }
 0x681   :  { %v3671_v32 = vpop.eup %3670  ;;  %3303 = vmatpush3.xpose.msra.mxu1 %v2067_v15 }
 0x682   :  { %3366 = vmatprep.subr.mxu0 %v2567_v2  ;;  %v2066_v20 = vmul.f32 %v3671_v32, %v4952_v11  ;;  %v2677_v11 = vpop.permute.xlu1 %2676 }
 0x683   :  { %v3673_v43 = vpop.eup %3672  ;;  %3367 = vmatpush3.xpose.msra.mxu0 %v2567_v2 }
 0x684   :  { %3304 = vmatprep.subr.mxu1 %v2066_v20  ;;  %v2566_v39 = vmul.f32 %v3673_v43, %v4955_v9 }
 0x685   :  { %3305 = vmatpush3.xpose.msra.mxu1 %v2066_v20 }
 0x686   :  { %3368 = vmatprep.subr.mxu0 %v2566_v39  ;;  %v2681_v14 = vpop.permute.xlu1 %2680 }
 0x687   :  { %3369 = vmatpush3.xpose.msra.mxu0 %v2566_v39 }
 0x688   :  { %3307 = vmatmul.mubr.f32.vlgmr.msra.gmra.mxu1 %v5132_v21 }
 0x689   :  { %3309 = vmatprep.mubr.f32.mxu1 %v5133_v44 }
 0x68a   :  { %3371 = vmatmul.mubr.f32.vlgmr.msra.gmra.mxu0 %v5134_v23 }
 0x68b   :  { %3373 = vmatprep.mubr.f32.mxu0 %v5135_v54 }
 0x68c   :  { %3310 = vmatmul.mubr.f32.gmra.mxu1 %v5136_v35 }
 0x68e   :  { %3374 = vmatmul.mubr.f32.gmra.mxu0 %v5137_v17 }
 0x748   :  { %v3308_v50 = vpop.f32.mrf.mxu1 }
 0x749   :  { %v2168_v41 = vadd.f32 %v3308_v50, %v4643_v56 }
 0x74a   :  { %v2148_v9 = vpop.f32.mrf.mxu1  ;;  %v3372_v25 = vpop.f32.mrf.mxu0 }
 0x74b   :  { %v2167_v22 = vadd.f32 %v2148_v9, %v4649_v49  ;;  %v2668_v28 = vadd.f32 %v3372_v25, %v2168_v41  ;;  %v2685_v49 = vpop.permute.xlu1 %2684 }
 0x74c   :  { %v2648_v57 = vpop.f32.mrf.mxu0  ;;  %v3311_v60 = vpop.f32.mrf.mxu1 }
 0x74d   :  { %v2667_v38 = vadd.f32 %v2648_v57, %v2167_v22  ;;  %v2170_v40 = vadd.f32 %v3311_v60, %v4655_v3  ;;  %v2688_v33 = vadd.f32 %v2677_v11, %v2668_v28  ;;  %v2752_v11 = vpop.permute.xlu0 %2751 }
 0x74e   :  { %v2158_v46 = vpop.f32.mrf.mxu1  ;;  %v3375_v12 = vpop.f32.mrf.mxu0 }
 0x74f   :  { %v2169_v4 = vadd.f32 %v2158_v46, %v4661_v34  ;;  %v2687_v58 = vadd.f32 %v2673_v0, %v2667_v38  ;;  %v2670_v56 = vadd.f32 %v3375_v12, %v2170_v40  ;;  %v2728_v52 = vpop.permute.xlu1 %2727  ;;  %v3681_v40 = vld [vmem:[%s5036_s0 + $0x10] sm:$0xff]  ;;  %v3682_v12 = vld [vmem:[%s5036_s0 + $0x18] sm:$0xff] }
 0x750   :  { %v2658_v1 = vpop.f32.mrf.mxu0 }
 0x751   :  { %v2691_v13 = vadd.f32 %v2688_v33, %v2687_v58  ;;  %v2669_v19 = vadd.f32 %v2658_v1, %v2169_v4  ;;  %v2690_v27 = vadd.f32 %v2685_v49, %v2670_v56  ;;  %v3683_v4 = vld [vmem:[%s5036_s0 + $0x8] sm:$0xff] }
 0x753   :  { %v2689_v10 = vadd.f32 %v2681_v14, %v2669_v19  ;;  %v2732_v18 = vpop.permute.xlu1 %2731  ;;  %v3680_v14 = vld [vmem:[%s5036_s0] sm:$0xff] }
 0x755   :  { %v2692_v31 = vadd.f32 %v2691_v13, %v2689_v10 }
 0x757   :  { %v2693_v45 = vadd.f32 %v2692_v31, %v2690_v27  ;;  %v2736_v2 = vpop.permute.xlu1 %2735 }
 0x759   :  { %v2694_v59 = vrot.slane %v2693_v45, 4 }
 0x75b   :  { %v2695_v29 = vadd.f32 %v2694_v59, %v2693_v45  ;;  %v2740_v43 = vpop.permute.xlu1 %2739 }
 0x75d   :  { %v2696_v61 = vrot.slane %v2695_v29, 2 }
 0x75f   :  { %v2697_v30 = vadd.f32 %v2696_v61, %v2695_v29  ;;  %v2748_v39 = vpop.permute.xlu1 %2747 }
 0x761   :  { %v2698_v3 = vrot.slane %v2697_v30, 1 }
 0x763   :  { %v2699_v6 = vadd.f32 %v2698_v3, %v2697_v30  ;;  %v2756_v21 = vpop.permute.xlu1 %2755 }
 0x765   :  { %v2701_v26 = vmul.f32 0.03125, %v2699_v6 }
 0x767   :  { %v2703_v24 = vsub.f32 %v2688_v33, %v2701_v26  ;;  %v2704_v48 = vsub.f32 %v2689_v10, %v2701_v26  ;;  %v2705_v34 = vsub.f32 %v2690_v27, %v2701_v26  ;;  %v2702_v37 = vsub.f32 %v2687_v58, %v2701_v26  ;;  %v2760_v22 = vpop.permute.xlu1 %2759 }
 0x769   :  { %v2706_v51 = vmul.f32 %v2702_v37, %v2702_v37  ;;  %v2707_v55 = vmul.f32 %v2703_v24, %v2703_v24  ;;  %v2708_v53 = vmul.f32 %v2704_v48, %v2704_v48  ;;  %v2709_v47 = vmul.f32 %v2705_v34, %v2705_v34 }
 0x76b   :  { %v2710_v7 = vadd.f32 %v2707_v55, %v2706_v51 }
 0x76d   :  { %v2711_v63 = vadd.f32 %v2710_v7, %v2708_v53 }
 0x76f   :  { %v2712_v16 = vadd.f32 %v2711_v63, %v2709_v47 }
 0x771   :  { %v2713_v36 = vrot.slane %v2712_v16, 4 }
 0x773   :  { %v2714_v62 = vadd.f32 %v2713_v36, %v2712_v16 }
 0x775   :  { %v2715_v42 = vrot.slane %v2714_v62, 2 }
 0x777   :  { %v2716_v8 = vadd.f32 %v2715_v42, %v2714_v62 }
 0x779   :  { %v2717_v15 = vrot.slane %v2716_v8, 1 }
 0x77b   :  { %v2718_v5 = vadd.f32 %v2717_v15, %v2716_v8 }
 0x77d   :  { %v2719_v32 = vmul.f32 0.03125, %v2718_v5 }
 0x77f   :  { %v2720_v20 = vadd.f32 1e-05, %v2719_v32 }
 0x781   :  { %3674 = vrsqrt.f32 %v2720_v20 }
 0x78e   :  { %v3675_v44 = vpop.eup %3674 }
 0x78f   :  { %v2722_v23 = vmul.f32 %v3675_v44, %v2702_v37  ;;  %v2723_v54 = vmul.f32 %v3675_v44, %v2703_v24  ;;  %v2724_v35 = vmul.f32 %v3675_v44, %v2704_v48  ;;  %v2725_v17 = vmul.f32 %v3675_v44, %v2705_v34 }
 0x791   :  { %v2742_v50 = vmul.f32 %v2728_v52, %v2722_v23  ;;  %v2743_v41 = vmul.f32 %v2732_v18, %v2723_v54  ;;  %v2744_v9 = vmul.f32 %v2736_v2, %v2724_v35  ;;  %v2745_v25 = vmul.f32 %v2740_v43, %v2725_v17 }
 0x793   :  { %v2762_v28 = vadd.f32 %v2748_v39, %v2742_v50  ;;  %v2764_v0 = vadd.f32 %v2756_v21, %v2744_v9  ;;  %v2765_v57 = vadd.f32 %v2760_v22, %v2745_v25  ;;  %v2763_v60 = vadd.f32 %v2752_v11, %v2743_v41 }
 0x795   :  { %v2766_v38 = vadd.f32 %v3680_v14, %v2762_v28  ;;  %v2768_v46 = vadd.f32 %v3681_v40, %v2764_v0  ;;  %v2769_v33 = vadd.f32 %v3682_v12, %v2765_v57  ;;  %v2767_v58 = vadd.f32 %v3683_v4, %v2763_v60 }
 0x797   :  { %2770 = vst [vmem:[%s5043_s7] sm:$0xff] %v2766_v38  ;;  %2772 = vst [vmem:[%s5043_s7 + $0x10] sm:$0xff] %v2768_v46 }
 0x798   :  { %2773 = vst [vmem:[%s5043_s7 + $0x18] sm:$0xff] %v2769_v33  ;;  %2771 = vst [vmem:[%s5043_s7 + $0x8] sm:$0xff] %v2767_v58 }
 0x799   :  { %2778 = vsyncpa [#allocation3], 1 }

</bundles_post_ra>
